<compile_context>
chip_gen: v7x
topology: tpu7x:2x2x1
jax: 0.10.0
libtpu: 0.0.40
codegen_flags: <defaults>
</compile_context>

<pallas_src>
import functools

import jax
import jax.numpy as jnp
from jax.experimental import pallas as pl
from jax.experimental.pallas import tpu as pltpu


def _preact_dsconv_kernel(x_ref, scale_ref, shift_ref, dw_ref, pw_ref, *refs,
                          K, dil_h, dil_w, H, W, pad_h, pad_w, add_residual):
    """One batch element of: relu(x*scale+shift) -> depthwise KxK -> pointwise 1x1.

    x_ref:     (H, W, C)                  input block
    scale_ref: (1, C)                     folded BatchNorm scale
    shift_ref: (1, C)                     folded BatchNorm shift
    dw_ref:    (K*K, C)                   depthwise taps, row = kh*K + kw
    pw_ref:    (C, Cout)                  pointwise weight
    res_ref:   (H, W, Cout)               optional residual (fused add)
    out_ref:   (H, W, Cout)
    xact_ref:  (H+2*pad_h, W+2*pad_w, C)  f32 scratch (zero-padded activations)
    acc_ref:   (H, W, C)                  f32 scratch (depthwise accumulator)
    """
    if add_residual:
        res_ref, out_ref, xact_ref, acc_ref = refs
    else:
        res_ref = None
        out_ref, xact_ref, acc_ref = refs

    # Pre-activation (folded BN + ReLU) written straight into the zero-padded
    # VMEM scratch: in-kernel "same" zero padding, matching PyTorch's conv pad.
    xact_ref[...] = jnp.zeros_like(xact_ref)
    xact_ref[pad_h:pad_h + H, pad_w:pad_w + W, :] = jnp.maximum(
        x_ref[...].astype(jnp.float32) * scale_ref[...] + shift_ref[...], 0.0)

    # Depthwise conv: K*K shifted full-size windows sliced directly from the
    # padded scratch ref, accumulated into the VMEM accumulator (pure VPU work,
    # channels on lanes).
    first = True
    for kh in range(K):
        for kw in range(K):
            window = xact_ref[kh * dil_h:kh * dil_h + H,
                              kw * dil_w:kw * dil_w + W, :]
            t = kh * K + kw
            tap = dw_ref[t:t + 1, :]                      # (1, C), broadcasts
            if first:
                acc_ref[...] = window * tap
                first = False
            else:
                acc_ref[...] += window * tap

    # Pointwise 1x1 conv == (H*W, C) @ (C, Cout) on the MXU, f32 accumulation.
    C = acc_ref.shape[-1]
    Cout = pw_ref.shape[-1]
    out = jnp.dot(acc_ref[...].reshape(H * W, C), pw_ref[...],
                  preferred_element_type=jnp.float32).reshape(H, W, Cout)
    if add_residual:
        out = out + res_ref[...].astype(jnp.float32)
    out_ref[...] = out.astype(out_ref.dtype)


def _fold_bn(gamma, beta, mean, var, eps=1e-5):
    """Inference-mode BatchNorm folded to per-channel scale/shift."""
    scale = gamma / jnp.sqrt(var + eps)
    shift = beta - mean * scale
    return scale.astype(jnp.float32), shift.astype(jnp.float32)


def _preact_dsconv(x_nhwc, scale, shift, dw_torch, pw_torch, *,
                   kernel_size, dilation, residual=None):
    """Fused preact depthwise-separable conv on an NHWC activation.

    x_nhwc:   (B, H, W, C)
    dw_torch: (C, 1, K, K)     PyTorch depthwise conv weight (groups=C)
    pw_torch: (Cout, C, 1, 1)  PyTorch pointwise 1x1 conv weight
    residual: optional (B, H, W, Cout) tensor added to the output (fused).
    """
    B, H, W, C = x_nhwc.shape
    K = kernel_size
    dil_h, dil_w = dilation
    eff_h = (K - 1) * dil_h + 1
    eff_w = (K - 1) * dil_w + 1
    # PyTorch padding=eff//2 only gives a same-size output for odd effective
    # extents (always true in DeepRx: K=3 with integer dilation).
    assert eff_h % 2 == 1 and eff_w % 2 == 1
    pad_h, pad_w = eff_h // 2, eff_w // 2

    dw = jnp.transpose(dw_torch[:, 0, :, :], (1, 2, 0)).reshape(K * K, C)  # (K*K, C)
    pw = jnp.transpose(pw_torch[:, :, 0, 0], (1, 0))                       # (C, Cout)
    Cout = pw.shape[1]
    scale2 = jnp.reshape(scale, (1, C)).astype(jnp.float32)
    shift2 = jnp.reshape(shift, (1, C)).astype(jnp.float32)

    inputs = [x_nhwc, scale2, shift2, dw, pw]
    in_specs = [
        pl.BlockSpec((None, H, W, C), lambda n: (n, 0, 0, 0)),
        pl.BlockSpec((1, C), lambda n: (0, 0)),
        pl.BlockSpec((1, C), lambda n: (0, 0)),
        pl.BlockSpec((K * K, C), lambda n: (0, 0)),
        pl.BlockSpec((C, Cout), lambda n: (0, 0)),
    ]
    if residual is not None:
        inputs.append(residual)
        in_specs.append(pl.BlockSpec((None, H, W, Cout), lambda n: (n, 0, 0, 0)))

    kernel = functools.partial(
        _preact_dsconv_kernel, K=K, dil_h=dil_h, dil_w=dil_w, H=H, W=W,
        pad_h=pad_h, pad_w=pad_w, add_residual=residual is not None)

    flops = 2 * B * H * W * C * (K * K + Cout) + 3 * B * H * W * C
    bytes_accessed = 4 * (x_nhwc.size + scale2.size + shift2.size + dw.size
                          + pw.size + B * H * W * Cout
                          + (residual.size if residual is not None else 0))

    return pl.pallas_call(
        kernel,
        grid=(B,),
        in_specs=in_specs,
        out_specs=pl.BlockSpec((None, H, W, Cout), lambda n: (n, 0, 0, 0)),
        out_shape=jax.ShapeDtypeStruct((B, H, W, Cout), x_nhwc.dtype),
        scratch_shapes=[
            pltpu.VMEM((H + 2 * pad_h, W + 2 * pad_w, C), jnp.float32),
            pltpu.VMEM((H, W, C), jnp.float32),
        ],
        compiler_params=pltpu.CompilerParams(
            dimension_semantics=("parallel",),
            vmem_limit_bytes=32 * 1024 * 1024),
        cost_estimate=pl.CostEstimate(flops=flops, transcendentals=0,
                                      bytes_accessed=bytes_accessed),
    )(*inputs)


def resnet_block_forward(x_nchw, params, *, kernel_size=3, dilation=(1, 1)):
    """DeepRx ResNetBlock.forward (inference-mode BN) via two fused Pallas calls.

    x_nchw: (B, C, H, W), params: PyTorch-layout tensors (see __main__).
    Returns (B, C, H, W).
    """
    s1, b1 = _fold_bn(params["bn1_gamma"], params["bn1_beta"],
                      params["bn1_mean"], params["bn1_var"])
    s2, b2 = _fold_bn(params["bn2_gamma"], params["bn2_beta"],
                      params["bn2_mean"], params["bn2_var"])

    # One NCHW<->NHWC transpose pair for the WHOLE block (8 conv/BN/ReLU ops),
    # instead of per-conv transposes; inside the kernels channels sit on the
    # lane axis, so all loads/stores are lane-dense at C=64/128.
    x = jnp.transpose(x_nchw, (0, 2, 3, 1))
    h = _preact_dsconv(x, s1, b1, params["dw1"], params["pw1"],
                       kernel_size=kernel_size, dilation=dilation)
    y = _preact_dsconv(h, s2, b2, params["dw2"], params["pw2"],
                       kernel_size=kernel_size, dilation=dilation, residual=x)
    return jnp.transpose(y, (0, 3, 1, 2))


def resnet_block_reference(x, params, *, kernel_size=3, dilation=(1, 1)):
    """Plain-JAX reference (NCHW, lax.conv) matching the PyTorch ResNetBlock."""
    C = x.shape[1]
    pad = (((kernel_size - 1) * dilation[0] + 1) // 2,
           ((kernel_size - 1) * dilation[1] + 1) // 2)

    def bn_relu(v, g, b, m, var):
        s = g / jnp.sqrt(var + 1e-5)
        sh = b - m * s
        return jnp.maximum(v * s[None, :, None, None] + sh[None, :, None, None], 0.0)

    def conv(v, w, groups=1, dil=(1, 1), p=(0, 0)):
        return jax.lax.conv_general_dilated(
            v, w, window_strides=(1, 1),
            padding=[(p[0], p[0]), (p[1], p[1])],
            rhs_dilation=dil, dimension_numbers=("NCHW", "OIHW", "NCHW"),
            feature_group_count=groups, precision=jax.lax.Precision.HIGHEST)

    out = bn_relu(x, params["bn1_gamma"], params["bn1_beta"],
                  params["bn1_mean"], params["bn1_var"])
    out = conv(out, params["dw1"], groups=C, dil=dilation, p=pad)
    out = conv(out, params["pw1"])
    out = bn_relu(out, params["bn2_gamma"], params["bn2_beta"],
                  params["bn2_mean"], params["bn2_var"])
    out = conv(out, params["dw2"], groups=C, dil=dilation, p=pad)
    out = conv(out, params["pw2"])
    return out + x


if __name__ == "__main__":
    # Two real DeepRx block configurations at small spatial size
    # (S=16 OFDM symbols x F=16 subcarriers):
    #   'res0': channels=64,  dilation=(1, 1)
    #   'res2': channels=128, dilation=(2, 3)
    configs = [
        (2, 64, (1, 1)),
        (4, 128, (2, 3)),
    ]
    K, S, F = 3, 16, 16

    key = jax.random.PRNGKey(0)
    for (B, C, dilation) in configs:
        key, *ks = jax.random.split(key, 14)

        def nrm(k, shape, s=1.0):
            return s * jax.random.normal(k, shape, jnp.float32)

        params = {
            "bn1_gamma": 1.0 + 0.1 * nrm(ks[0], (C,)),
            "bn1_beta": 0.1 * nrm(ks[1], (C,)),
            "bn1_mean": 0.1 * nrm(ks[2], (C,)),
            "bn1_var": 1.0 + 0.2 * jax.random.uniform(ks[3], (C,), jnp.float32),
            "dw1": 0.2 * nrm(ks[4], (C, 1, K, K)),
            "pw1": nrm(ks[5], (C, C, 1, 1)) * (1.0 / C) ** 0.5,
            "bn2_gamma": 1.0 + 0.1 * nrm(ks[6], (C,)),
            "bn2_beta": 0.1 * nrm(ks[7], (C,)),
            "bn2_mean": 0.1 * nrm(ks[8], (C,)),
            "bn2_var": 1.0 + 0.2 * jax.random.uniform(ks[9], (C,), jnp.float32),
            "dw2": 0.2 * nrm(ks[10], (C, 1, K, K)),
            "pw2": nrm(ks[11], (C, C, 1, 1)) * (1.0 / C) ** 0.5,
        }
        x = nrm(ks[12], (B, C, S, F))

        out = jax.block_until_ready(
            resnet_block_forward(x, params, kernel_size=K, dilation=dilation))
        ref = resnet_block_reference(x, params, kernel_size=K, dilation=dilation)

        assert out.shape == (B, C, S, F)
        assert jnp.allclose(out, ref, atol=1e-3, rtol=1e-3), (
            f"mismatch vs reference conv (C={C}, dilation={dilation})")

    print("KERNEL_OK")
</pallas_src>

<mosaic_0001>
module attributes {stable_mosaic.version = 11 : i64} {
  func.func @_preact_dsconv_kernel(%arg0: i32, %arg1: memref<1x16x16x64xf32, #tpu.memory_space<vmem>>, %arg2: memref<1x64xf32, #tpu.memory_space<vmem>>, %arg3: memref<1x64xf32, #tpu.memory_space<vmem>>, %arg4: memref<9x64xf32, #tpu.memory_space<vmem>>, %arg5: memref<64x64xf32, #tpu.memory_space<vmem>>, %arg6: memref<1x16x16x64xf32, #tpu.memory_space<vmem>>, %arg7: memref<18x18x64xf32, #tpu.memory_space<vmem>>, %arg8: memref<16x16x64xf32, #tpu.memory_space<vmem>>) attributes {dimension_semantics = [#tpu.dimension_semantics<parallel>], iteration_bounds = array<i64: 2>, scalar_prefetch = 0 : i64, scratch_operands = 2 : i64, tpu.core_type = #tpu.core_type<tc>, window_params = [{transform_indices = @transform_0, window_bounds = array<i64: 1, 16, 16, 64>}, {pipeline_mode = #tpu.pipeline_mode<synchronous>, transform_indices = @transform_1, window_bounds = array<i64: 1, 64>}, {pipeline_mode = #tpu.pipeline_mode<synchronous>, transform_indices = @transform_2, window_bounds = array<i64: 1, 64>}, {pipeline_mode = #tpu.pipeline_mode<synchronous>, transform_indices = @transform_3, window_bounds = array<i64: 9, 64>}, {pipeline_mode = #tpu.pipeline_mode<synchronous>, transform_indices = @transform_4, window_bounds = array<i64: 64, 64>}, {transform_indices = @transform_5, window_bounds = array<i64: 1, 16, 16, 64>}]} {
    %cst = arith.constant 0.000000e+00 : f32
    %0 = vector.broadcast %cst : f32 to vector<18x18x64xf32>
    %c0 = arith.constant 0 : index
    %c0_0 = arith.constant 0 : index
    %c0_1 = arith.constant 0 : index
    %1 = vector.load %arg7[%c0, %c0_0, %c0_1] : memref<18x18x64xf32, #tpu.memory_space<vmem>>, vector<18x18x64xf32>
    tpu.vector_store %arg7[%c0, %c0_0, %c0_1], %0 {strides = array<i32>} : memref<18x18x64xf32, #tpu.memory_space<vmem>>, vector<18x18x64xf32>,
    %c0_2 = arith.constant 0 : index
    %c0_3 = arith.constant 0 : index
    %c0_4 = arith.constant 0 : index
    %c0_5 = arith.constant 0 : index
    %2 = vector.load %arg1[%c0_2, %c0_3, %c0_4, %c0_5] : memref<1x16x16x64xf32, #tpu.memory_space<vmem>>, vector<1x16x16x64xf32>
    %3 = vector.shape_cast %2 : vector<1x16x16x64xf32> to vector<16x16x64xf32>
    %c0_6 = arith.constant 0 : index
    %c0_7 = arith.constant 0 : index
    %4 = vector.load %arg2[%c0_6, %c0_7] : memref<1x64xf32, #tpu.memory_space<vmem>>, vector<1x64xf32>
    %5 = vector.shape_cast %4 : vector<1x64xf32> to vector<1x1x64xf32>
    %6 = vector.broadcast %5 : vector<1x1x64xf32> to vector<16x16x64xf32>
    %7 = arith.mulf %3, %6 : vector<16x16x64xf32>
    %c0_8 = arith.constant 0 : index
    %c0_9 = arith.constant 0 : index
    %8 = vector.load %arg3[%c0_8, %c0_9] : memref<1x64xf32, #tpu.memory_space<vmem>>, vector<1x64xf32>
    %9 = vector.shape_cast %8 : vector<1x64xf32> to vector<1x1x64xf32>
    %10 = vector.broadcast %9 : vector<1x1x64xf32> to vector<16x16x64xf32>
    %11 = arith.addf %7, %10 : vector<16x16x64xf32>
    %cst_10 = arith.constant 0.000000e+00 : f32
    %12 = vector.broadcast %cst_10 : f32 to vector<16x16x64xf32>
    %13 = arith.maximumf %11, %12 : vector<16x16x64xf32>
    %c1 = arith.constant 1 : index
    %c1_11 = arith.constant 1 : index
    %c0_12 = arith.constant 0 : index
    %14 = vector.load %arg7[%c1, %c1_11, %c0_12] : memref<18x18x64xf32, #tpu.memory_space<vmem>>, vector<16x16x64xf32>
    tpu.vector_store %arg7[%c1, %c1_11, %c0_12], %13 {strides = array<i32>} : memref<18x18x64xf32, #tpu.memory_space<vmem>>, vector<16x16x64xf32>,
    %c0_13 = arith.constant 0 : index
    %c0_14 = arith.constant 0 : index
    %c0_15 = arith.constant 0 : index
    %15 = vector.load %arg7[%c0_13, %c0_14, %c0_15] : memref<18x18x64xf32, #tpu.memory_space<vmem>>, vector<16x16x64xf32>
    %c0_16 = arith.constant 0 : index
    %c0_17 = arith.constant 0 : index
    %16 = vector.load %arg4[%c0_16, %c0_17] : memref<9x64xf32, #tpu.memory_space<vmem>>, vector<1x64xf32>
    %17 = vector.shape_cast %16 : vector<1x64xf32> to vector<1x1x64xf32>
    %18 = vector.broadcast %17 : vector<1x1x64xf32> to vector<16x16x64xf32>
    %19 = arith.mulf %15, %18 : vector<16x16x64xf32>
    %c0_18 = arith.constant 0 : index
    %c0_19 = arith.constant 0 : index
    %c0_20 = arith.constant 0 : index
    %20 = vector.load %arg8[%c0_18, %c0_19, %c0_20] : memref<16x16x64xf32, #tpu.memory_space<vmem>>, vector<16x16x64xf32>
    tpu.vector_store %arg8[%c0_18, %c0_19, %c0_20], %19 {strides = array<i32>} : memref<16x16x64xf32, #tpu.memory_space<vmem>>, vector<16x16x64xf32>,
    %c0_21 = arith.constant 0 : index
    %c1_22 = arith.constant 1 : index
    %c0_23 = arith.constant 0 : index
    %21 = vector.load %arg7[%c0_21, %c1_22, %c0_23] : memref<18x18x64xf32, #tpu.memory_space<vmem>>, vector<16x16x64xf32>
    %c1_24 = arith.constant 1 : index
    %c0_25 = arith.constant 0 : index
    %22 = vector.load %arg4[%c1_24, %c0_25] : memref<9x64xf32, #tpu.memory_space<vmem>>, vector<1x64xf32>
    %c0_26 = arith.constant 0 : index
    %c0_27 = arith.constant 0 : index
    %c0_28 = arith.constant 0 : index
    %23 = vector.load %arg8[%c0_26, %c0_27, %c0_28] : memref<16x16x64xf32, #tpu.memory_space<vmem>>, vector<16x16x64xf32>
    %24 = vector.shape_cast %22 : vector<1x64xf32> to vector<1x1x64xf32>
    %25 = vector.broadcast %24 : vector<1x1x64xf32> to vector<16x16x64xf32>
    %26 = arith.mulf %21, %25 : vector<16x16x64xf32>
    %27 = arith.addf %23, %26 : vector<16x16x64xf32>
    %c0_29 = arith.constant 0 : index
    %c0_30 = arith.constant 0 : index
    %c0_31 = arith.constant 0 : index
    %28 = vector.load %arg8[%c0_29, %c0_30, %c0_31] : memref<16x16x64xf32, #tpu.memory_space<vmem>>, vector<16x16x64xf32>
    tpu.vector_store %arg8[%c0_29, %c0_30, %c0_31], %27 {strides = array<i32>} : memref<16x16x64xf32, #tpu.memory_space<vmem>>, vector<16x16x64xf32>,
    %c0_32 = arith.constant 0 : index
    %c2 = arith.constant 2 : index
    %c0_33 = arith.constant 0 : index
    %29 = vector.load %arg7[%c0_32, %c2, %c0_33] : memref<18x18x64xf32, #tpu.memory_space<vmem>>, vector<16x16x64xf32>
    %c2_34 = arith.constant 2 : index
    %c0_35 = arith.constant 0 : index
    %30 = vector.load %arg4[%c2_34, %c0_35] : memref<9x64xf32, #tpu.memory_space<vmem>>, vector<1x64xf32>
    %c0_36 = arith.constant 0 : index
    %c0_37 = arith.constant 0 : index
    %c0_38 = arith.constant 0 : index
    %31 = vector.load %arg8[%c0_36, %c0_37, %c0_38] : memref<16x16x64xf32, #tpu.memory_space<vmem>>, vector<16x16x64xf32>
    %32 = vector.shape_cast %30 : vector<1x64xf32> to vector<1x1x64xf32>
    %33 = vector.broadcast %32 : vector<1x1x64xf32> to vector<16x16x64xf32>
    %34 = arith.mulf %29, %33 : vector<16x16x64xf32>
    %35 = arith.addf %31, %34 : vector<16x16x64xf32>
    %c0_39 = arith.constant 0 : index
    %c0_40 = arith.constant 0 : index
    %c0_41 = arith.constant 0 : index
    %36 = vector.load %arg8[%c0_39, %c0_40, %c0_41] : memref<16x16x64xf32, #tpu.memory_space<vmem>>, vector<16x16x64xf32>
    tpu.vector_store %arg8[%c0_39, %c0_40, %c0_41], %35 {strides = array<i32>} : memref<16x16x64xf32, #tpu.memory_space<vmem>>, vector<16x16x64xf32>,
    %c1_42 = arith.constant 1 : index
    %c0_43 = arith.constant 0 : index
    %c0_44 = arith.constant 0 : index
    %37 = vector.load %arg7[%c1_42, %c0_43, %c0_44] : memref<18x18x64xf32, #tpu.memory_space<vmem>>, vector<16x16x64xf32>
    %c3 = arith.constant 3 : index
    %c0_45 = arith.constant 0 : index
    %38 = vector.load %arg4[%c3, %c0_45] : memref<9x64xf32, #tpu.memory_space<vmem>>, vector<1x64xf32>
    %c0_46 = arith.constant 0 : index
    %c0_47 = arith.constant 0 : index
    %c0_48 = arith.constant 0 : index
    %39 = vector.load %arg8[%c0_46, %c0_47, %c0_48] : memref<16x16x64xf32, #tpu.memory_space<vmem>>, vector<16x16x64xf32>
    %40 = vector.shape_cast %38 : vector<1x64xf32> to vector<1x1x64xf32>
    %41 = vector.broadcast %40 : vector<1x1x64xf32> to vector<16x16x64xf32>
    %42 = arith.mulf %37, %41 : vector<16x16x64xf32>
    %43 = arith.addf %39, %42 : vector<16x16x64xf32>
    %c0_49 = arith.constant 0 : index
    %c0_50 = arith.constant 0 : index
    %c0_51 = arith.constant 0 : index
    %44 = vector.load %arg8[%c0_49, %c0_50, %c0_51] : memref<16x16x64xf32, #tpu.memory_space<vmem>>, vector<16x16x64xf32>
    tpu.vector_store %arg8[%c0_49, %c0_50, %c0_51], %43 {strides = array<i32>} : memref<16x16x64xf32, #tpu.memory_space<vmem>>, vector<16x16x64xf32>,
    %c1_52 = arith.constant 1 : index
    %c1_53 = arith.constant 1 : index
    %c0_54 = arith.constant 0 : index
    %45 = vector.load %arg7[%c1_52, %c1_53, %c0_54] : memref<18x18x64xf32, #tpu.memory_space<vmem>>, vector<16x16x64xf32>
    %c4 = arith.constant 4 : index
    %c0_55 = arith.constant 0 : index
    %46 = vector.load %arg4[%c4, %c0_55] : memref<9x64xf32, #tpu.memory_space<vmem>>, vector<1x64xf32>
    %c0_56 = arith.constant 0 : index
    %c0_57 = arith.constant 0 : index
    %c0_58 = arith.constant 0 : index
    %47 = vector.load %arg8[%c0_56, %c0_57, %c0_58] : memref<16x16x64xf32, #tpu.memory_space<vmem>>, vector<16x16x64xf32>
    %48 = vector.shape_cast %46 : vector<1x64xf32> to vector<1x1x64xf32>
    %49 = vector.broadcast %48 : vector<1x1x64xf32> to vector<16x16x64xf32>
    %50 = arith.mulf %45, %49 : vector<16x16x64xf32>
    %51 = arith.addf %47, %50 : vector<16x16x64xf32>
    %c0_59 = arith.constant 0 : index
    %c0_60 = arith.constant 0 : index
    %c0_61 = arith.constant 0 : index
    %52 = vector.load %arg8[%c0_59, %c0_60, %c0_61] : memref<16x16x64xf32, #tpu.memory_space<vmem>>, vector<16x16x64xf32>
    tpu.vector_store %arg8[%c0_59, %c0_60, %c0_61], %51 {strides = array<i32>} : memref<16x16x64xf32, #tpu.memory_space<vmem>>, vector<16x16x64xf32>,
    %c1_62 = arith.constant 1 : index
    %c2_63 = arith.constant 2 : index
    %c0_64 = arith.constant 0 : index
    %53 = vector.load %arg7[%c1_62, %c2_63, %c0_64] : memref<18x18x64xf32, #tpu.memory_space<vmem>>, vector<16x16x64xf32>
    %c5 = arith.constant 5 : index
    %c0_65 = arith.constant 0 : index
    %54 = vector.load %arg4[%c5, %c0_65] : memref<9x64xf32, #tpu.memory_space<vmem>>, vector<1x64xf32>
    %c0_66 = arith.constant 0 : index
    %c0_67 = arith.constant 0 : index
    %c0_68 = arith.constant 0 : index
    %55 = vector.load %arg8[%c0_66, %c0_67, %c0_68] : memref<16x16x64xf32, #tpu.memory_space<vmem>>, vector<16x16x64xf32>
    %56 = vector.shape_cast %54 : vector<1x64xf32> to vector<1x1x64xf32>
    %57 = vector.broadcast %56 : vector<1x1x64xf32> to vector<16x16x64xf32>
    %58 = arith.mulf %53, %57 : vector<16x16x64xf32>
    %59 = arith.addf %55, %58 : vector<16x16x64xf32>
    %c0_69 = arith.constant 0 : index
    %c0_70 = arith.constant 0 : index
    %c0_71 = arith.constant 0 : index
    %60 = vector.load %arg8[%c0_69, %c0_70, %c0_71] : memref<16x16x64xf32, #tpu.memory_space<vmem>>, vector<16x16x64xf32>
    tpu.vector_store %arg8[%c0_69, %c0_70, %c0_71], %59 {strides = array<i32>} : memref<16x16x64xf32, #tpu.memory_space<vmem>>, vector<16x16x64xf32>,
    %c2_72 = arith.constant 2 : index
    %c0_73 = arith.constant 0 : index
    %c0_74 = arith.constant 0 : index
    %61 = vector.load %arg7[%c2_72, %c0_73, %c0_74] : memref<18x18x64xf32, #tpu.memory_space<vmem>>, vector<16x16x64xf32>
    %c6 = arith.constant 6 : index
    %c0_75 = arith.constant 0 : index
    %62 = vector.load %arg4[%c6, %c0_75] : memref<9x64xf32, #tpu.memory_space<vmem>>, vector<1x64xf32>
    %c0_76 = arith.constant 0 : index
    %c0_77 = arith.constant 0 : index
    %c0_78 = arith.constant 0 : index
    %63 = vector.load %arg8[%c0_76, %c0_77, %c0_78] : memref<16x16x64xf32, #tpu.memory_space<vmem>>, vector<16x16x64xf32>
    %64 = vector.shape_cast %62 : vector<1x64xf32> to vector<1x1x64xf32>
    %65 = vector.broadcast %64 : vector<1x1x64xf32> to vector<16x16x64xf32>
    %66 = arith.mulf %61, %65 : vector<16x16x64xf32>
    %67 = arith.addf %63, %66 : vector<16x16x64xf32>
    %c0_79 = arith.constant 0 : index
    %c0_80 = arith.constant 0 : index
    %c0_81 = arith.constant 0 : index
    %68 = vector.load %arg8[%c0_79, %c0_80, %c0_81] : memref<16x16x64xf32, #tpu.memory_space<vmem>>, vector<16x16x64xf32>
    tpu.vector_store %arg8[%c0_79, %c0_80, %c0_81], %67 {strides = array<i32>} : memref<16x16x64xf32, #tpu.memory_space<vmem>>, vector<16x16x64xf32>,
    %c2_82 = arith.constant 2 : index
    %c1_83 = arith.constant 1 : index
    %c0_84 = arith.constant 0 : index
    %69 = vector.load %arg7[%c2_82, %c1_83, %c0_84] : memref<18x18x64xf32, #tpu.memory_space<vmem>>, vector<16x16x64xf32>
    %c7 = arith.constant 7 : index
    %c0_85 = arith.constant 0 : index
    %70 = vector.load %arg4[%c7, %c0_85] : memref<9x64xf32, #tpu.memory_space<vmem>>, vector<1x64xf32>
    %c0_86 = arith.constant 0 : index
    %c0_87 = arith.constant 0 : index
    %c0_88 = arith.constant 0 : index
    %71 = vector.load %arg8[%c0_86, %c0_87, %c0_88] : memref<16x16x64xf32, #tpu.memory_space<vmem>>, vector<16x16x64xf32>
    %72 = vector.shape_cast %70 : vector<1x64xf32> to vector<1x1x64xf32>
    %73 = vector.broadcast %72 : vector<1x1x64xf32> to vector<16x16x64xf32>
    %74 = arith.mulf %69, %73 : vector<16x16x64xf32>
    %75 = arith.addf %71, %74 : vector<16x16x64xf32>
    %c0_89 = arith.constant 0 : index
    %c0_90 = arith.constant 0 : index
    %c0_91 = arith.constant 0 : index
    %76 = vector.load %arg8[%c0_89, %c0_90, %c0_91] : memref<16x16x64xf32, #tpu.memory_space<vmem>>, vector<16x16x64xf32>
    tpu.vector_store %arg8[%c0_89, %c0_90, %c0_91], %75 {strides = array<i32>} : memref<16x16x64xf32, #tpu.memory_space<vmem>>, vector<16x16x64xf32>,
    %c2_92 = arith.constant 2 : index
    %c2_93 = arith.constant 2 : index
    %c0_94 = arith.constant 0 : index
    %77 = vector.load %arg7[%c2_92, %c2_93, %c0_94] : memref<18x18x64xf32, #tpu.memory_space<vmem>>, vector<16x16x64xf32>
    %c8 = arith.constant 8 : index
    %c0_95 = arith.constant 0 : index
    %78 = vector.load %arg4[%c8, %c0_95] : memref<9x64xf32, #tpu.memory_space<vmem>>, vector<1x64xf32>
    %c0_96 = arith.constant 0 : index
    %c0_97 = arith.constant 0 : index
    %c0_98 = arith.constant 0 : index
    %79 = vector.load %arg8[%c0_96, %c0_97, %c0_98] : memref<16x16x64xf32, #tpu.memory_space<vmem>>, vector<16x16x64xf32>
    %80 = vector.shape_cast %78 : vector<1x64xf32> to vector<1x1x64xf32>
    %81 = vector.broadcast %80 : vector<1x1x64xf32> to vector<16x16x64xf32>
    %82 = arith.mulf %77, %81 : vector<16x16x64xf32>
    %83 = arith.addf %79, %82 : vector<16x16x64xf32>
    %c0_99 = arith.constant 0 : index
    %c0_100 = arith.constant 0 : index
    %c0_101 = arith.constant 0 : index
    %84 = vector.load %arg8[%c0_99, %c0_100, %c0_101] : memref<16x16x64xf32, #tpu.memory_space<vmem>>, vector<16x16x64xf32>
    tpu.vector_store %arg8[%c0_99, %c0_100, %c0_101], %83 {strides = array<i32>} : memref<16x16x64xf32, #tpu.memory_space<vmem>>, vector<16x16x64xf32>,
    %c0_102 = arith.constant 0 : index
    %c0_103 = arith.constant 0 : index
    %c0_104 = arith.constant 0 : index
    %85 = vector.load %arg8[%c0_102, %c0_103, %c0_104] : memref<16x16x64xf32, #tpu.memory_space<vmem>>, vector<16x16x64xf32>
    %86 = vector.shape_cast %85 : vector<16x16x64xf32> to vector<256x64xf32>
    %c0_105 = arith.constant 0 : index
    %c0_106 = arith.constant 0 : index
    %87 = vector.load %arg5[%c0_105, %c0_106] : memref<64x64xf32, #tpu.memory_space<vmem>>, vector<64x64xf32>
    %cst_107 = arith.constant dense<0.000000e+00> : vector<256x64xf32>
    %88 = tpu.matmul %86, %87, %cst_107 {dimension_numbers = #tpu.dot_dimension_numbers<[1], [0], [0], [1], [0, 0, 1, 1], [], []>} : vector<256x64xf32>, vector<64x64xf32>, vector<256x64xf32> -> vector<256x64xf32>
    %89 = vector.shape_cast %88 : vector<256x64xf32> to vector<16x16x64xf32>
    %c0_108 = arith.constant 0 : index
    %c0_109 = arith.constant 0 : index
    %c0_110 = arith.constant 0 : index
    %c0_111 = arith.constant 0 : index
    %90 = vector.load %arg6[%c0_108, %c0_109, %c0_110, %c0_111] : memref<1x16x16x64xf32, #tpu.memory_space<vmem>>, vector<1x16x16x64xf32>
    %91 = vector.shape_cast %90 : vector<1x16x16x64xf32> to vector<16x16x64xf32>
    %92 = vector.shape_cast %89 : vector<16x16x64xf32> to vector<1x16x16x64xf32>
    tpu.vector_store %arg6[%c0_108, %c0_109, %c0_110, %c0_111], %92 {strides = array<i32>} : memref<1x16x16x64xf32, #tpu.memory_space<vmem>>, vector<1x16x16x64xf32>,
    return
  }
  func.func @transform_0(%arg0: i32) -> (i32, i32, i32, i32) {
    %c0_i32 = arith.constant 0 : i32
    %c0_i32_0 = arith.constant 0 : i32
    %c0_i32_1 = arith.constant 0 : i32
    %c0_i32_2 = arith.constant 0 : i32
    return %arg0, %c0_i32, %c0_i32_0, %c0_i32_1 : i32, i32, i32, i32
  }
  func.func @transform_1(%arg0: i32) -> (i32, i32) {
    %c0_i32 = arith.constant 0 : i32
    %c0_i32_0 = arith.constant 0 : i32
    %c0_i32_1 = arith.constant 0 : i32
    return %c0_i32, %c0_i32_0 : i32, i32
  }
  func.func @transform_2(%arg0: i32) -> (i32, i32) {
    %c0_i32 = arith.constant 0 : i32
    %c0_i32_0 = arith.constant 0 : i32
    %c0_i32_1 = arith.constant 0 : i32
    return %c0_i32, %c0_i32_0 : i32, i32
  }
  func.func @transform_3(%arg0: i32) -> (i32, i32) {
    %c0_i32 = arith.constant 0 : i32
    %c0_i32_0 = arith.constant 0 : i32
    %c0_i32_1 = arith.constant 0 : i32
    return %c0_i32, %c0_i32_0 : i32, i32
  }
  func.func @transform_4(%arg0: i32) -> (i32, i32) {
    %c0_i32 = arith.constant 0 : i32
    %c0_i32_0 = arith.constant 0 : i32
    %c0_i32_1 = arith.constant 0 : i32
    return %c0_i32, %c0_i32_0 : i32, i32
  }
  func.func @transform_5(%arg0: i32) -> (i32, i32, i32, i32) {
    %c0_i32 = arith.constant 0 : i32
    %c0_i32_0 = arith.constant 0 : i32
    %c0_i32_1 = arith.constant 0 : i32
    %c0_i32_2 = arith.constant 0 : i32
    return %arg0, %c0_i32, %c0_i32_0, %c0_i32_1 : i32, i32, i32, i32
  }
}

</mosaic_0001>

<bundles_post_ra>
// kernel: tpu_custom_call.1
= control target key start
LH: loop header
LB: loop body
LE: loop exit
PB: predicated region body
PF: predicated region fallthrough
CT: control target
= control target key end

     0   :  { %10 = vsyncpa [#allocation5], 0  ;;  %s4639_s0 = inlined_call_operand.hbm [shape: f32[2,16,16,64], index: 0, kind: input, shape index: {}]   ;;  %s4640_s1 = inlined_call_operand.vmem [shape: f32[1,64], index: 1, kind: input, shape index: {}]   ;;  %s4641_s2 = inlined_call_operand.vmem [shape: f32[1,64], index: 2, kind: input, shape index: {}]   ;;  %s4642_s3 = inlined_call_operand.hbm [shape: f32[9,64], index: 3, kind: input, shape index: {}]   ;;  %s4643_s4 = inlined_call_operand.hbm [shape: f32[64,64], index: 4, kind: input, shape index: {}]   ;;  %s4644_s5 = inlined_call_operand.hbm [shape: f32[2,16,16,64], index: 5, kind: output, shape index: {}]  }
   0x1   :  { %12 = vsyncpa [#allocation5 + $0x1], 0 }
   0x2   :  { %13 = vsyncpa [#allocation8], 0 }
   0x3   :  { %14 = vsyncpa [#allocation6], 0 }
   0x4   :  { %16 = vsyncpa [#allocation6 + $0x1], 0  ;;  %s2904_s18 = smov 0   ;;  %s2906_s19 = smov 0  }
   0x5   :  { %s2908_s20 = smov 0   ;;  %s2910_s21 = smov 0  }
   0x6 LB: > { %s2925_s22 = sadd.s32 4294967295, %s2863_s21   ;;  %s2424_s23 = sadd.s32 4294967294, %s2863_s21   ;;  %s2863_s21 = sphi %s2910_s21, %s4670_s21   ;;  %s2859_s20 = sphi %s2908_s20, %s4669_s20   ;;  %s2855_s19 = sphi %s2906_s19, %s4668_s19   ;;  %s2851_s18 = sphi %s2904_s18, %s4667_s18  }
   0x7   : > { %p42_p0 = scmp.ne.s32.totalorder %s2855_s19, %s2851_s18  ;;  %p4645_p1 = scmp.eq.s32.totalorder %s2925_s22, 0 }
   0x8   : > { %p156_p3 = scmp.eq.s32.totalorder %s2424_s23, 1  ;;  %p2425_p5 = scmp.ge.s32.totalorder %s2863_s21, 1 }
   0x9   : > { %p2934_p4 = por %p4645_p1, %p42_p0  ;;  %p163_p7 = scmp.lt.s32.totalorder %s2863_s21, 3 }
   0xa   : > { %p2939_p6 = por %p156_p3, %p42_p0  ;;  %s2865_s27 = smov [#allocation7]  }
   0xb   : > { %s4648_s24 = scalar_select %p2934_p4, 1, 0 }
   0xc   : > { %s4649_s25 = scalar_select %p2939_p6, 1, 0 }
   0xd   : > { %p2944_p8 = pnand %p2425_p5, %p163_p7  ;;  %s181_s28 = sshll.u32 %s2865_s27, 4  ;;  %s2948_s28 = int_to_ptr.vmem [resolvable:$true] %s181_s28 }
   0xe   : > { %s2866_s30 = smov [#allocation9]   ;;  %s2707_s9 = scalar_lea.hbm %s4642_s3, 256 }
   0xf   : > { %p2627_p9 = pneg %p2944_p8  ;;  %s194_s6 = sshll.u32 %s2866_s30, 4  ;;  %s2959_s6 = int_to_ptr.vmem [resolvable:$true] %s194_s6 }
  0x10   : > { %p2708_p12 = scmp.ne.s32.totalorder %s4642_s3, %s2707_s9  ;;  %p2714_p5 = scmp.lt.u32.totalorder %s2707_s9, %s4642_s3 }
  0x11   : > { %p2955_p11 = pnand %p2627_p9, %p4645_p1 }
  0x13   : > { %p2709_p13 = pneg %p2955_p11 }
  0x15   : > { %p2710_p0 = pnand %p2709_p13, %p2708_p12 }
  0x17   : > { %p2711_p3 = pneg %p2710_p0 }
  0x19   : > { %p2716_p7 = pnand %p2714_p5, %p2711_p3 }
  0x1b   : > { %2719 = shalt.err (!%p2716_p7)
}
  0x1c   : > { %s2720_s14 = scalar_lea.vmem %s2948_s28, 256  ;;  %p2728_p2 = scmp.lt.s32.totalorder %s2948_s28, %s2948_s28 }
  0x1d   : > { %p2721_p9 = scmp.ne.s32.totalorder %s2948_s28, %s2720_s14  ;;  %p2729_p12 = scmp.lt.s32.totalorder %s2720_s14, %s2720_s14 }
  0x1f   : > { %p2723_p10 = pnand %p2721_p9, %p2709_p13  ;;  %p2730_p0 = por %p2729_p12, %p2728_p2 }
  0x21   : > { %p2724_p1 = pneg %p2723_p10 }
  0x23   : > { %p2731_p6 = pnand %p2730_p0, %p2724_p1 }
  0x25   : > { %2734 = shalt.err (!%p2731_p6)
}
  0x26   : > { %s2867_s15 = smov 128   ;;  %s2868_s16 = smov 8  }
  0x27   : > { %2630 = dma.hbm_to_vmem [thread:$0]  (!%p2955_p11), %s4642_s3, 256, %s2948_s28, [#allocation8], %s2867_s15, %s2867_s15, %s2868_s16  }
  0x28   : > { %s2735_s7 = scalar_lea.hbm %s4643_s4, 1024 }
  0x29   : > { %p2736_p1 = scmp.ne.s32.totalorder %s4643_s4, %s2735_s7  ;;  %p2742_p10 = scmp.lt.u32.totalorder %s2735_s7, %s4643_s4 }
  0x2b   : > { %p2738_p2 = pnand %p2736_p1, %p2709_p13 }
  0x2d   : > { %p2739_p6 = pneg %p2738_p2 }
  0x2f   : > { %p2744_p3 = pnand %p2742_p10, %p2739_p6 }
  0x31   : > { %2747 = shalt.err (!%p2744_p3)
}
  0x32   : > { %s2748_s28 = scalar_lea.vmem %s2959_s6, 1024  ;;  %p2756_p12 = scmp.lt.s32.totalorder %s2959_s6, %s2959_s6 }
  0x33   : > { %p2749_p5 = scmp.ne.s32.totalorder %s2959_s6, %s2748_s28  ;;  %p2757_p0 = scmp.lt.s32.totalorder %s2748_s28, %s2748_s28 }
  0x35   : > { %p2751_p7 = pnand %p2749_p5, %p2709_p13  ;;  %p2758_p1 = por %p2757_p0, %p2756_p12 }
  0x37   : > { %p2752_p9 = pneg %p2751_p7 }
  0x39   : > { %p2759_p2 = pnand %p2758_p1, %p2752_p9 }
  0x3b   : > { %2762 = shalt.err (!%p2759_p2)
}
  0x3c   : > { %2633 = dma.hbm_to_vmem [thread:$0]  (!%p2955_p11), %s4643_s4, 1024, %s2959_s6, [#allocation8], %s2867_s15, %s2867_s15, %s2868_s16  }
  0x3d   : > { %s3020_s29 = sadd.s32 1, %s2863_s21   ;;  %s29_s14 = sadd.s32 1, %s2859_s20 }
  0x3e   : > { %s26_s17 = ssub.s32 %s2863_s21, %s3020_s29  ;;  %p36_p13 = scmp.ne.s32.totalorder %s2859_s20, %s2855_s19 }
  0x3f   : > { %p27_p6 = scmp.eq.s32.totalorder %s26_s17, 0  ;;  %p37_p10 = scmp.eq.s32.totalorder %s2863_s21, 0 }
  0x40   : > { %p4652_p3 = scmp.eq.s32.totalorder %s2925_s22, 1  ;;  %p2644_p7 = scmp.lt.s32.totalorder %s2863_s21, 2 }
  0x41   : > { %s3036_s27 = scalar_select %p27_p6, %s2859_s20, %s29_s14  }
  0x42   : > { %p3030_p5 = por %p4652_p3, %p36_p13  ;;  %p38_p9 = por %p37_p10, %p36_p13 }
  0x43   : > { %s208_s30 = sand.u32 1, %s2859_s20   ;;  %s2485_s6 = sshll.u32 %s2863_s21, 12 }
  0x44   : > { %s4653_s23 = scalar_select %p3030_p5, 1, 0 }
  0x45   : > { %s2429_s7 = sshll.u32 %s208_s30, 8  ;;  %s3043_s10 = scalar_lea.hbm %s4639_s0, %s2485_s6 }
  0x46   : > { %s212_s11 = scalar_lea.vmem [#allocation4], %s2429_s7  ;;  %p3047_p11 = pnand %p2644_p7, %p38_p9 }
  0x47   : > { %s219_s28 = sshll.u32 %s212_s11, 4  ;;  %s3051_s13 = scalar_lea.sflag [#allocation5], %s208_s30  ;;  %s3045_s28 = int_to_ptr.vmem [resolvable:$true] %s219_s28 }
  0x48   : > { %s2763_s14 = scalar_lea.hbm %s3043_s10, 4096  ;;  %p2765_p0 = pneg %p3047_p11 }
  0x49   : > { %p2764_p12 = scmp.ne.s32.totalorder %s3043_s10, %s2763_s14  ;;  %s2768_s6 = scalar_lea.hbm %s4639_s0, 8192 }
  0x4a   : > { %p2769_p13 = scmp.lt.u32.totalorder %s3043_s10, %s4639_s0  ;;  %p2770_p6 = scmp.lt.u32.totalorder %s2768_s6, %s2763_s14 }
  0x4b   : > { %p2766_p1 = pnand %p2765_p0, %p2764_p12  ;;  %p2772_p3 = scmp.lt.u32.totalorder %s2763_s14, %s3043_s10 }
  0x4c   : > { %p2771_p10 = por %p2770_p6, %p2769_p13 }
  0x4d   : > { %p2767_p2 = pneg %p2766_p1 }
  0x4e   : > { %p2773_p7 = por %p2772_p3, %p2771_p10 }
  0x50   : > { %p2774_p9 = pnand %p2773_p7, %p2767_p2 }
  0x52   : > { %2777 = shalt.err (!%p2774_p9)
}
  0x53   : > { %s2778_s30 = scalar_lea.vmem %s3045_s28, 4096  ;;  %s2869_s11 = smov [#allocation4]  }
  0x54   : > { %p2779_p12 = scmp.ne.s32.totalorder %s3045_s28, %s2778_s30  ;;  %s2783_s17 = sshll.u32 %s2869_s11, 4  ;;  %s2784_s17 = int_to_ptr.vmem [resolvable:$false] %s2783_s17 }
  0x55   : > { %s2785_s7 = scalar_lea.vmem %s2784_s17, 8192  ;;  %p2786_p4 = scmp.lt.s32.totalorder %s3045_s28, %s2784_s17 }
  0x56   : > { %p2781_p1 = pnand %p2779_p12, %p2765_p0  ;;  %p2787_p13 = scmp.lt.s32.totalorder %s2785_s7, %s2778_s30 }
  0x58   : > { %p2782_p5 = pneg %p2781_p1  ;;  %p2788_p6 = por %p2787_p13, %p2786_p4 }
  0x5a   : > { %p2789_p10 = pnand %p2788_p6, %p2782_p5 }
  0x5c   : > { %2792 = shalt.err (!%p2789_p10)
}
  0x5d   : > { %2637 = dma.hbm_to_vmem [thread:$0]  (!%p3047_p11), %s3043_s10, 4096, %s3045_s28, %s3051_s13, %s2867_s15, %s2867_s15, %s2868_s16  }
  0x5e   : > { %231 = sbr.rel (%p2944_p8) target bundleno = 609 (0x261), region = 40 }
  0x65   : > { %s3085_s14 = sand.u32 1, %s2855_s19   ;;  %p4655_p4 = scmp.ne.s32.totalorder %s4648_s24, 0 }
  0x66   : > { %s2433_s6 = sshll.u32 %s3085_s14, 8  ;;  %s234_s8 = scalar_lea.sflag [#allocation5], %s3085_s14 }
  0x67   : > { %s3091_s12 = scalar_lea.vmem [#allocation4], %s2433_s6 }
  0x68   : > { %2838 = dma.done.wait (%p4655_p4), %s234_s8, 4096  }
  0x69   : > { %2840 = vsyncadd (%p4655_p4), %s234_s8, 4294963200  ;;  %p4656_p5 = scmp.eq.s32.totalorder %s2925_s22, 0 }
  0x6b   : > { %2842 = dma.done.wait (%p4656_p5), [#allocation8], 1280   ;;  %p4657_p8 = pmov %p4656_p5 }
  0x6c   : > { %vm272_vm0 = vcmask 523264   ;;  %vm275_vm1 = vcmask 517120   ;;  %v2870_v0 = vmov 0.0   ;;  %v1957_v1 = vld [vmem:[#allocation9] sm:$0xff]  ;;  %v1958_v2 = vld [vmem:[#allocation9 + $0x8] sm:$0xff]  ;;  %v1959_v3 = vld [vmem:[#allocation9 + $0x10] sm:$0xff] }
  0x6d   : > { %2844 = vsyncadd (%p4657_p8), [#allocation8], 4294966016  ;;  %273 = vst.msk [vmem:[#allocation2] sm:$0xff] %vm272_vm0, %v2870_v0  ;;  %v2591_v4 = vpack.c.bf16 %v1958_v2, %v1957_v1  ;;  %v1960_v5 = vld [vmem:[#allocation9 + $0x18] sm:$0xff]  ;;  %v1961_v6 = vld [vmem:[#allocation9 + $0x20] sm:$0xff]  ;;  %s4522_s30 = scalar_lea.vmem [#allocation10], %s2433_s6 }
  0x6e   : > { %274 = vst.msk [vmem:[#allocation2 + $0x8] sm:$0xff] %vm272_vm0, %v2870_v0  ;;  %277 = vst.msk [vmem:[#allocation2 + $0x18] sm:$0xff] %vm272_vm0, %v2870_v0  ;;  %v1962_v7 = vld [vmem:[#allocation9 + $0x28] sm:$0xff]  ;;  %v2595_v8 = vpack.c.bf16 %v1960_v5, %v1959_v3  ;;  %v328_v9 = vld [vmem:[%s3091_s12] sm:$0xff]  ;;  %s2486_s11 = sshll.u32 %s2925_s22, 12  ;;  %s2332_s17 = sshll.u32 %s4522_s30, 4  ;;  %s4591_s17 = int_to_ptr.vmem [resolvable:$true] %s2332_s17 }
  0x6f   : > { %278 = vst.msk [vmem:[#allocation2 + $0x20] sm:$0xff] %vm272_vm0, %v2870_v0  ;;  %280 = vst.msk [vmem:[#allocation2 + $0x30] sm:$0xff] %vm272_vm0, %v2870_v0  ;;  %2592 = vmatprep.subr.bf16.mxu0 %v2591_v4  ;;  %2607 = vmatprep.subr.bf16.mxu1 %v2591_v4  ;;  %v329_v10 = vld [vmem:[%s3091_s12 + $0x8] sm:$0xff]  ;;  %v330_v11 = vld [vmem:[%s3091_s12 + $0x10] sm:$0xff]  ;;  %v2599_v13 = vpack.c.bf16 %v1962_v7, %v1961_v6  ;;  %s4589_s8 = scalar_lea.hbm %s4644_s5, %s2486_s11  ;;  %s2793_s24 = scalar_lea.vmem %s4591_s17, 4096 }
  0x70   : > { %279 = vst.msk [vmem:[#allocation2 + $0x28] sm:$0x3] %vm275_vm1, %v2870_v0  ;;  %282 = vst.msk [vmem:[#allocation2 + $0x40] sm:$0x3] %vm275_vm1, %v2870_v0  ;;  %v331_v12 = vld [vmem:[%s3091_s12 + $0x18] sm:$0xff]  ;;  %2594 = vmatpush3.bf16.msra.mxu0 %v2591_v4  ;;  %2611 = vmatpush3.bf16.msra.mxu1 %v2591_v4  ;;  %v1963_v16 = vld [vmem:[#allocation9 + $0x30] sm:$0xff]  ;;  %p2794_p11 = scmp.ne.s32.totalorder %s4591_s17, %s2793_s24 }
  0x71   : > { %281 = vst.msk [vmem:[#allocation2 + $0x38] sm:$0xff] %vm272_vm0, %v2870_v0  ;;  %283 = vst.msk [vmem:[#allocation2 + $0x48] sm:$0xff] %vm272_vm0, %v2870_v0  ;;  %v3162_v14 = vld [vmem:[%s4640_s1] ss:$0 sm:$0xff]  ;;  %2596 = vmatprep.subr.bf16.mxu0 %v2595_v8  ;;  %2608 = vmatprep.subr.bf16.mxu1 %v2595_v8  ;;  %v1964_v17 = vld [vmem:[#allocation9 + $0x38] sm:$0xff]  ;;  %p4664_p0 = scmp.ne.s32.totalorder %s4653_s23, 0 }
  0x72   : > { %276 = vst.msk [vmem:[#allocation2 + $0x10] sm:$0x3] %vm275_vm1, %v2870_v0  ;;  %285 = vst.msk [vmem:[#allocation2 + $0x58] sm:$0x3] %vm275_vm1, %v2870_v0  ;;  %v367_v18 = vmul.f32 %v3162_v14, %v328_v9  ;;  %v368_v19 = vmul.f32 %v3162_v14, %v329_v10  ;;  %v369_v20 = vmul.f32 %v3162_v14, %v330_v11  ;;  %v3167_v21 = vld [vmem:[#allocation7] ss:$0 sm:$0xff] }
  0x73   : > { %284 = vst.msk [vmem:[#allocation2 + $0x50] sm:$0xff] %vm272_vm0, %v2870_v0  ;;  %286 = vst.msk [vmem:[#allocation2 + $0x60] sm:$0xff] %vm272_vm0, %v2870_v0  ;;  %v370_v22 = vmul.f32 %v3162_v14, %v331_v12  ;;  %v3173_v23 = vld [vmem:[%s4641_s2] ss:$0 sm:$0xff]  ;;  %v2603_v28 = vpack.c.bf16 %v1964_v17, %v1963_v16  ;;  %v3181_v31 = vld [vmem:[#allocation7 + $0x1] ss:$0 sm:$0xff]  ;;  %p2795_p2 = pnand %p2794_p11, %p4664_p0 }
  0x74   : > { %287 = vst.msk [vmem:[#allocation2 + $0x68] sm:$0xff] %vm272_vm0, %v2870_v0  ;;  %289 = vst.msk [vmem:[#allocation2 + $0x78] sm:$0xff] %vm272_vm0, %v2870_v0  ;;  %v503_v15 = vld [vmem:[#allocation2] sm:$0xff]  ;;  %v406_v25 = vadd.f32 %v3173_v23, %v367_v18  ;;  %v407_v26 = vadd.f32 %v3173_v23, %v368_v19  ;;  %v408_v27 = vadd.f32 %v3173_v23, %v369_v20  ;;  %2598 = vmatpush3.bf16.msra.mxu0 %v2595_v8  ;;  %v343_v39 = vld [vmem:[%s3091_s12 + $0x78] sm:$0xff]  ;;  %s2871_s22 = smov [#allocation10]  }
  0x75   : > { %288 = vst.msk [vmem:[#allocation2 + $0x70] sm:$0x3] %vm275_vm1, %v2870_v0  ;;  %291 = vst.msk [vmem:[#allocation2 + $0x88] sm:$0x3] %vm275_vm1, %v2870_v0  ;;  %v540_v24 = vmul.f32 %v3167_v21, %v503_v15  ;;  %2612 = vmatpush3.bf16.msra.mxu1 %v2595_v8  ;;  %v409_v29 = vadd.f32 %v3173_v23, %v370_v22  ;;  %v604_v30 = vld [vmem:[#allocation2 + $0x1] sm:$0xff]  ;;  %2600 = vmatprep.subr.bf16.mxu0 %v2599_v13  ;;  %v344_v40 = vld [vmem:[%s3091_s12 + $0x80] sm:$0xff]  ;;  %p2796_p3 = pneg %p2795_p2 }
  0x76   : > { %290 = vst.msk [vmem:[#allocation2 + $0x80] sm:$0xff] %vm272_vm0, %v2870_v0  ;;  %292 = vst.msk [vmem:[#allocation2 + $0x90] sm:$0xff] %vm272_vm0, %v2870_v0  ;;  %v504_v32 = vld [vmem:[#allocation2 + $0x8] sm:$0xff]  ;;  %2609 = vmatprep.subr.bf16.mxu1 %v2599_v13  ;;  %v438_v33 = vmax.f32 %v406_v25, 0.0  ;;  %v439_v34 = vmax.f32 %v407_v26, 0.0  ;;  %v440_v35 = vmax.f32 %v408_v27, 0.0  ;;  %v673_v43 = vmul.f32 %v3181_v31, %v604_v30 }
  0x77   : > { %293 = vst.msk [vmem:[#allocation2 + $0x98] sm:$0xff] %vm272_vm0, %v2870_v0  ;;  %295 = vst.msk [vmem:[#allocation2 + $0xa8] sm:$0xff] %vm272_vm0, %v2870_v0  ;;  %v541_v36 = vmul.f32 %v3167_v21, %v504_v32  ;;  %v342_v37 = vld [vmem:[%s3091_s12 + $0x70] sm:$0xff]  ;;  %v441_v38 = vmax.f32 %v409_v29, 0.0  ;;  %v345_v41 = vld [vmem:[%s3091_s12 + $0x88] sm:$0xff]  ;;  %v382_v46 = vmul.f32 %v3162_v14, %v343_v39  ;;  %v383_v47 = vmul.f32 %v3162_v14, %v344_v40  ;;  %s2797_s26 = sshll.u32 %s2871_s22, 4  ;;  %s2798_s26 = int_to_ptr.vmem [resolvable:$false] %s2797_s26 }
  0x78   : > { %294 = vst.msk [vmem:[#allocation2 + $0xa0] sm:$0x3] %vm275_vm1, %v2870_v0  ;;  %297 = vst.msk [vmem:[#allocation2 + $0xb8] sm:$0x3] %vm275_vm1, %v2870_v0  ;;  %v381_v42 = vmul.f32 %v3162_v14, %v342_v37  ;;  %v346_v44 = vld [vmem:[%s3091_s12 + $0x90] sm:$0xff]  ;;  %v347_v45 = vld [vmem:[%s3091_s12 + $0x98] sm:$0xff]  ;;  %v384_v48 = vmul.f32 %v3162_v14, %v345_v41  ;;  %2602 = vmatpush3.bf16.msra.mxu0 %v2599_v13  ;;  %p2800_p7 = scmp.lt.s32.totalorder %s4591_s17, %s2798_s26 }
  0x79   : > { %296 = vst.msk [vmem:[#allocation2 + $0xb0] sm:$0xff] %vm272_vm0, %v2870_v0  ;;  %298 = vst.msk [vmem:[#allocation2 + $0xc0] sm:$0xff] %vm272_vm0, %v2870_v0  ;;  %v332_v49 = vld [vmem:[%s3091_s12 + $0x20] sm:$0xff]  ;;  %2613 = vmatpush3.bf16.msra.mxu1 %v2599_v13  ;;  %v385_v50 = vmul.f32 %v3162_v14, %v346_v44  ;;  %v386_v51 = vmul.f32 %v3162_v14, %v347_v45  ;;  %v333_v53 = vld [vmem:[%s3091_s12 + $0x28] sm:$0xff]  ;;  %2604 = vmatprep.subr.bf16.mxu0 %v2603_v28  ;;  %s2799_s15 = scalar_lea.vmem %s2798_s26, 8192 }
  0x7a   : > { %299 = vst.msk [vmem:[#allocation2 + $0xc8] sm:$0xff] %vm272_vm0, %v2870_v0  ;;  %301 = vst.msk [vmem:[#allocation2 + $0xd8] sm:$0xff] %vm272_vm0, %v2870_v0  ;;  %v420_v52 = vadd.f32 %v3173_v23, %v381_v42  ;;  %2610 = vmatprep.subr.bf16.mxu1 %v2603_v28  ;;  %v421_v54 = vadd.f32 %v3173_v23, %v382_v46  ;;  %v422_v55 = vadd.f32 %v3173_v23, %v383_v47  ;;  %v605_v57 = vld [vmem:[#allocation2 + $0x9] sm:$0xff]  ;;  %v3222_v12 = vld [vmem:[#allocation7 + $0x2] ss:$0 sm:$0xff]  ;;  %p2801_p9 = scmp.lt.s32.totalorder %s2799_s15, %s2793_s24 }
  0x7b   : > { %300 = vst.msk [vmem:[#allocation2 + $0xd0] sm:$0x3] %vm275_vm1, %v2870_v0  ;;  %303 = vst.msk [vmem:[#allocation2 + $0xe8] sm:$0x3] %vm275_vm1, %v2870_v0  ;;  %v423_v56 = vadd.f32 %v3173_v23, %v384_v48  ;;  %v424_v58 = vadd.f32 %v3173_v23, %v385_v50  ;;  %v425_v59 = vadd.f32 %v3173_v23, %v386_v51  ;;  %v769_v11 = vld [vmem:[#allocation2 + $0x2] sm:$0xff]  ;;  %v348_v20 = vld [vmem:[%s3091_s12 + $0xa0] sm:$0xff] }
  0x7c   : > { %302 = vst.msk [vmem:[#allocation2 + $0xe0] sm:$0xff] %vm272_vm0, %v2870_v0  ;;  %304 = vst.msk [vmem:[#allocation2 + $0xf0] sm:$0xff] %vm272_vm0, %v2870_v0  ;;  %v452_v60 = vmax.f32 %v420_v52, 0.0  ;;  %v371_v61 = vmul.f32 %v3162_v14, %v332_v49  ;;  %v453_v63 = vmax.f32 %v421_v54, 0.0  ;;  %v372_v2 = vmul.f32 %v3162_v14, %v333_v53  ;;  %2606 = vmatpush3.bf16.msra.mxu0 %v2603_v28  ;;  %v349_v25 = vld [vmem:[%s3091_s12 + $0xa8] sm:$0xff]  ;;  %v770_v26 = vld [vmem:[#allocation2 + $0xa] sm:$0xff]  ;;  %p2802_p12 = por %p2801_p9, %p2800_p7 }
  0x7d   : > { %305 = vst.msk [vmem:[#allocation2 + $0xf8] sm:$0xff] %vm272_vm0, %v2870_v0  ;;  %307 = vst.msk [vmem:[#allocation2 + $0x108] sm:$0xff] %vm272_vm0, %v2870_v0  ;;  %v455_v1 = vmax.f32 %v423_v56, 0.0  ;;  %2614 = vmatpush3.bf16.msra.mxu1 %v2603_v28  ;;  %v456_v4 = vmax.f32 %v424_v58, 0.0  ;;  %v457_v5 = vmax.f32 %v425_v59, 0.0  ;;  %v674_v7 = vmul.f32 %v3181_v31, %v605_v57  ;;  %v335_v44 = vld [vmem:[%s3091_s12 + $0x38] sm:$0xff] }
  0x7e   : > { %306 = vst.msk [vmem:[#allocation2 + $0x100] sm:$0x3] %vm275_vm1, %v2870_v0  ;;  %309 = vst.msk [vmem:[#allocation2 + $0x118] sm:$0x3] %vm275_vm1, %v2870_v0  ;;  %v410_v6 = vadd.f32 %v3173_v23, %v371_v61  ;;  %v411_v8 = vadd.f32 %v3173_v23, %v372_v2  ;;  %v838_v19 = vmul.f32 %v3222_v12, %v769_v11  ;;  %v3250_v40 = vld [vmem:[#allocation7 + $0x3] ss:$0 sm:$0xff]  ;;  %p2803_p1 = pnand %p2802_p12, %p2796_p3 }
  0x7f   : > { %308 = vst.msk [vmem:[#allocation2 + $0x110] sm:$0xff] %vm272_vm0, %v2870_v0  ;;  %310 = vst.msk [vmem:[#allocation2 + $0x120] sm:$0xff] %vm272_vm0, %v2870_v0  ;;  %v387_v30 = vmul.f32 %v3162_v14, %v348_v20 }
  0x80   : > { %311 = vst.msk [vmem:[#allocation2 + $0x128] sm:$0xff] %vm272_vm0, %v2870_v0  ;;  %313 = vst.msk [vmem:[#allocation2 + $0x138] sm:$0xff] %vm272_vm0, %v2870_v0  ;;  %v442_v10 = vmax.f32 %v410_v6, 0.0  ;;  %v443_v13 = vmax.f32 %v411_v8, 0.0  ;;  %v351_v6 = vld [vmem:[%s3091_s12 + $0xb8] sm:$0xff] }
  0x81   : > { %312 = vst.msk [vmem:[#allocation2 + $0x130] sm:$0x3] %vm275_vm1, %v2870_v0  ;;  %315 = vst.msk [vmem:[#allocation2 + $0x148] sm:$0x3] %vm275_vm1, %v2870_v0  ;;  %v426_v42 = vadd.f32 %v3173_v23, %v387_v30  ;;  %v3308_v30 = vld [vmem:[#allocation7 + $0x7] ss:$0 sm:$0xff] }
  0x82   : > { %314 = vst.msk [vmem:[#allocation2 + $0x140] sm:$0xff] %vm272_vm0, %v2870_v0  ;;  %316 = vst.msk [vmem:[#allocation2 + $0x150] sm:$0xff] %vm272_vm0, %v2870_v0 }
  0x83   : > { %317 = vst.msk [vmem:[#allocation2 + $0x158] sm:$0xff] %vm272_vm0, %v2870_v0  ;;  %319 = vst.msk [vmem:[#allocation2 + $0x168] sm:$0xff] %vm272_vm0, %v2870_v0  ;;  %v458_v53 = vmax.f32 %v426_v42, 0.0 }
  0x84   : > { %318 = vst.msk [vmem:[#allocation2 + $0x160] sm:$0x3] %vm275_vm1, %v2870_v0  ;;  %321 = vst.msk [vmem:[#allocation2 + $0x178] sm:$0x3] %vm275_vm1, %v2870_v0 }
  0x85   : > { %320 = vst.msk [vmem:[#allocation2 + $0x170] sm:$0xff] %vm272_vm0, %v2870_v0  ;;  %322 = vst.msk [vmem:[#allocation2 + $0x180] sm:$0xff] %vm272_vm0, %v2870_v0 }
  0x86   : > { %323 = vst.msk [vmem:[#allocation2 + $0x188] sm:$0xff] %vm272_vm0, %v2870_v0  ;;  %325 = vst.msk [vmem:[#allocation2 + $0x198] sm:$0xff] %vm272_vm0, %v2870_v0 }
  0x87   : > { %324 = vst.msk [vmem:[#allocation2 + $0x190] sm:$0x3] %vm275_vm1, %v2870_v0  ;;  %327 = vst.msk [vmem:[#allocation2 + $0x1a8] sm:$0x3] %vm275_vm1, %v2870_v0 }
  0x88   : > { %326 = vst.msk [vmem:[#allocation2 + $0x1a0] sm:$0xff] %vm272_vm0, %v2870_v0  ;;  %572 = vst.msk [vmem:[#allocation3] sm:$0xff] %vm272_vm0, %v540_v24  ;;  %v454_v0 = vmax.f32 %v422_v55, 0.0 }
  0x89   : > { %471 = vst.msk [vmem:[#allocation2 + $0x19] sm:$0xff] %vm272_vm0, %v438_v33  ;;  %472 = vst.msk [vmem:[#allocation2 + $0x21] sm:$0xff] %vm272_vm0, %v439_v34 }
  0x8a   : > { %473 = vst.msk [vmem:[#allocation2 + $0x31] sm:$0xff] %vm272_vm0, %v440_v35  ;;  %573 = vst.msk [vmem:[#allocation3 + $0x8] sm:$0xff] %vm272_vm0, %v541_v36  ;;  %v388_v35 = vmul.f32 %v3162_v14, %v349_v25  ;;  %v839_v36 = vmul.f32 %v3222_v12, %v770_v26  ;;  %v3300_v25 = vld [vmem:[#allocation7 + $0x5] ss:$0 sm:$0xff]  ;;  %v3302_v26 = vld [vmem:[#allocation7 + $0x6] ss:$0 sm:$0xff] }
  0x8b   : > { %474 = vst.msk [vmem:[#allocation2 + $0x39] sm:$0xff] %vm272_vm0, %v441_v38  ;;  %485 = vst.msk [vmem:[#allocation2 + $0xc1] sm:$0xff] %vm272_vm0, %v452_v60 }
  0x8c   : > { %486 = vst.msk [vmem:[#allocation2 + $0xc9] sm:$0xff] %vm272_vm0, %v453_v63  ;;  %487 = vst.msk [vmem:[#allocation2 + $0xd9] sm:$0xff] %vm272_vm0, %v454_v0  ;;  %v427_v51 = vadd.f32 %v3173_v23, %v388_v35  ;;  %v374_v63 = vmul.f32 %v3162_v14, %v335_v44 }
  0x8d   : > { %488 = vst.msk [vmem:[#allocation2 + $0xe1] sm:$0xff] %vm272_vm0, %v455_v1  ;;  %489 = vst.msk [vmem:[#allocation2 + $0xf1] sm:$0xff] %vm272_vm0, %v456_v4 }
  0x8e   : > { %490 = vst.msk [vmem:[#allocation2 + $0xf9] sm:$0xff] %vm272_vm0, %v457_v5  ;;  %475 = vst.msk [vmem:[#allocation2 + $0x49] sm:$0xff] %vm272_vm0, %v442_v10  ;;  %v459_v56 = vmax.f32 %v427_v51, 0.0  ;;  %v350_v5 = vld [vmem:[%s3091_s12 + $0xb0] sm:$0xff]  ;;  %v413_v20 = vadd.f32 %v3173_v23, %v374_v63 }
  0x8f   : > { %v637_v62 = vld [vmem:[#allocation3] sm:$0xff]  ;;  %476 = vst.msk [vmem:[#allocation2 + $0x51] sm:$0xff] %vm272_vm0, %v443_v13  ;;  %491 = vst.msk [vmem:[#allocation2 + $0x109] sm:$0xff] %vm272_vm0, %v458_v53 }
  0x90   : > { %v705_v3 = vadd.f32 %v673_v43, %v637_v62  ;;  %v934_v9 = vld [vmem:[#allocation2 + $0x18] sm:$0xff]  ;;  %v3226_v18 = vld [vmem:[#allocation2 + $0x20] sm:$0xff]  ;;  %492 = vst.msk [vmem:[#allocation2 + $0x111] sm:$0xff] %vm272_vm0, %v459_v56 }
  0x91   : > { %v638_v15 = vld [vmem:[#allocation3 + $0x8] sm:$0xff]  ;;  %v542_v16 = vmul.f32 %v3167_v21, %v934_v9  ;;  %v543_v28 = vmul.f32 %v3167_v21, %v3226_v18  ;;  %v3246_v37 = vld [vmem:[#allocation2 + $0x21] sm:$0xff]  ;;  %v1003_v54 = vmul.f32 %v3250_v40, %v934_v9  ;;  %v3273_v0 = vld [vmem:[#allocation2 + $0x30] sm:$0xff]  ;;  %v1004_v8 = vmul.f32 %v3250_v40, %v3226_v18 }
  0x92   : > { %737 = vst.msk [vmem:[#allocation3] sm:$0xff] %vm272_vm0, %v705_v3  ;;  %v706_v17 = vadd.f32 %v674_v7, %v638_v15  ;;  %v3232_v22 = vld [vmem:[#allocation2 + $0x19] sm:$0xff]  ;;  %v620_v38 = vld [vmem:[#allocation2 + $0xc1] sm:$0xff]  ;;  %v676_v50 = vmul.f32 %v3181_v31, %v3246_v37  ;;  %v3290_v15 = vld [vmem:[#allocation7 + $0x4] ss:$0 sm:$0xff] }
  0x93   : > { %574 = vst.msk [vmem:[#allocation3 + $0x10] sm:$0xff] %vm272_vm0, %v542_v16  ;;  %v519_v24 = vld [vmem:[#allocation2 + $0xc0] sm:$0xff]  ;;  %v520_v33 = vld [vmem:[#allocation2 + $0xc8] sm:$0xff]  ;;  %v675_v34 = vmul.f32 %v3181_v31, %v3232_v22  ;;  %575 = vst.msk [vmem:[#allocation3 + $0x18] sm:$0xff] %vm272_vm0, %v543_v28  ;;  %v689_v46 = vmul.f32 %v3181_v31, %v620_v38  ;;  %v389_v28 = vmul.f32 %v3162_v14, %v350_v5 }
  0x94   : > { %738 = vst.msk [vmem:[#allocation3 + $0x8] sm:$0xff] %vm272_vm0, %v706_v17  ;;  %v556_v27 = vmul.f32 %v3167_v21, %v519_v24  ;;  %v557_v39 = vmul.f32 %v3167_v21, %v520_v33  ;;  %v334_v43 = vld [vmem:[%s3091_s12 + $0x30] sm:$0xff]  ;;  %v3257_v47 = vld [vmem:[#allocation2 + $0xd8] sm:$0xff]  ;;  %v621_v48 = vld [vmem:[#allocation2 + $0xc9] sm:$0xff]  ;;  %v544_v24 = vmul.f32 %v3167_v21, %v3273_v0 }
  0x95   : > { %v3263_v55 = vld [vmem:[#allocation2 + $0xe0] sm:$0xff]  ;;  %v690_v59 = vmul.f32 %v3181_v31, %v621_v48  ;;  %v558_v61 = vmul.f32 %v3167_v21, %v3257_v47  ;;  %v373_v62 = vmul.f32 %v3162_v14, %v334_v43  ;;  %v3283_v9 = vld [vmem:[#allocation2 + $0x38] sm:$0xff] }
  0x96   : > { %588 = vst.msk [vmem:[#allocation3 + $0x80] sm:$0xff] %vm272_vm0, %v556_v27  ;;  %589 = vst.msk [vmem:[#allocation3 + $0x88] sm:$0xff] %vm272_vm0, %v557_v39  ;;  %v1264_v57 = vld [vmem:[#allocation2 + $0x1a] sm:$0xff]  ;;  %v559_v4 = vmul.f32 %v3167_v21, %v3263_v55  ;;  %v3292_v16 = vld [vmem:[#allocation2 + $0x22] sm:$0xff]  ;;  %v545_v38 = vmul.f32 %v3167_v21, %v3283_v9 }
  0x97   : > { %590 = vst.msk [vmem:[#allocation3 + $0x90] sm:$0xff] %vm272_vm0, %v558_v61  ;;  %v3286_v10 = vld [vmem:[#allocation2 + $0xd9] sm:$0xff]  ;;  %v840_v13 = vmul.f32 %v3222_v12, %v1264_v57  ;;  %v785_v17 = vld [vmem:[#allocation2 + $0xc2] sm:$0xff]  ;;  %v412_v18 = vadd.f32 %v3173_v23, %v373_v62  ;;  %576 = vst.msk [vmem:[#allocation3 + $0x20] sm:$0xff] %vm272_vm0, %v544_v24  ;;  %v841_v44 = vmul.f32 %v3222_v12, %v3292_v16 }
  0x98   : > { %591 = vst.msk [vmem:[#allocation3 + $0x98] sm:$0xff] %vm272_vm0, %v559_v4  ;;  %v3304_v27 = vld [vmem:[#allocation2 + $0xe1] sm:$0xff]  ;;  %v3316_v39 = vld [vmem:[#allocation2 + $0x31] sm:$0xff]  ;;  %v854_v42 = vmul.f32 %v3222_v12, %v785_v17  ;;  %577 = vst.msk [vmem:[#allocation3 + $0x28] sm:$0xff] %vm272_vm0, %v545_v38  ;;  %v3333_v51 = vmul.f32 %v3300_v25, %v1264_v57  ;;  %v428_v62 = vadd.f32 %v3173_v23, %v389_v28 }
  0x99   : > { %v802_v29 = vld [vmem:[#allocation3] sm:$0xff]  ;;  %v444_v35 = vmax.f32 %v412_v18, 0.0  ;;  %v677_v61 = vmul.f32 %v3181_v31, %v3316_v39  ;;  %v1280_v24 = vld [vmem:[#allocation2 + $0xda] sm:$0xff] }
  0x9a   : > { %v870_v32 = vadd.f32 %v838_v19, %v802_v29  ;;  %v639_v41 = vld [vmem:[#allocation3 + $0x10] sm:$0xff]  ;;  %v640_v60 = vld [vmem:[#allocation3 + $0x18] sm:$0xff]  ;;  %v390_v29 = vmul.f32 %v3162_v14, %v351_v6  ;;  %v3343_v53 = vld [vmem:[#allocation2 + $0x32] sm:$0xff] }
  0x9b   : > { %v803_v45 = vld [vmem:[#allocation3 + $0x8] sm:$0xff]  ;;  %v707_v49 = vadd.f32 %v675_v34, %v639_v41  ;;  %v708_v2 = vadd.f32 %v676_v50, %v640_v60  ;;  %v691_v34 = vmul.f32 %v3181_v31, %v3286_v10  ;;  %v692_v50 = vmul.f32 %v3181_v31, %v3304_v27  ;;  %477 = vst.msk [vmem:[#allocation2 + $0x61] sm:$0xff] %vm272_vm0, %v444_v35 }
  0x9c   : > { %902 = vst.msk [vmem:[#allocation3] sm:$0xff] %vm272_vm0, %v870_v32  ;;  %v871_v52 = vadd.f32 %v839_v36, %v803_v45  ;;  %v786_v32 = vld [vmem:[#allocation2 + $0xca] sm:$0xff]  ;;  %v445_v36 = vmax.f32 %v413_v20, 0.0  ;;  %v1168_v45 = vmul.f32 %v3290_v15, %v3232_v22  ;;  %v3337_v22 = vmul.f32 %v3302_v26, %v3273_v0  ;;  %v337_v38 = vld [vmem:[%s3091_s12 + $0x48] sm:$0xff] }
  0x9d   : > { %739 = vst.msk [vmem:[#allocation3 + $0x10] sm:$0xff] %vm272_vm0, %v707_v49  ;;  %v653_v58 = vld [vmem:[#allocation3 + $0x80] sm:$0xff]  ;;  %v654_v11 = vld [vmem:[#allocation3 + $0x88] sm:$0xff]  ;;  %740 = vst.msk [vmem:[#allocation3 + $0x18] sm:$0xff] %vm272_vm0, %v708_v2  ;;  %v429_v63 = vadd.f32 %v3173_v23, %v390_v29  ;;  %v3368_v20 = vmul.f32 %v3300_v25, %v3292_v16  ;;  %v1005_v29 = vmul.f32 %v3250_v40, %v3273_v0 }
  0x9e   : > { %903 = vst.msk [vmem:[#allocation3 + $0x8] sm:$0xff] %vm272_vm0, %v871_v52  ;;  %v721_v1 = vadd.f32 %v689_v46, %v653_v58  ;;  %v722_v19 = vadd.f32 %v690_v59, %v654_v11  ;;  %v3323_v46 = vld [vmem:[#allocation7 + $0x8] ss:$0 sm:$0xff]  ;;  %v3325_v49 = vld [vmem:[#allocation2 + $0xf0] sm:$0xff]  ;;  %478 = vst.msk [vmem:[#allocation2 + $0x69] sm:$0xff] %vm272_vm0, %v445_v36  ;;  %v3341_v52 = vmul.f32 %v3308_v30, %v3316_v39 }
  0x9f   : > { %v655_v56 = vld [vmem:[#allocation3 + $0x90] sm:$0xff]  ;;  %v656_v5 = vld [vmem:[#allocation3 + $0x98] sm:$0xff]  ;;  %v560_v6 = vmul.f32 %v3167_v21, %v3325_v49  ;;  %v461_v17 = vmax.f32 %v429_v63, 0.0  ;;  %v3379_v16 = vmul.f32 %v3302_v26, %v3283_v9 }
  0xa0   : > { %753 = vst.msk [vmem:[#allocation3 + $0x80] sm:$0xff] %vm272_vm0, %v721_v1  ;;  %754 = vst.msk [vmem:[#allocation3 + $0x88] sm:$0xff] %vm272_vm0, %v722_v19  ;;  %v3348_v58 = vld [vmem:[#allocation2 + $0x39] sm:$0xff]  ;;  %v723_v60 = vadd.f32 %v691_v34, %v655_v56  ;;  %v3356_v1 = vmul.f32 %v3323_v46, %v3343_v53  ;;  %v724_v11 = vadd.f32 %v692_v50, %v656_v5  ;;  %v336_v19 = vld [vmem:[%s3091_s12 + $0x40] sm:$0xff] }
  0xa1   : > { %592 = vst.msk [vmem:[#allocation3 + $0xa0] sm:$0xff] %vm272_vm0, %v560_v6  ;;  %v3383_v34 = vld [vmem:[#allocation2 + $0xf1] sm:$0xff]  ;;  %494 = vst.msk [vmem:[#allocation2 + $0x129] sm:$0xff] %vm272_vm0, %v461_v17  ;;  %v1006_v56 = vmul.f32 %v3250_v40, %v3283_v9 }
  0xa2   : > { %755 = vst.msk [vmem:[#allocation3 + $0x90] sm:$0xff] %vm272_vm0, %v723_v60  ;;  %756 = vst.msk [vmem:[#allocation3 + $0x98] sm:$0xff] %vm272_vm0, %v724_v11  ;;  %v693_v63 = vmul.f32 %v3181_v31, %v3383_v34  ;;  %v1020_v11 = vmul.f32 %v3250_v40, %v3263_v55  ;;  %v842_v55 = vmul.f32 %v3222_v12, %v3343_v53 }
  0xa3   : > { %v967_v3 = vld [vmem:[#allocation3] sm:$0xff] }
  0xa4   : > { %v1035_v7 = vadd.f32 %v1003_v54, %v967_v3  ;;  %v804_v33 = vld [vmem:[#allocation3 + $0x10] sm:$0xff]  ;;  %v855_v54 = vmul.f32 %v3222_v12, %v786_v32  ;;  %v805_v59 = vld [vmem:[#allocation3 + $0x18] sm:$0xff]  ;;  %v3358_v3 = vld [vmem:[#allocation2 + $0xf8] sm:$0xff]  ;;  %v678_v32 = vmul.f32 %v3181_v31, %v3348_v58 }
  0xa5   : > { %v968_v41 = vld [vmem:[#allocation3 + $0x8] sm:$0xff]  ;;  %v872_v43 = vadd.f32 %v840_v13, %v804_v33  ;;  %v873_v4 = vadd.f32 %v841_v44, %v805_v59  ;;  %v460_v13 = vmax.f32 %v428_v62, 0.0  ;;  %v561_v36 = vmul.f32 %v3167_v21, %v3358_v3 }
  0xa6   : > { %1067 = vst.msk [vmem:[#allocation3] sm:$0xff] %vm272_vm0, %v1035_v7  ;;  %v1036_v48 = vadd.f32 %v1004_v8, %v968_v41  ;;  %v1169_v8 = vmul.f32 %v3290_v15, %v3246_v37  ;;  %v641_v37 = vld [vmem:[#allocation3 + $0x20] sm:$0xff]  ;;  %v3381_v33 = vld [vmem:[#allocation2 + $0x3a] sm:$0xff]  ;;  %v3394_v41 = vmul.f32 %v3308_v30, %v3348_v58  ;;  %v3404_v44 = vmul.f32 %v3290_v15, %v3316_v39 }
  0xa7   : > { %904 = vst.msk [vmem:[#allocation3 + $0x10] sm:$0xff] %vm272_vm0, %v872_v43  ;;  %v818_v57 = vld [vmem:[#allocation3 + $0x80] sm:$0xff]  ;;  %v819_v28 = vld [vmem:[#allocation3 + $0x88] sm:$0xff]  ;;  %905 = vst.msk [vmem:[#allocation3 + $0x18] sm:$0xff] %vm272_vm0, %v873_v4  ;;  %v709_v0 = vadd.f32 %v677_v61, %v641_v37  ;;  %v375_v59 = vmul.f32 %v3162_v14, %v336_v19  ;;  %v3428_v4 = vmul.f32 %v3290_v15, %v3286_v10 }
  0xa8   : > { %1068 = vst.msk [vmem:[#allocation3 + $0x8] sm:$0xff] %vm272_vm0, %v1036_v48  ;;  %v886_v2 = vadd.f32 %v854_v42, %v818_v57  ;;  %v887_v35 = vadd.f32 %v855_v54, %v819_v28  ;;  %493 = vst.msk [vmem:[#allocation2 + $0x121] sm:$0xff] %vm272_vm0, %v460_v13  ;;  %v3398_v42 = vmul.f32 %v3323_v46, %v3381_v33  ;;  %v3400_v43 = vld [vmem:[#allocation2 + $0xe2] sm:$0xff]  ;;  %v642_v39 = vld [vmem:[#allocation3 + $0x28] sm:$0xff] }
  0xa9   : > { %v1019_v48 = vmul.f32 %v3250_v40, %v3257_v47  ;;  %v3413_v54 = vld [vmem:[#allocation2 + $0x48] sm:$0xff]  ;;  %v856_v57 = vmul.f32 %v3222_v12, %v1280_v24  ;;  %741 = vst.msk [vmem:[#allocation3 + $0x20] sm:$0xff] %vm272_vm0, %v709_v0  ;;  %593 = vst.msk [vmem:[#allocation3 + $0xa8] sm:$0xff] %vm272_vm0, %v561_v36  ;;  %v3421_v61 = vld [vmem:[#allocation2 + $0xf9] sm:$0xff]  ;;  %v710_v62 = vadd.f32 %v678_v32, %v642_v39 }
  0xaa   : > { %918 = vst.msk [vmem:[#allocation3 + $0x80] sm:$0xff] %vm272_vm0, %v886_v2  ;;  %919 = vst.msk [vmem:[#allocation3 + $0x88] sm:$0xff] %vm272_vm0, %v887_v35  ;;  %v376_v2 = vmul.f32 %v3162_v14, %v337_v38  ;;  %v857_v5 = vmul.f32 %v3222_v12, %v3400_v43  ;;  %v414_v6 = vadd.f32 %v3173_v23, %v375_v59  ;;  %v3439_v13 = vld [vmem:[#allocation2 + $0x50] sm:$0xff]  ;;  %v821_v36 = vld [vmem:[#allocation3 + $0x98] sm:$0xff] }
  0xab   : > { %742 = vst.msk [vmem:[#allocation3 + $0x28] sm:$0xff] %vm272_vm0, %v710_v62  ;;  %v546_v17 = vmul.f32 %v3167_v21, %v3413_v54  ;;  %v657_v28 = vld [vmem:[#allocation3 + $0xa0] sm:$0xff]  ;;  %v3460_v59 = vmul.f32 %v3308_v30, %v3383_v34 }
  0xac   : > { %v415_v10 = vadd.f32 %v3173_v23, %v376_v2  ;;  %v446_v37 = vmax.f32 %v414_v6, 0.0  ;;  %v3450_v35 = vld [vmem:[#allocation2 + $0xf2] sm:$0xff]  ;;  %v725_v38 = vadd.f32 %v693_v63, %v657_v28  ;;  %v1171_v2 = vmul.f32 %v3290_v15, %v3348_v58 }
  0xad   : > { %v1132_v7 = vld [vmem:[#allocation3] sm:$0xff]  ;;  %578 = vst.msk [vmem:[#allocation3 + $0x30] sm:$0xff] %vm272_vm0, %v546_v17  ;;  %v843_v6 = vmul.f32 %v3222_v12, %v3381_v33  ;;  %v3486_v17 = vld [vmem:[#allocation2 + $0x108] sm:$0xff] }
  0xae   : > { %v1200_v18 = vadd.f32 %v1168_v45, %v1132_v7  ;;  %v3408_v45 = vmul.f32 %v3300_v25, %v3343_v53  ;;  %v969_v50 = vld [vmem:[#allocation3 + $0x10] sm:$0xff]  ;;  %v3434_v7 = vmul.f32 %v3300_v25, %v1280_v24  ;;  %v352_v39 = vld [vmem:[%s3091_s12 + $0xc0] sm:$0xff]  ;;  %v3456_v53 = vmul.f32 %v3302_v26, %v3325_v49  ;;  %479 = vst.msk [vmem:[#allocation2 + $0x79] sm:$0xff] %vm272_vm0, %v446_v37 }
  0xaf   : > { %v1133_v60 = vld [vmem:[#allocation3 + $0x8] sm:$0xff]  ;;  %v1037_v47 = vadd.f32 %v1005_v29, %v969_v50  ;;  %v694_v29 = vmul.f32 %v3181_v31, %v3421_v61  ;;  %v447_v50 = vmax.f32 %v415_v10, 0.0  ;;  %757 = vst.msk [vmem:[#allocation3 + $0xa0] sm:$0xff] %vm272_vm0, %v725_v38  ;;  %v3484_v10 = vmul.f32 %v3300_v25, %v3381_v33 }
  0xb0   : > { %1232 = vst.msk [vmem:[#allocation3] sm:$0xff] %vm272_vm0, %v1200_v18  ;;  %v1201_v9 = vadd.f32 %v1169_v8, %v1133_v60  ;;  %v820_v8 = vld [vmem:[#allocation3 + $0x90] sm:$0xff]  ;;  %v970_v18 = vld [vmem:[#allocation3 + $0x18] sm:$0xff]  ;;  %v889_v60 = vadd.f32 %v857_v5, %v821_v36  ;;  %v658_v5 = vld [vmem:[#allocation3 + $0xa8] sm:$0xff]  ;;  %v3500_v33 = vmul.f32 %v3302_v26, %v3358_v3  ;;  %v391_v37 = vmul.f32 %v3162_v14, %v352_v39 }
  0xb1   : > { %1069 = vst.msk [vmem:[#allocation3 + $0x10] sm:$0xff] %vm272_vm0, %v1037_v47  ;;  %v983_v19 = vld [vmem:[#allocation3 + $0x80] sm:$0xff]  ;;  %v888_v24 = vadd.f32 %v856_v57, %v820_v8  ;;  %v1038_v0 = vadd.f32 %v1006_v56, %v970_v18  ;;  %v353_v47 = vld [vmem:[%s3091_s12 + $0xc8] sm:$0xff]  ;;  %480 = vst.msk [vmem:[#allocation2 + $0x81] sm:$0xff] %vm272_vm0, %v447_v50  ;;  %v3492_v18 = vmul.f32 %v3290_v15, %v3304_v27 }
  0xb2   : > { %1233 = vst.msk [vmem:[#allocation3 + $0x8] sm:$0xff] %vm272_vm0, %v1201_v9  ;;  %v1051_v32 = vadd.f32 %v1019_v48, %v983_v19  ;;  %v3464_v48 = vmul.f32 %v3323_v46, %v3450_v35  ;;  %v3466_v56 = vld [vmem:[#allocation2 + $0x49] sm:$0xff]  ;;  %v984_v63 = vld [vmem:[#allocation3 + $0x88] sm:$0xff]  ;;  %921 = vst.msk [vmem:[#allocation3 + $0x98] sm:$0xff] %vm272_vm0, %v889_v60  ;;  %v726_v19 = vadd.f32 %v694_v29, %v658_v5 }
  0xb3   : > { %920 = vst.msk [vmem:[#allocation3 + $0x90] sm:$0xff] %vm272_vm0, %v888_v24  ;;  %1070 = vst.msk [vmem:[#allocation3 + $0x18] sm:$0xff] %vm272_vm0, %v1038_v0  ;;  %v806_v9 = vld [vmem:[#allocation3 + $0x20] sm:$0xff]  ;;  %v1052_v8 = vadd.f32 %v1020_v11, %v984_v63  ;;  %v3496_v24 = vmul.f32 %v3300_v25, %v3400_v43  ;;  %v679_v11 = vmul.f32 %v3181_v31, %v3466_v56  ;;  %v807_v29 = vld [vmem:[#allocation3 + $0x28] sm:$0xff] }
  0xb4   : > { %4658 = vst [vmem:[#allocation14_spill] sm:$0xff] %v3464_v48  ;;  %1083 = vst.msk [vmem:[#allocation3 + $0x80] sm:$0xff] %vm272_vm0, %v1051_v32  ;;  %v874_v58 = vadd.f32 %v842_v55, %v806_v9  ;;  %v3508_v55 = vmul.f32 %v3308_v30, %v3421_v61  ;;  %v3510_v28 = vld [vmem:[#allocation2 + $0x51] sm:$0xff]  ;;  %v1021_v43 = vmul.f32 %v3250_v40, %v3325_v49  ;;  %v3518_v36 = vld [vmem:[#allocation2 + $0xfa] sm:$0xff] }
  0xb5   : > { %1084 = vst.msk [vmem:[#allocation3 + $0x88] sm:$0xff] %vm272_vm0, %v1052_v8  ;;  %758 = vst.msk [vmem:[#allocation3 + $0xa8] sm:$0xff] %vm272_vm0, %v726_v19  ;;  %v392_v32 = vmul.f32 %v3162_v14, %v353_v47  ;;  %v875_v50 = vadd.f32 %v843_v6, %v807_v29  ;;  %v562_v49 = vmul.f32 %v3167_v21, %v3486_v17  ;;  %v643_v39 = vld [vmem:[#allocation3 + $0x30] sm:$0xff]  ;;  %v3541_v5 = vld [vmem:[#allocation2 + $0x110] sm:$0xff] }
  0xb6   : > { %906 = vst.msk [vmem:[#allocation3 + $0x20] sm:$0xff] %vm272_vm0, %v874_v58  ;;  %v430_v47 = vadd.f32 %v3173_v23, %v391_v37  ;;  %v3537_v9 = vmul.f32 %v3302_v26, %v3413_v54  ;;  %v822_v29 = vld [vmem:[#allocation3 + $0xa0] sm:$0xff]  ;;  %v859_v37 = vmul.f32 %v3222_v12, %v3518_v36 }
  0xb7   : > { %v1297_v57 = vld [vmem:[#allocation3] sm:$0xff]  ;;  %v431_v63 = vadd.f32 %v3173_v23, %v392_v32  ;;  %907 = vst.msk [vmem:[#allocation3 + $0x28] sm:$0xff] %vm272_vm0, %v875_v50  ;;  %594 = vst.msk [vmem:[#allocation3 + $0xb0] sm:$0xff] %vm272_vm0, %v562_v49 }
  0xb8   : > { %v1365_v62 = vadd.f32 %v3333_v51, %v1297_v57  ;;  %v547_v51 = vmul.f32 %v3167_v21, %v3439_v13  ;;  %v1134_v27 = vld [vmem:[#allocation3 + $0x10] sm:$0xff]  ;;  %v858_v57 = vmul.f32 %v3222_v12, %v3450_v35 }
  0xb9   : > { %v1298_v0 = vld [vmem:[#allocation3 + $0x8] sm:$0xff]  ;;  %v1202_v38 = vadd.f32 %v3404_v44, %v1134_v27  ;;  %v3532_v44 = vmul.f32 %v3323_v46, %v3518_v36  ;;  %v1007_v27 = vmul.f32 %v3250_v40, %v3413_v54  ;;  %v986_v50 = vld [vmem:[#allocation3 + $0x98] sm:$0xff]  ;;  %v3560_v54 = vmul.f32 %v3308_v30, %v3466_v56 }
  0xba   : > { %1397 = vst.msk [vmem:[#allocation3] sm:$0xff] %vm272_vm0, %v1365_v62  ;;  %579 = vst.msk [vmem:[#allocation3 + $0x38] sm:$0xff] %vm272_vm0, %v547_v51  ;;  %v1366_v60 = vadd.f32 %v3368_v20, %v1298_v0  ;;  %v1022_v62 = vmul.f32 %v3250_v40, %v3358_v3  ;;  %v985_v6 = vld [vmem:[#allocation3 + $0x90] sm:$0xff]  ;;  %v3539_v20 = vld [vmem:[#allocation2 + $0x109] sm:$0xff]  ;;  %v711_v3 = vadd.f32 %v679_v11, %v643_v39  ;;  %v462_v11 = vmax.f32 %v430_v47, 0.0 }
  0xbb   : > { %4659 = vst [vmem:[#allocation15_spill] sm:$0xff] %v3532_v44  ;;  %1234 = vst.msk [vmem:[#allocation3 + $0x10] sm:$0xff] %vm272_vm0, %v1202_v38  ;;  %v680_v51 = vmul.f32 %v3181_v31, %v3510_v28  ;;  %v1148_v8 = vld [vmem:[#allocation3 + $0x80] sm:$0xff]  ;;  %v1135_v58 = vld [vmem:[#allocation3 + $0x18] sm:$0xff]  ;;  %v1053_v19 = vadd.f32 %v1021_v43, %v985_v6  ;;  %v890_v49 = vadd.f32 %v858_v57, %v822_v29 }
  0xbc   : > { %1398 = vst.msk [vmem:[#allocation3 + $0x8] sm:$0xff] %vm272_vm0, %v1366_v60  ;;  %v1216_v32 = vadd.f32 %v3428_v4, %v1148_v8  ;;  %v3553_v0 = vld [vmem:[#allocation2 + $0x4a] sm:$0xff]  ;;  %v1203_v38 = vadd.f32 %v1171_v2, %v1135_v58  ;;  %743 = vst.msk [vmem:[#allocation3 + $0x30] sm:$0xff] %vm272_vm0, %v711_v3  ;;  %v463_v60 = vmax.f32 %v431_v63, 0.0  ;;  %v338_v39 = vld [vmem:[%s3091_s12 + $0x50] sm:$0xff]  ;;  %v1054_v4 = vadd.f32 %v1022_v62, %v986_v50 }
  0xbd   : > { %v339_v43 = vld [vmem:[%s3091_s12 + $0x58] sm:$0xff]  ;;  %v3564_v47 = vmul.f32 %v3323_v46, %v3553_v0  ;;  %1085 = vst.msk [vmem:[#allocation3 + $0x90] sm:$0xff] %vm272_vm0, %v1053_v19  ;;  %v3567_v2 = vld [vmem:[#allocation2 + $0x60] sm:$0xff]  ;;  %495 = vst.msk [vmem:[#allocation2 + $0x139] sm:$0xff] %vm272_vm0, %v462_v11  ;;  %v563_v63 = vmul.f32 %v3167_v21, %v3541_v5  ;;  %v1008_v19 = vmul.f32 %v3250_v40, %v3439_v13 }
  0xbe   : > { %1248 = vst.msk [vmem:[#allocation3 + $0x80] sm:$0xff] %vm272_vm0, %v1216_v32  ;;  %v1149_v8 = vld [vmem:[#allocation3 + $0x88] sm:$0xff]  ;;  %1235 = vst.msk [vmem:[#allocation3 + $0x18] sm:$0xff] %vm272_vm0, %v1203_v38  ;;  %v971_v58 = vld [vmem:[#allocation3 + $0x20] sm:$0xff]  ;;  %v695_v11 = vmul.f32 %v3181_v31, %v3539_v20  ;;  %v3584_v32 = vmul.f32 %v3302_v26, %v3439_v13  ;;  %v1186_v13 = vmul.f32 %v3290_v15, %v3383_v34 }
  0xbf   : > { %922 = vst.msk [vmem:[#allocation3 + $0xa0] sm:$0xff] %vm272_vm0, %v890_v49  ;;  %v823_v62 = vld [vmem:[#allocation3 + $0xa8] sm:$0xff]  ;;  %496 = vst.msk [vmem:[#allocation2 + $0x141] sm:$0xff] %vm272_vm0, %v463_v60  ;;  %v1039_v50 = vadd.f32 %v1007_v27, %v971_v58  ;;  %v3603_v60 = vld [vmem:[#allocation2 + $0x68] sm:$0xff]  ;;  %v844_v27 = vmul.f32 %v3222_v12, %v3553_v0 }
  0xc0   : > { %v3586_v38 = vld [vmem:[#allocation2 + $0x52] sm:$0xff]  ;;  %1086 = vst.msk [vmem:[#allocation3 + $0x98] sm:$0xff] %vm272_vm0, %v1054_v4  ;;  %595 = vst.msk [vmem:[#allocation3 + $0xb8] sm:$0xff] %vm272_vm0, %v563_v63  ;;  %v1187_v4 = vmul.f32 %v3290_v15, %v3421_v61  ;;  %v659_v34 = vld [vmem:[#allocation3 + $0xb0] sm:$0xff]  ;;  %v378_v63 = vmul.f32 %v3162_v14, %v339_v43  ;;  %v1023_v61 = vmul.f32 %v3250_v40, %v3486_v17 }
  0xc1   : > { %v1463_v6 = vld [vmem:[#allocation3] sm:$0xff]  ;;  %v644_v57 = vld [vmem:[#allocation3 + $0x38] sm:$0xff]  ;;  %1071 = vst.msk [vmem:[#allocation3 + $0x20] sm:$0xff] %vm272_vm0, %v1039_v50 }
  0xc2   : > { %v1531_v3 = vadd.f32 %v3337_v22, %v1463_v6  ;;  %v712_v29 = vadd.f32 %v680_v51, %v644_v57  ;;  %v1217_v22 = vadd.f32 %v3492_v18, %v1149_v8  ;;  %v891_v6 = vadd.f32 %v859_v37, %v823_v62  ;;  %v3601_v49 = vld [vmem:[#allocation2 + $0x111] sm:$0xff]  ;;  %v1299_v37 = vld [vmem:[#allocation3 + $0x10] sm:$0xff]  ;;  %v3648_v44 = vld [vmem:[#allocation2 + $0x69] sm:$0xff] }
  0xc3   : > { %v3593_v51 = vmul.f32 %v3308_v30, %v3510_v28  ;;  %v3597_v18 = vmul.f32 %v3323_v46, %v3586_v38  ;;  %v972_v46 = vld [vmem:[#allocation3 + $0x28] sm:$0xff]  ;;  %v377_v57 = vmul.f32 %v3162_v14, %v338_v39  ;;  %v1367_v58 = vadd.f32 %v3408_v45, %v1299_v37  ;;  %v808_v50 = vld [vmem:[#allocation3 + $0x30] sm:$0xff] }
  0xc4   : > { %1563 = vst.msk [vmem:[#allocation3] sm:$0xff] %vm272_vm0, %v1531_v3  ;;  %744 = vst.msk [vmem:[#allocation3 + $0x38] sm:$0xff] %vm272_vm0, %v712_v29  ;;  %v548_v3 = vmul.f32 %v3167_v21, %v3567_v2  ;;  %v1464_v8 = vld [vmem:[#allocation3 + $0x8] sm:$0xff]  ;;  %v1040_v62 = vadd.f32 %v1008_v19, %v972_v46  ;;  %v727_v29 = vadd.f32 %v695_v11, %v659_v34  ;;  %v1150_v45 = vld [vmem:[#allocation3 + $0x90] sm:$0xff] }
  0xc5   : > { %4660 = vst [vmem:[#allocation16_spill] sm:$0xff] %v3597_v18  ;;  %1249 = vst.msk [vmem:[#allocation3 + $0x88] sm:$0xff] %vm272_vm0, %v1217_v22  ;;  %v1532_v22 = vadd.f32 %v3379_v16, %v1464_v8  ;;  %v416_v39 = vadd.f32 %v3173_v23, %v377_v57  ;;  %v417_v43 = vadd.f32 %v3173_v23, %v378_v63  ;;  %v3631_v11 = vld [vmem:[#allocation2 + $0x10a] sm:$0xff]  ;;  %v3633_v16 = vld [vmem:[#allocation2 + $0x61] sm:$0xff] }
  0xc6   : > { %923 = vst.msk [vmem:[#allocation3 + $0xa8] sm:$0xff] %vm272_vm0, %v891_v6  ;;  %v696_v6 = vmul.f32 %v3181_v31, %v3601_v49  ;;  %580 = vst.msk [vmem:[#allocation3 + $0x40] sm:$0xff] %vm272_vm0, %v548_v3  ;;  %v3629_v19 = vmul.f32 %v3300_v25, %v3450_v35  ;;  %v876_v37 = vadd.f32 %v844_v27, %v808_v50  ;;  %v1313_v57 = vld [vmem:[#allocation3 + $0x80] sm:$0xff]  ;;  %v1300_v35 = vld [vmem:[#allocation3 + $0x18] sm:$0xff] }
  0xc7   : > { %1399 = vst.msk [vmem:[#allocation3 + $0x10] sm:$0xff] %vm272_vm0, %v1367_v58  ;;  %1072 = vst.msk [vmem:[#allocation3 + $0x28] sm:$0xff] %vm272_vm0, %v1040_v62  ;;  %v845_v46 = vmul.f32 %v3222_v12, %v3586_v38  ;;  %v549_v34 = vmul.f32 %v3167_v21, %v3603_v60  ;;  %v1218_v63 = vadd.f32 %v1186_v13, %v1150_v45  ;;  %v987_v8 = vld [vmem:[#allocation3 + $0xa0] sm:$0xff]  ;;  %v448_v58 = vmax.f32 %v416_v39, 0.0  ;;  %v1151_v50 = vld [vmem:[#allocation3 + $0x98] sm:$0xff] }
  0xc8   : > { %759 = vst.msk [vmem:[#allocation3 + $0xb0] sm:$0xff] %vm272_vm0, %v727_v29  ;;  %1564 = vst.msk [vmem:[#allocation3 + $0x8] sm:$0xff] %vm272_vm0, %v1532_v22  ;;  %v1172_v3 = vmul.f32 %v3290_v15, %v3466_v56  ;;  %v1024_v27 = vmul.f32 %v3250_v40, %v3541_v5  ;;  %v1381_v62 = vadd.f32 %v3434_v7, %v1313_v57  ;;  %v660_v18 = vld [vmem:[#allocation3 + $0xb8] sm:$0xff]  ;;  %v449_v13 = vmax.f32 %v417_v43, 0.0  ;;  %v354_v56 = vld [vmem:[%s3091_s12 + $0xd0] sm:$0xff] }
  0xc9   : > { %v1368_v29 = vadd.f32 %v3484_v10, %v1300_v35  ;;  %v1055_v22 = vadd.f32 %v1023_v61, %v987_v8  ;;  %908 = vst.msk [vmem:[#allocation3 + $0x30] sm:$0xff] %vm272_vm0, %v876_v37  ;;  %581 = vst.msk [vmem:[#allocation3 + $0x48] sm:$0xff] %vm272_vm0, %v549_v34  ;;  %v355_v45 = vld [vmem:[%s3091_s12 + $0xd8] sm:$0xff]  ;;  %v1219_v39 = vadd.f32 %v1187_v4, %v1151_v50  ;;  %v3659_v10 = vld [vmem:[#allocation2 + $0x120] sm:$0xff] }
  0xca   : > { %1250 = vst.msk [vmem:[#allocation3 + $0x90] sm:$0xff] %vm272_vm0, %v1218_v63  ;;  %v3657_v7 = vmul.f32 %v3300_v25, %v3518_v36  ;;  %v728_v61 = vadd.f32 %v696_v6, %v660_v18  ;;  %481 = vst.msk [vmem:[#allocation2 + $0x91] sm:$0xff] %vm272_vm0, %v448_v58  ;;  %v681_v43 = vmul.f32 %v3181_v31, %v3633_v16  ;;  %v1136_v4 = vld [vmem:[#allocation3 + $0x20] sm:$0xff] }
  0xcb   : > { %v1628_v48 = vld [vmem:[#allocation3] sm:$0xff]  ;;  %v809_v57 = vld [vmem:[#allocation3 + $0x38] sm:$0xff]  ;;  %1413 = vst.msk [vmem:[#allocation3 + $0x80] sm:$0xff] %vm272_vm0, %v1381_v62  ;;  %1400 = vst.msk [vmem:[#allocation3 + $0x18] sm:$0xff] %vm272_vm0, %v1368_v29  ;;  %v1173_v36 = vmul.f32 %v3290_v15, %v3510_v28  ;;  %v860_v6 = vmul.f32 %v3222_v12, %v3631_v11  ;;  %v3677_v63 = vmul.f32 %v3300_v25, %v3553_v0 }
  0xcc   : > { %v1696_v37 = vadd.f32 %v3341_v52, %v1628_v48  ;;  %v1314_v34 = vld [vmem:[#allocation3 + $0x88] sm:$0xff]  ;;  %1087 = vst.msk [vmem:[#allocation3 + $0xa0] sm:$0xff] %vm272_vm0, %v1055_v22  ;;  %v877_v18 = vadd.f32 %v845_v46, %v809_v57  ;;  %482 = vst.msk [vmem:[#allocation2 + $0x99] sm:$0xff] %vm272_vm0, %v449_v13  ;;  %v1204_v48 = vadd.f32 %v1172_v3, %v1136_v4  ;;  %v3707_v4 = vld [vmem:[#allocation2 + $0x62] sm:$0xff] }
  0xcd   : > { %v988_v35 = vld [vmem:[#allocation3 + $0xa8] sm:$0xff]  ;;  %v1382_v52 = vadd.f32 %v3496_v24, %v1314_v34  ;;  %1251 = vst.msk [vmem:[#allocation3 + $0x98] sm:$0xff] %vm272_vm0, %v1219_v39  ;;  %760 = vst.msk [vmem:[#allocation3 + $0xb8] sm:$0xff] %vm272_vm0, %v728_v61  ;;  %v3683_v28 = vmul.f32 %v3302_v26, %v3486_v17  ;;  %v3687_v46 = vmul.f32 %v3308_v30, %v3539_v20  ;;  %v645_v0 = vld [vmem:[#allocation3 + $0x40] sm:$0xff] }
  0xce   : > { %v1056_v8 = vadd.f32 %v1024_v27, %v988_v35  ;;  %1728 = vst.msk [vmem:[#allocation3] sm:$0xff] %vm272_vm0, %v1696_v37  ;;  %v3689_v24 = vld [vmem:[#allocation2 + $0x112] sm:$0xff]  ;;  %v1009_v3 = vmul.f32 %v3250_v40, %v3567_v2  ;;  %909 = vst.msk [vmem:[#allocation3 + $0x38] sm:$0xff] %vm272_vm0, %v877_v18  ;;  %v682_v27 = vmul.f32 %v3181_v31, %v3648_v44  ;;  %v1465_v58 = vld [vmem:[#allocation3 + $0x10] sm:$0xff] }
  0xcf   : > { %1414 = vst.msk [vmem:[#allocation3 + $0x88] sm:$0xff] %vm272_vm0, %v1382_v52  ;;  %1236 = vst.msk [vmem:[#allocation3 + $0x20] sm:$0xff] %vm272_vm0, %v1204_v48  ;;  %v1137_v17 = vld [vmem:[#allocation3 + $0x28] sm:$0xff]  ;;  %v824_v62 = vld [vmem:[#allocation3 + $0xb0] sm:$0xff]  ;;  %v713_v29 = vadd.f32 %v681_v43, %v645_v0  ;;  %v393_v50 = vmul.f32 %v3162_v14, %v354_v56  ;;  %v394_v22 = vmul.f32 %v3162_v14, %v355_v45 }
  0xd0   : > { %1088 = vst.msk [vmem:[#allocation3 + $0xa8] sm:$0xff] %vm272_vm0, %v1056_v8  ;;  %v564_v13 = vmul.f32 %v3167_v21, %v3659_v10  ;;  %v1629_v39 = vld [vmem:[#allocation3 + $0x8] sm:$0xff]  ;;  %v1533_v31 = vadd.f32 %v3537_v9, %v1465_v58  ;;  %v1205_v57 = vadd.f32 %v1173_v36, %v1137_v17  ;;  %v1188_v61 = vmul.f32 %v3290_v15, %v3539_v20  ;;  %v973_v43 = vld [vmem:[#allocation3 + $0x30] sm:$0xff]  ;;  %v3723_v36 = vld [vmem:[#allocation2 + $0x128] sm:$0xff] }
  0xd1   : > { %v892_v37 = vadd.f32 %v860_v6, %v824_v62  ;;  %v1697_v34 = vadd.f32 %v3394_v41, %v1629_v39  ;;  %v861_v56 = vmul.f32 %v3222_v12, %v3689_v24  ;;  %745 = vst.msk [vmem:[#allocation3 + $0x40] sm:$0xff] %vm272_vm0, %v713_v29  ;;  %v646_v14 = vld [vmem:[#allocation3 + $0x48] sm:$0xff]  ;;  %v432_v21 = vadd.f32 %v3173_v23, %v393_v50  ;;  %v1315_v20 = vld [vmem:[#allocation3 + $0x90] sm:$0xff] }
  0xd2   : > { %v433_v9 = vadd.f32 %v3173_v23, %v394_v22  ;;  %596 = vst.msk [vmem:[#allocation3 + $0xc0] sm:$0xff] %vm272_vm0, %v564_v13  ;;  %1565 = vst.msk [vmem:[#allocation3 + $0x10] sm:$0xff] %vm272_vm0, %v1533_v31  ;;  %v3718_v41 = vmul.f32 %v3302_v26, %v3541_v5  ;;  %v3721_v45 = vld [vmem:[#allocation2 + $0x121] sm:$0xff]  ;;  %v1041_v35 = vadd.f32 %v1009_v3, %v973_v43  ;;  %v1479_v6 = vld [vmem:[#allocation3 + $0x80] sm:$0xff] }
  0xd3   : > { %1237 = vst.msk [vmem:[#allocation3 + $0x28] sm:$0xff] %vm272_vm0, %v1205_v57  ;;  %v1010_v18 = vmul.f32 %v3250_v40, %v3603_v60  ;;  %924 = vst.msk [vmem:[#allocation3 + $0xb0] sm:$0xff] %vm272_vm0, %v892_v37  ;;  %v714_v23 = vadd.f32 %v682_v27, %v646_v14  ;;  %v1466_v52 = vld [vmem:[#allocation3 + $0x18] sm:$0xff]  ;;  %v1383_v5 = vadd.f32 %v3629_v19, %v1315_v20  ;;  %v1152_v8 = vld [vmem:[#allocation3 + $0xa0] sm:$0xff]  ;;  %v464_v0 = vmax.f32 %v432_v21, 0.0 }
  0xd4   : > { %1729 = vst.msk [vmem:[#allocation3 + $0x8] sm:$0xff] %vm272_vm0, %v1697_v34  ;;  %v3732_v48 = vmul.f32 %v3300_v25, %v3586_v38  ;;  %v1189_v3 = vmul.f32 %v3290_v15, %v3601_v49  ;;  %v1547_v58 = vadd.f32 %v3456_v53, %v1479_v6  ;;  %v1534_v17 = vadd.f32 %v3584_v32, %v1466_v52  ;;  %v1316_v27 = vld [vmem:[#allocation3 + $0x98] sm:$0xff]  ;;  %v3747_v32 = vld [vmem:[#allocation7 + $0x1] ss:$0 sm:$0xff] }
  0xd5   : > { %v1220_v62 = vadd.f32 %v1188_v61, %v1152_v8  ;;  %1073 = vst.msk [vmem:[#allocation3 + $0x30] sm:$0xff] %vm272_vm0, %v1041_v35  ;;  %v825_v29 = vld [vmem:[#allocation3 + $0xb8] sm:$0xff]  ;;  %746 = vst.msk [vmem:[#allocation3 + $0x48] sm:$0xff] %vm272_vm0, %v714_v23  ;;  %v465_v19 = vmax.f32 %v433_v9, 0.0  ;;  %v1793_v50 = vld [vmem:[#allocation3] sm:$0xff]  ;;  %v1384_v38 = vadd.f32 %v3657_v7, %v1316_v27  ;;  %v846_v53 = vmul.f32 %v3222_v12, %v3707_v4 }
  0xd6   : > { %1415 = vst.msk [vmem:[#allocation3 + $0x90] sm:$0xff] %vm272_vm0, %v1383_v5  ;;  %v3742_v22 = vld [vmem:[#allocation2 + $0x6a] sm:$0xff]  ;;  %v893_v39 = vadd.f32 %v861_v56, %v825_v29  ;;  %497 = vst.msk [vmem:[#allocation2 + $0x151] sm:$0xff] %vm272_vm0, %v464_v0  ;;  %v697_v31 = vmul.f32 %v3747_v32, %v3721_v45  ;;  %v1861_v57 = vadd.f32 %v3356_v1, %v1793_v50  ;;  %v1480_v61 = vld [vmem:[#allocation3 + $0x88] sm:$0xff] }
  0xd7   : > { %v974_v13 = vld [vmem:[#allocation3 + $0x38] sm:$0xff]  ;;  %1579 = vst.msk [vmem:[#allocation3 + $0x80] sm:$0xff] %vm272_vm0, %v1547_v58  ;;  %1566 = vst.msk [vmem:[#allocation3 + $0x18] sm:$0xff] %vm272_vm0, %v1534_v17  ;;  %v1301_v7 = vld [vmem:[#allocation3 + $0x20] sm:$0xff]  ;;  %v1025_v43 = vmul.f32 %v3250_v40, %v3659_v10  ;;  %v1548_v14 = vadd.f32 %v3500_v33, %v1480_v61  ;;  %v3766_v21 = vmul.f32 %v3308_v30, %v3601_v49 }
  0xd8   : > { %1252 = vst.msk [vmem:[#allocation3 + $0xa0] sm:$0xff] %vm272_vm0, %v1220_v62  ;;  %v1153_v37 = vld [vmem:[#allocation3 + $0xa8] sm:$0xff]  ;;  %v1042_v34 = vadd.f32 %v1010_v18, %v974_v13  ;;  %498 = vst.msk [vmem:[#allocation2 + $0x159] sm:$0xff] %vm272_vm0, %v465_v19  ;;  %v3758_v56 = vld [vmem:[#allocation7] ss:$0 sm:$0xff]  ;;  %v1369_v9 = vadd.f32 %v3677_v63, %v1301_v7  ;;  %v1353_v33 = vmul.f32 %v3300_v25, %v3631_v11 }
  0xd9   : > { %v565_v1 = vmul.f32 %v3758_v56, %v3723_v36  ;;  %1416 = vst.msk [vmem:[#allocation3 + $0x98] sm:$0xff] %vm272_vm0, %v1384_v38  ;;  %v1221_v20 = vadd.f32 %v1189_v3, %v1153_v37  ;;  %v3769_v35 = vld [vmem:[#allocation2 + $0x129] sm:$0xff]  ;;  %925 = vst.msk [vmem:[#allocation3 + $0xb8] sm:$0xff] %vm272_vm0, %v893_v39  ;;  %v341_v23 = vld [vmem:[%s3091_s12 + $0x68] sm:$0xff]  ;;  %v3779_v6 = vmul.f32 %v3300_v25, %v3689_v24 }
  0xda   : > { %v340_v18 = vld [vmem:[%s3091_s12 + $0x60] sm:$0xff]  ;;  %1893 = vst.msk [vmem:[#allocation3] sm:$0xff] %vm272_vm0, %v1861_v57  ;;  %v1174_v49 = vmul.f32 %v3290_v15, %v3633_v16  ;;  %v3783_v63 = vld [vmem:[#allocation2 + $0x78] sm:$0xff]  ;;  %1074 = vst.msk [vmem:[#allocation3 + $0x38] sm:$0xff] %vm272_vm0, %v1042_v34  ;;  %v847_v5 = vmul.f32 %v3222_v12, %v3742_v22  ;;  %v3793_v0 = vmul.f32 %v3302_v26, %v3567_v2 }
  0xdb   : > { %v810_v52 = vld [vmem:[#allocation3 + $0x40] sm:$0xff]  ;;  %597 = vst.msk [vmem:[#allocation3 + $0xc8] sm:$0xff] %vm272_vm0, %v565_v1  ;;  %1580 = vst.msk [vmem:[#allocation3 + $0x88] sm:$0xff] %vm272_vm0, %v1548_v14  ;;  %v1630_v3 = vld [vmem:[#allocation3 + $0x10] sm:$0xff]  ;;  %v3798_v17 = vmul.f32 %v3290_v15, %v3648_v44 }
  0xdc   : > { %v661_v8 = vld [vmem:[#allocation3 + $0xc0] sm:$0xff]  ;;  %1401 = vst.msk [vmem:[#allocation3 + $0x20] sm:$0xff] %vm272_vm0, %v1369_v9  ;;  %v1302_v58 = vld [vmem:[#allocation3 + $0x28] sm:$0xff]  ;;  %1253 = vst.msk [vmem:[#allocation3 + $0xa8] sm:$0xff] %vm272_vm0, %v1221_v20  ;;  %v878_v27 = vadd.f32 %v846_v53, %v810_v52  ;;  %v1698_v19 = vadd.f32 %v3560_v54, %v1630_v3  ;;  %v1026_v53 = vmul.f32 %v3250_v40, %v3723_v36 }
  0xdd   : > { %v989_v12 = vld [vmem:[#allocation3 + $0xb0] sm:$0xff]  ;;  %v729_v62 = vadd.f32 %v697_v31, %v661_v8  ;;  %v1794_v29 = vld [vmem:[#allocation3 + $0x8] sm:$0xff]  ;;  %v1370_v50 = vadd.f32 %v3732_v48, %v1302_v58  ;;  %v550_v48 = vmul.f32 %v3758_v56, %v3783_v63  ;;  %v1011_v52 = vmul.f32 %v3250_v40, %v3783_v63 }
  0xde   : > { %v1057_v38 = vadd.f32 %v1025_v43, %v989_v12  ;;  %v3805_v2 = vld [vmem:[%s4640_s1] ss:$0 sm:$0xff]  ;;  %v1862_v39 = vadd.f32 %v3398_v42, %v1794_v29  ;;  %910 = vst.msk [vmem:[#allocation3 + $0x40] sm:$0xff] %vm272_vm0, %v878_v27  ;;  %v811_v31 = vld [vmem:[#allocation3 + $0x48] sm:$0xff]  ;;  %1730 = vst.msk [vmem:[#allocation3 + $0x10] sm:$0xff] %vm272_vm0, %v1698_v19  ;;  %v698_v43 = vmul.f32 %v3747_v32, %v3769_v35 }
  0xdf   : > { %v379_v13 = vmul.f32 %v3805_v2, %v340_v18  ;;  %v1138_v57 = vld [vmem:[#allocation3 + $0x30] sm:$0xff]  ;;  %761 = vst.msk [vmem:[#allocation3 + $0xc0] sm:$0xff] %vm272_vm0, %v729_v62  ;;  %v380_v54 = vmul.f32 %v3805_v2, %v341_v23  ;;  %1402 = vst.msk [vmem:[#allocation3 + $0x28] sm:$0xff] %vm272_vm0, %v1370_v50  ;;  %v879_v34 = vadd.f32 %v847_v5, %v811_v31  ;;  %v1644_v9 = vld [vmem:[#allocation3 + $0x80] sm:$0xff] }
  0xe0   : > { %v1481_v61 = vld [vmem:[#allocation3 + $0x90] sm:$0xff]  ;;  %v1206_v7 = vadd.f32 %v1174_v49, %v1138_v57  ;;  %1089 = vst.msk [vmem:[#allocation3 + $0xb0] sm:$0xff] %vm272_vm0, %v1057_v38  ;;  %1894 = vst.msk [vmem:[#allocation3 + $0x8] sm:$0xff] %vm272_vm0, %v1862_v39  ;;  %v1631_v20 = vld [vmem:[#allocation3 + $0x18] sm:$0xff]  ;;  %v3835_v23 = vmul.f32 %v3308_v30, %v3633_v16  ;;  %v1712_v8 = vadd.f32 %v3460_v59, %v1644_v9 }
  0xe1   : > { %v3818_v42 = vld [vmem:[#allocation2 + $0x122] sm:$0xff]  ;;  %v3820_v37 = vld [vmem:[#allocation2 + $0x79] sm:$0xff]  ;;  %v1549_v18 = vadd.f32 %v3683_v28, %v1481_v61  ;;  %v1317_v49 = vld [vmem:[#allocation3 + $0xa0] sm:$0xff]  ;;  %582 = vst.msk [vmem:[#allocation3 + $0x50] sm:$0xff] %vm272_vm0, %v550_v48  ;;  %v1699_v3 = vadd.f32 %v3593_v51, %v1631_v20  ;;  %v1519_v20 = vmul.f32 %v3302_v26, %v3659_v10 }
  0xe2   : > { %v3828_v1 = vld [vmem:[%s4641_s2] ss:$0 sm:$0xff]  ;;  %v1482_v58 = vld [vmem:[#allocation3 + $0x98] sm:$0xff]  ;;  %v1385_v12 = vadd.f32 %v1353_v33, %v1317_v49  ;;  %1238 = vst.msk [vmem:[#allocation3 + $0x30] sm:$0xff] %vm272_vm0, %v1206_v7  ;;  %911 = vst.msk [vmem:[#allocation3 + $0x48] sm:$0xff] %vm272_vm0, %v879_v34 }
  0xe3   : > { %v418_v14 = vadd.f32 %v3828_v1, %v379_v13  ;;  %v419_v5 = vadd.f32 %v3828_v1, %v380_v54  ;;  %v3844_v28 = vld [vmem:[#allocation2 + $0x80] sm:$0xff]  ;;  %v990_v16 = vld [vmem:[#allocation3 + $0xb8] sm:$0xff]  ;;  %v1925_v62 = vld [vmem:[#allocation3] sm:$0xff]  ;;  %1581 = vst.msk [vmem:[#allocation3 + $0x90] sm:$0xff] %vm272_vm0, %v1549_v18  ;;  %v1550_v40 = vadd.f32 %v3718_v41, %v1482_v58  ;;  %v1504_v41 = vmul.f32 %v3302_v26, %v3603_v60 }
  0xe4   : > { %v1139_v29 = vld [vmem:[#allocation3 + $0x38] sm:$0xff]  ;;  %v1058_v19 = vadd.f32 %v1026_v53, %v990_v16  ;;  %v3849_v59 = vld [vmem:[#allocation7 + $0x2] ss:$0 sm:$0xff]  ;;  %v662_v33 = vld [vmem:[#allocation3 + $0xc8] sm:$0xff]  ;;  %2543 = vmatprep.mubr.msk.f32.mxu0 %vm272_vm0, %v1925_v62  ;;  %1744 = vst.msk [vmem:[#allocation3 + $0x80] sm:$0xff] %vm272_vm0, %v1712_v8  ;;  %v1190_v53 = vmul.f32 %v3290_v15, %v3721_v45  ;;  %v683_v15 = vmul.f32 %v3747_v32, %v3820_v37 }
  0xe5   : > { %v450_v27 = vmax.f32 %v418_v14, 0.0  ;;  %v862_v51 = vmul.f32 %v3849_v59, %v3818_v42  ;;  %v451_v50 = vmax.f32 %v419_v5, 0.0  ;;  %v1645_v38 = vld [vmem:[#allocation3 + $0x88] sm:$0xff]  ;;  %1731 = vst.msk [vmem:[#allocation3 + $0x18] sm:$0xff] %vm272_vm0, %v1699_v3  ;;  %v1467_v13 = vld [vmem:[#allocation3 + $0x20] sm:$0xff]  ;;  %1417 = vst.msk [vmem:[#allocation3 + $0xa0] sm:$0xff] %vm272_vm0, %v1385_v12  ;;  %v1207_v57 = vadd.f32 %v3798_v17, %v1139_v29 }
  0xe6   : > { %v1318_v39 = vld [vmem:[#allocation3 + $0xa8] sm:$0xff]  ;;  %v730_v31 = vadd.f32 %v698_v43, %v662_v33  ;;  %v1713_v54 = vadd.f32 %v3508_v55, %v1645_v38  ;;  %1582 = vst.msk [vmem:[#allocation3 + $0x98] sm:$0xff] %vm272_vm0, %v1550_v40  ;;  %v1535_v48 = vadd.f32 %v3793_v0, %v1467_v13  ;;  %v3867_v61 = vld [vmem:[#allocation2 + $0x12a] sm:$0xff]  ;;  %1090 = vst.msk [vmem:[#allocation3 + $0xb8] sm:$0xff] %vm272_vm0, %v1058_v19 }
  0xe7   : > { %483 = vst.msk [vmem:[#allocation2 + $0xa9] sm:$0xff] %vm272_vm0, %v450_v27  ;;  %v1386_v60 = vadd.f32 %v3779_v6, %v1318_v39  ;;  %484 = vst.msk [vmem:[#allocation2 + $0xb1] sm:$0xff] %vm272_vm0, %v451_v50  ;;  %v356_v17 = vld [vmem:[%s3091_s12 + $0xe0] sm:$0xff]  ;;  %v357_v7 = vld [vmem:[%s3091_s12 + $0xe8] sm:$0xff]  ;;  %v3877_v55 = vmul.f32 %v3308_v30, %v3648_v44  ;;  %v1339_v0 = vmul.f32 %v3300_v25, %v3707_v4 }
  0xe8   : > { %1239 = vst.msk [vmem:[#allocation3 + $0x38] sm:$0xff] %vm272_vm0, %v1207_v57  ;;  %v3882_v6 = vld [vmem:[#allocation2 + $0x138] sm:$0xff]  ;;  %v975_v34 = vld [vmem:[#allocation3 + $0x40] sm:$0xff]  ;;  %762 = vst.msk [vmem:[#allocation3 + $0xc8] sm:$0xff] %vm272_vm0, %v730_v31  ;;  %v551_v30 = vmul.f32 %v3758_v56, %v3844_v28  ;;  %v3898_v18 = vmul.f32 %v3302_v26, %v3723_v36  ;;  %v863_v29 = vmul.f32 %v3849_v59, %v3867_v61 }
  0xe9   : > { %v3884_v43 = vld [vmem:[#allocation7 + $0x3] ss:$0 sm:$0xff]  ;;  %1745 = vst.msk [vmem:[#allocation3 + $0x88] sm:$0xff] %vm272_vm0, %v1713_v54  ;;  %v1795_v44 = vld [vmem:[#allocation3 + $0x10] sm:$0xff]  ;;  %1567 = vst.msk [vmem:[#allocation3 + $0x20] sm:$0xff] %vm272_vm0, %v1535_v48  ;;  %v1043_v5 = vadd.f32 %v1011_v52, %v975_v34  ;;  %v396_v13 = vmul.f32 %v3805_v2, %v357_v7 }
  0xea   : > { %v1012_v14 = vmul.f32 %v3884_v43, %v3844_v28  ;;  %v826_v9 = vld [vmem:[#allocation3 + $0xc0] sm:$0xff]  ;;  %v1468_v25 = vld [vmem:[#allocation3 + $0x28] sm:$0xff]  ;;  %1418 = vst.msk [vmem:[#allocation3 + $0xa8] sm:$0xff] %vm272_vm0, %v1386_v60  ;;  %v1154_v49 = vld [vmem:[#allocation3 + $0xb0] sm:$0xff]  ;;  %v1863_v58 = vadd.f32 %v3564_v47, %v1795_v44 }
  0xeb   : > { %v894_v8 = vadd.f32 %v862_v51, %v826_v9  ;;  %v1926_v3 = vld [vmem:[#allocation3 + $0x8] sm:$0xff]  ;;  %v1536_v12 = vadd.f32 %v1504_v41, %v1468_v25  ;;  %v3901_v16 = vld [vmem:[#allocation7 + $0x5] ss:$0 sm:$0xff]  ;;  %v3905_v62 = vld [vmem:[#allocation2 + $0x81] sm:$0xff]  ;;  %v1222_v10 = vadd.f32 %v1190_v53, %v1154_v49  ;;  %583 = vst.msk [vmem:[#allocation3 + $0x58] sm:$0xff] %vm272_vm0, %v551_v30  ;;  %v395_v51 = vmul.f32 %v3805_v2, %v356_v17 }
  0xec   : > { %v1340_v27 = vmul.f32 %v3901_v16, %v3742_v22  ;;  %v647_v40 = vld [vmem:[#allocation3 + $0x50] sm:$0xff]  ;;  %2544 = vmatmul.mubr.msk.f32.vlgmr.msra.gmra.mrb[0].mxu0 %vm272_vm0, %v1926_v3  ;;  %v3909_v36 = vld [vmem:[#allocation7 + $0x4] ss:$0 sm:$0xff]  ;;  %1075 = vst.msk [vmem:[#allocation3 + $0x40] sm:$0xff] %vm272_vm0, %v1043_v5  ;;  %v976_v52 = vld [vmem:[#allocation3 + $0x48] sm:$0xff]  ;;  %v566_v41 = vmul.f32 %v3758_v56, %v3882_v6  ;;  %v684_v48 = vmul.f32 %v3747_v32, %v3905_v62 }
  0xed   : > { %v1303_v26 = vld [vmem:[#allocation3 + $0x30] sm:$0xff]  ;;  %v1191_v47 = vmul.f32 %v3909_v36, %v3769_v35  ;;  %926 = vst.msk [vmem:[#allocation3 + $0xc0] sm:$0xff] %vm272_vm0, %v894_v8  ;;  %v715_v19 = vadd.f32 %v683_v15, %v647_v40  ;;  %1895 = vst.msk [vmem:[#allocation3 + $0x10] sm:$0xff] %vm272_vm0, %v1863_v58  ;;  %v1044_v38 = vadd.f32 %v1012_v14, %v976_v52  ;;  %v1809_v39 = vld [vmem:[#allocation3 + $0x80] sm:$0xff] }
  0xee   : > { %v1646_v33 = vld [vmem:[#allocation3 + $0x90] sm:$0xff]  ;;  %1568 = vst.msk [vmem:[#allocation3 + $0x28] sm:$0xff] %vm272_vm0, %v1536_v12  ;;  %v1371_v50 = vadd.f32 %v1339_v0, %v1303_v26  ;;  %1254 = vst.msk [vmem:[#allocation3 + $0xb0] sm:$0xff] %vm272_vm0, %v1222_v10  ;;  %v1796_v57 = vld [vmem:[#allocation3 + $0x18] sm:$0xff]  ;;  %v1176_v54 = vmul.f32 %v3909_v36, %v3820_v37  ;;  %v434_v60 = vadd.f32 %v3828_v1, %v395_v51 }
  0xef   : > { %v1714_v53 = vadd.f32 %v3687_v46, %v1646_v33  ;;  %v1483_v31 = vld [vmem:[#allocation3 + $0xa0] sm:$0xff]  ;;  %747 = vst.msk [vmem:[#allocation3 + $0x50] sm:$0xff] %vm272_vm0, %v715_v19  ;;  %v4661_v15 = vld [vmem:[#allocation14_spill] sm:$0xff]  ;;  %v1647_v34 = vld [vmem:[#allocation3 + $0x98] sm:$0xff]  ;;  %v435_v30 = vadd.f32 %v3828_v1, %v396_v13 }
  0xf0   : > { %v1877_v17 = vadd.f32 %v4661_v15, %v1809_v39  ;;  %v4662_v7 = vld [vmem:[#allocation16_spill] sm:$0xff]  ;;  %v1551_v14 = vadd.f32 %v1519_v20, %v1483_v31  ;;  %1403 = vst.msk [vmem:[#allocation3 + $0x30] sm:$0xff] %vm272_vm0, %v1371_v50  ;;  %v3934_v46 = vld [vmem:[#allocation2 + $0x7a] sm:$0xff]  ;;  %v1155_v9 = vld [vmem:[#allocation3 + $0xb8] sm:$0xff]  ;;  %v1715_v44 = vadd.f32 %v3766_v21, %v1647_v34  ;;  %v1027_v20 = vmul.f32 %v3884_v43, %v3882_v6 }
  0xf1   : > { %v1864_v0 = vadd.f32 %v4662_v7, %v1796_v57  ;;  %1076 = vst.msk [vmem:[#allocation3 + $0x48] sm:$0xff] %vm272_vm0, %v1044_v38  ;;  %598 = vst.msk [vmem:[#allocation3 + $0xd0] sm:$0xff] %vm272_vm0, %v566_v41  ;;  %v1304_v25 = vld [vmem:[#allocation3 + $0x38] sm:$0xff]  ;;  %v3941_v49 = vld [vmem:[#allocation2 + $0x139] sm:$0xff]  ;;  %v1223_v5 = vadd.f32 %v1191_v47, %v1155_v9  ;;  %v466_v3 = vmax.f32 %v434_v60, 0.0  ;;  %v1355_v21 = vmul.f32 %v3901_v16, %v3818_v42 }
  0xf2   : > { %1746 = vst.msk [vmem:[#allocation3 + $0x90] sm:$0xff] %vm272_vm0, %v1714_v53  ;;  %v827_v8 = vld [vmem:[#allocation3 + $0xc8] sm:$0xff]  ;;  %1909 = vst.msk [vmem:[#allocation3 + $0x80] sm:$0xff] %vm272_vm0, %v1877_v17  ;;  %v1632_v12 = vld [vmem:[#allocation3 + $0x20] sm:$0xff]  ;;  %v1372_v40 = vadd.f32 %v1340_v27, %v1304_v25  ;;  %v467_v47 = vmax.f32 %v435_v30, 0.0  ;;  %v848_v27 = vmul.f32 %v3849_v59, %v3934_v46  ;;  %v699_v57 = vmul.f32 %v3747_v32, %v3941_v49 }
  0xf3   : > { %v1810_v58 = vld [vmem:[#allocation3 + $0x88] sm:$0xff]  ;;  %1896 = vst.msk [vmem:[#allocation3 + $0x18] sm:$0xff] %vm272_vm0, %v1864_v0  ;;  %1583 = vst.msk [vmem:[#allocation3 + $0xa0] sm:$0xff] %vm272_vm0, %v1551_v14  ;;  %v895_v26 = vadd.f32 %v863_v29, %v827_v8  ;;  %v4663_v52 = vld [vmem:[#allocation15_spill] sm:$0xff]  ;;  %v1700_v51 = vadd.f32 %v3835_v23, %v1632_v12 }
  0xf4   : > { %v1484_v10 = vld [vmem:[#allocation3 + $0xa8] sm:$0xff]  ;;  %v1878_v19 = vadd.f32 %v4663_v52, %v1810_v58  ;;  %1747 = vst.msk [vmem:[#allocation3 + $0x98] sm:$0xff] %vm272_vm0, %v1715_v44  ;;  %1255 = vst.msk [vmem:[#allocation3 + $0xb8] sm:$0xff] %vm272_vm0, %v1223_v5  ;;  %v3955_v50 = vld [vmem:[#allocation2 + $0x140] sm:$0xff] }
  0xf5   : > { %v1552_v33 = vadd.f32 %v3898_v18, %v1484_v10  ;;  %v648_v38 = vld [vmem:[#allocation3 + $0x58] sm:$0xff]  ;;  %499 = vst.msk [vmem:[#allocation2 + $0x169] sm:$0xff] %vm272_vm0, %v466_v3  ;;  %v3960_v29 = vld [vmem:[#allocation7 + $0x6] ss:$0 sm:$0xff]  ;;  %1404 = vst.msk [vmem:[#allocation3 + $0x38] sm:$0xff] %vm272_vm0, %v1372_v40  ;;  %v1177_v18 = vmul.f32 %v3909_v36, %v3905_v62 }
  0xf6   : > { %v1505_v13 = vmul.f32 %v3960_v29, %v3783_v63  ;;  %v1140_v23 = vld [vmem:[#allocation3 + $0x40] sm:$0xff]  ;;  %927 = vst.msk [vmem:[#allocation3 + $0xc8] sm:$0xff] %vm272_vm0, %v895_v26  ;;  %v716_v39 = vadd.f32 %v684_v48, %v648_v38  ;;  %500 = vst.msk [vmem:[#allocation2 + $0x171] sm:$0xff] %vm272_vm0, %v467_v47  ;;  %v1927_v53 = vld [vmem:[#allocation3 + $0x10] sm:$0xff]  ;;  %v1506_v25 = vmul.f32 %v3960_v29, %v3844_v28 }
  0xf7   : > { %v991_v41 = vld [vmem:[#allocation3 + $0xc0] sm:$0xff]  ;;  %1910 = vst.msk [vmem:[#allocation3 + $0x88] sm:$0xff] %vm272_vm0, %v1878_v19  ;;  %v3972_v31 = vld [vmem:[#allocation7 + $0x8] ss:$0 sm:$0xff]  ;;  %1732 = vst.msk [vmem:[#allocation3 + $0x20] sm:$0xff] %vm272_vm0, %v1700_v51  ;;  %v1208_v48 = vadd.f32 %v1176_v54, %v1140_v23  ;;  %2546 = vmatprep.mubr.msk.f32.mxu0 %vm272_vm0, %v1927_v53  ;;  %v567_v54 = vmul.f32 %v3758_v56, %v3955_v50  ;;  %v1028_v28 = vmul.f32 %v3884_v43, %v3955_v50 }
  0xf8   : > { %v1847_v63 = vmul.f32 %v3972_v31, %v3631_v11  ;;  %v1633_v60 = vld [vmem:[#allocation3 + $0x28] sm:$0xff]  ;;  %1584 = vst.msk [vmem:[#allocation3 + $0xa8] sm:$0xff] %vm272_vm0, %v1552_v33  ;;  %v1319_v15 = vld [vmem:[#allocation3 + $0xb0] sm:$0xff]  ;;  %v1059_v17 = vadd.f32 %v1027_v20, %v991_v41  ;;  %v3980_v0 = vld [vmem:[#allocation7 + $0x7] ss:$0 sm:$0xff]  ;;  %v1848_v44 = vmul.f32 %v3972_v31, %v3689_v24  ;;  %v1833_v47 = vmul.f32 %v3972_v31, %v3707_v4 }
  0xf9   : > { %v1701_v7 = vadd.f32 %v3877_v55, %v1633_v60  ;;  %v1684_v34 = vmul.f32 %v3980_v0, %v3721_v45  ;;  %v3984_v14 = vld [vmem:[#allocation2 + $0x82] sm:$0xff]  ;;  %v1387_v11 = vadd.f32 %v1355_v21, %v1319_v15  ;;  %v3986_v9 = vld [vmem:[#allocation2 + $0x90] sm:$0xff]  ;;  %748 = vst.msk [vmem:[#allocation3 + $0x58] sm:$0xff] %vm272_vm0, %v716_v39  ;;  %v1356_v45 = vmul.f32 %v3901_v16, %v3867_v61  ;;  %v1141_v5 = vld [vmem:[#allocation3 + $0x48] sm:$0xff] }
  0xfa   : > { %v812_v30 = vld [vmem:[#allocation3 + $0x50] sm:$0xff]  ;;  %1240 = vst.msk [vmem:[#allocation3 + $0x40] sm:$0xff] %vm272_vm0, %v1208_v48  ;;  %1091 = vst.msk [vmem:[#allocation3 + $0xc0] sm:$0xff] %vm272_vm0, %v1059_v17  ;;  %v1209_v12 = vadd.f32 %v1177_v18, %v1141_v5  ;;  %v1941_v40 = vld [vmem:[#allocation3 + $0x80] sm:$0xff]  ;;  %v1685_v19 = vmul.f32 %v3980_v0, %v3769_v35  ;;  %v552_v33 = vmul.f32 %v3758_v56, %v3986_v9 }
  0xfb   : > { %v1469_v55 = vld [vmem:[#allocation3 + $0x30] sm:$0xff]  ;;  %v880_v20 = vadd.f32 %v848_v27, %v812_v30  ;;  %1733 = vst.msk [vmem:[#allocation3 + $0x28] sm:$0xff] %vm272_vm0, %v1701_v7  ;;  %1419 = vst.msk [vmem:[#allocation3 + $0xb0] sm:$0xff] %vm272_vm0, %v1387_v11  ;;  %v1928_v21 = vld [vmem:[#allocation3 + $0x18] sm:$0xff]  ;;  %2567 = vmatprep.mubr.msk.f32.mxu1 %vm272_vm0, %v1941_v40  ;;  %v1834_v38 = vmul.f32 %v3972_v31, %v3742_v22  ;;  %v849_v23 = vmul.f32 %v3849_v59, %v3984_v14 }
  0xfc   : > { %v663_v8 = vld [vmem:[#allocation3 + $0xd0] sm:$0xff]  ;;  %v1537_v58 = vadd.f32 %v1505_v13, %v1469_v55  ;;  %599 = vst.msk [vmem:[#allocation3 + $0xd8] sm:$0xff] %vm272_vm0, %v567_v54  ;;  %v1648_v52 = vld [vmem:[#allocation3 + $0xa0] sm:$0xff]  ;;  %2547 = vmatmul.mubr.msk.f32.gmra.mrb[2].mxu0 %vm272_vm0, %v1928_v21  ;;  %v1812_v27 = vld [vmem:[#allocation3 + $0x98] sm:$0xff]  ;;  %v1341_v22 = vmul.f32 %v3901_v16, %v3934_v46  ;;  %v1192_v53 = vmul.f32 %v3909_v36, %v3941_v49 }
  0xfd   : > { %v1811_v3 = vld [vmem:[#allocation3 + $0x90] sm:$0xff]  ;;  %v731_v10 = vadd.f32 %v699_v57, %v663_v8  ;;  %912 = vst.msk [vmem:[#allocation3 + $0x50] sm:$0xff] %vm272_vm0, %v880_v20  ;;  %v1716_v4 = vadd.f32 %v1684_v34, %v1648_v52  ;;  %v1320_v13 = vld [vmem:[#allocation3 + $0xb8] sm:$0xff]  ;;  %v4020_v35 = vld [vmem:[#allocation2 + $0x91] sm:$0xff]  ;;  %v1880_v18 = vadd.f32 %v1848_v44, %v1812_v27  ;;  %v1521_v7 = vmul.f32 %v3960_v29, %v3882_v6 }
  0xfe   : > { %v4001_v24 = vld [vmem:[#allocation2 + $0x141] sm:$0xff]  ;;  %v1879_v26 = vadd.f32 %v1847_v63, %v1811_v3  ;;  %1569 = vst.msk [vmem:[#allocation3 + $0x30] sm:$0xff] %vm272_vm0, %v1537_v58  ;;  %1241 = vst.msk [vmem:[#allocation3 + $0x48] sm:$0xff] %vm272_vm0, %v1209_v12  ;;  %v1388_v39 = vadd.f32 %v1356_v45, %v1320_v13  ;;  %v4029_v57 = vld [vmem:[#allocation2 + $0x98] sm:$0xff]  ;;  %v1849_v54 = vmul.f32 %v3972_v31, %v3818_v42 }
  0xff   : > { %v4010_v51 = vld [vmem:[#allocation2 + $0x13a] sm:$0xff]  ;;  %763 = vst.msk [vmem:[#allocation3 + $0xd0] sm:$0xff] %vm272_vm0, %v731_v10  ;;  %v1470_v41 = vld [vmem:[#allocation3 + $0x38] sm:$0xff]  ;;  %584 = vst.msk [vmem:[#allocation3 + $0x60] sm:$0xff] %vm272_vm0, %v552_v33  ;;  %v700_v11 = vmul.f32 %v3747_v32, %v4001_v24  ;;  %v1013_v55 = vmul.f32 %v3884_v43, %v3986_v9  ;;  %v1670_v6 = vmul.f32 %v3980_v0, %v3820_v37 }
 0x100   : > { %1911 = vst.msk [vmem:[#allocation3 + $0x90] sm:$0xff] %vm272_vm0, %v1879_v26  ;;  %v992_v63 = vld [vmem:[#allocation3 + $0xc8] sm:$0xff]  ;;  %v1797_v15 = vld [vmem:[#allocation3 + $0x20] sm:$0xff]  ;;  %1748 = vst.msk [vmem:[#allocation3 + $0xa0] sm:$0xff] %vm272_vm0, %v1716_v4  ;;  %v1538_v17 = vadd.f32 %v1506_v25, %v1470_v41  ;;  %v1342_v5 = vmul.f32 %v3901_v16, %v3984_v14  ;;  %v864_v8 = vmul.f32 %v3849_v59, %v4010_v51 }
 0x101   : > { %v1942_v60 = vld [vmem:[#allocation3 + $0x88] sm:$0xff]  ;;  %v1060_v34 = vadd.f32 %v1028_v28, %v992_v63  ;;  %1912 = vst.msk [vmem:[#allocation3 + $0x98] sm:$0xff] %vm272_vm0, %v1880_v18  ;;  %v1865_v30 = vadd.f32 %v1833_v47, %v1797_v15  ;;  %1420 = vst.msk [vmem:[#allocation3 + $0xb8] sm:$0xff] %vm272_vm0, %v1388_v39  ;;  %v813_v25 = vld [vmem:[#allocation3 + $0x58] sm:$0xff]  ;;  %v685_v10 = vmul.f32 %v3747_v32, %v4020_v35 }
 0x102   : > { %v1649_v48 = vld [vmem:[#allocation3 + $0xa8] sm:$0xff]  ;;  %2568 = vmatmul.mubr.msk.f32.vlgmr.msra.gmra.mrb[0].mxu1 %vm272_vm0, %v1942_v60  ;;  %1570 = vst.msk [vmem:[#allocation3 + $0x38] sm:$0xff] %vm272_vm0, %v1538_v17  ;;  %v1305_v45 = vld [vmem:[#allocation3 + $0x40] sm:$0xff]  ;;  %v881_v42 = vadd.f32 %v849_v23, %v813_v25  ;;  %v1485_v37 = vld [vmem:[#allocation3 + $0xb0] sm:$0xff]  ;;  %v553_v40 = vmul.f32 %v3758_v56, %v4029_v57  ;;  %v1850_v52 = vmul.f32 %v3972_v31, %v3867_v61 }
 0x103   : > { %v1717_v44 = vadd.f32 %v1685_v19, %v1649_v48  ;;  %v1156_v20 = vld [vmem:[#allocation3 + $0xc0] sm:$0xff]  ;;  %1092 = vst.msk [vmem:[#allocation3 + $0xc8] sm:$0xff] %vm272_vm0, %v1060_v34  ;;  %1897 = vst.msk [vmem:[#allocation3 + $0x20] sm:$0xff] %vm272_vm0, %v1865_v30  ;;  %v1798_v3 = vld [vmem:[#allocation3 + $0x28] sm:$0xff]  ;;  %v1373_v58 = vadd.f32 %v1341_v22, %v1305_v45  ;;  %v1553_v19 = vadd.f32 %v1521_v7, %v1485_v37 }
 0x104   : > { %v1224_v12 = vadd.f32 %v1192_v53, %v1156_v20  ;;  %v664_v28 = vld [vmem:[#allocation3 + $0xd8] sm:$0xff]  ;;  %v358_v21 = vld [vmem:[%s3091_s12 + $0xf0] sm:$0xff]  ;;  %v1866_v47 = vadd.f32 %v1834_v38, %v1798_v3  ;;  %913 = vst.msk [vmem:[#allocation3 + $0x58] sm:$0xff] %vm272_vm0, %v881_v42  ;;  %v4071_v18 = vmul.f32 %v3972_v31, %v3934_v46  ;;  %v1671_v38 = vmul.f32 %v3980_v0, %v3905_v62  ;;  %v4082_v62 = vld [vmem:[#allocation2 + $0x150] sm:$0xff] }
 0x105   : > { %1749 = vst.msk [vmem:[#allocation3 + $0xa8] sm:$0xff] %vm272_vm0, %v1717_v44  ;;  %v359_v26 = vld [vmem:[%s3091_s12 + $0xf8] sm:$0xff]  ;;  %v4066_v27 = vld [vmem:[#allocation2 + $0x99] sm:$0xff]  ;;  %v732_v13 = vadd.f32 %v700_v11, %v664_v28  ;;  %v1522_v61 = vmul.f32 %v3960_v29, %v3955_v50  ;;  %1405 = vst.msk [vmem:[#allocation3 + $0x40] sm:$0xff] %vm272_vm0, %v1373_v58  ;;  %v1193_v50 = vmul.f32 %v3909_v36, %v4001_v24  ;;  %s2319_s12 = scalar_lea.sflag [#allocation6], %s3085_s14 }
 0x106   : > { %v4064_v33 = vld [vmem:[#allocation2 + $0x142] sm:$0xff]  ;;  %v1306_v41 = vld [vmem:[#allocation3 + $0x48] sm:$0xff]  ;;  %1256 = vst.msk [vmem:[#allocation3 + $0xc0] sm:$0xff] %vm272_vm0, %v1224_v12  ;;  %585 = vst.msk [vmem:[#allocation3 + $0x68] sm:$0xff] %vm272_vm0, %v553_v40  ;;  %v1686_v17 = vmul.f32 %v3980_v0, %v3941_v49  ;;  %v1507_v7 = vmul.f32 %v3960_v29, %v3986_v9  ;;  %v1357_v34 = vmul.f32 %v3901_v16, %v4010_v51 }
 0x107   : > { %v977_v4 = vld [vmem:[#allocation3 + $0x50] sm:$0xff]  ;;  %1898 = vst.msk [vmem:[#allocation3 + $0x28] sm:$0xff] %vm272_vm0, %v1866_v47  ;;  %1585 = vst.msk [vmem:[#allocation3 + $0xb0] sm:$0xff] %vm272_vm0, %v1553_v19  ;;  %v1374_v63 = vadd.f32 %v1342_v5, %v1306_v41  ;;  %v649_v15 = vld [vmem:[#allocation3 + $0x60] sm:$0xff]  ;;  %v1014_v25 = vmul.f32 %v3884_v43, %v4029_v57  ;;  %v397_v49 = vmul.f32 %v3805_v2, %v358_v21 }
 0x108   : > { %v1634_v23 = vld [vmem:[#allocation3 + $0x30] sm:$0xff]  ;;  %v1045_v39 = vadd.f32 %v1013_v55, %v977_v4  ;;  %764 = vst.msk [vmem:[#allocation3 + $0xd8] sm:$0xff] %vm272_vm0, %v732_v13  ;;  %v1813_v48 = vld [vmem:[#allocation3 + $0xa0] sm:$0xff]  ;;  %v717_v11 = vadd.f32 %v685_v10, %v649_v15  ;;  %v1944_v30 = vld [vmem:[#allocation3 + $0x98] sm:$0xff]  ;;  %v398_v9 = vmul.f32 %v3805_v2, %v359_v26  ;;  %v865_v20 = vmul.f32 %v3849_v59, %v4064_v33 }
 0x109   : > { %v828_v22 = vld [vmem:[#allocation3 + $0xd0] sm:$0xff]  ;;  %v1702_v46 = vadd.f32 %v1670_v6, %v1634_v23  ;;  %v1881_v44 = vadd.f32 %v1849_v54, %v1813_v48  ;;  %v1486_v55 = vld [vmem:[#allocation3 + $0xb8] sm:$0xff]  ;;  %1406 = vst.msk [vmem:[#allocation3 + $0x48] sm:$0xff] %vm272_vm0, %v1374_v63  ;;  %v4103_v54 = vld [vmem:[#allocation2 + $0x158] sm:$0xff]  ;;  %v686_v42 = vmul.f32 %v3747_v32, %v4066_v27  ;;  %v436_v28 = vadd.f32 %v3828_v1, %v397_v49 }
 0x10a   : > { %v1943_v53 = vld [vmem:[#allocation3 + $0x90] sm:$0xff]  ;;  %v896_v60 = vadd.f32 %v864_v8, %v828_v22  ;;  %1077 = vst.msk [vmem:[#allocation3 + $0x50] sm:$0xff] %vm272_vm0, %v1045_v39  ;;  %v1635_v6 = vld [vmem:[#allocation3 + $0x38] sm:$0xff]  ;;  %v1554_v45 = vadd.f32 %v1522_v61, %v1486_v55  ;;  %v1157_v5 = vld [vmem:[#allocation3 + $0xc8] sm:$0xff]  ;;  %v568_v8 = vmul.f32 %v3758_v56, %v4082_v62  ;;  %v437_v10 = vadd.f32 %v3828_v1, %v398_v9 }
 0x10b   : > { %2570 = vmatprep.mubr.msk.f32.mxu1 %vm272_vm0, %v1943_v53  ;;  %1734 = vst.msk [vmem:[#allocation3 + $0x30] sm:$0xff] %vm272_vm0, %v1702_v46  ;;  %749 = vst.msk [vmem:[#allocation3 + $0x60] sm:$0xff] %vm272_vm0, %v717_v11  ;;  %v1929_v3 = vld [vmem:[#allocation3 + $0x20] sm:$0xff]  ;;  %v1703_v37 = vadd.f32 %v1671_v38, %v1635_v6  ;;  %v1225_v12 = vadd.f32 %v1193_v50, %v1157_v5  ;;  %v1508_v21 = vmul.f32 %v3960_v29, %v4029_v57  ;;  %v4125_v19 = vld [vmem:[#allocation2 + $0xa8] sm:$0xff] }
 0x10c   : > { %928 = vst.msk [vmem:[#allocation3 + $0xd0] sm:$0xff] %vm272_vm0, %v896_v60  ;;  %2571 = vmatmul.mubr.msk.f32.gmra.mrb[2].mxu1 %vm272_vm0, %v1944_v30  ;;  %1913 = vst.msk [vmem:[#allocation3 + $0xa0] sm:$0xff] %vm272_vm0, %v1881_v44  ;;  %v1814_v2 = vld [vmem:[#allocation3 + $0xa8] sm:$0xff]  ;;  %2549 = vmatprep.mubr.msk.f32.mxu0 %vm272_vm0, %v1929_v3  ;;  %v1178_v47 = vmul.f32 %v3909_v36, %v4020_v35  ;;  %v978_v4 = vld [vmem:[#allocation3 + $0x58] sm:$0xff]  ;;  %v1029_v13 = vmul.f32 %v3884_v43, %v4082_v62  ;;  %v468_v38 = vmax.f32 %v436_v28, 0.0 }
 0x10d   : > { %v4113_v58 = vld [vmem:[#allocation2 + $0x92] sm:$0xff]  ;;  %v1882_v40 = vadd.f32 %v1850_v52, %v1814_v2  ;;  %1586 = vst.msk [vmem:[#allocation3 + $0xb8] sm:$0xff] %vm272_vm0, %v1554_v45  ;;  %600 = vst.msk [vmem:[#allocation3 + $0xe0] sm:$0xff] %vm272_vm0, %v568_v8  ;;  %v1046_v57 = vadd.f32 %v1014_v25, %v978_v4  ;;  %v469_v61 = vmax.f32 %v437_v10, 0.0  ;;  %v569_v41 = vmul.f32 %v3758_v56, %v4103_v54  ;;  %v4155_v9 = vld [vmem:[#allocation2 + $0x9a] sm:$0xff] }
 0x10e   : > { %v4121_v26 = vld [vmem:[#allocation2 + $0x151] sm:$0xff]  ;;  %1735 = vst.msk [vmem:[#allocation3 + $0x38] sm:$0xff] %vm272_vm0, %v1703_v37  ;;  %1257 = vst.msk [vmem:[#allocation3 + $0xc8] sm:$0xff] %vm272_vm0, %v1225_v12  ;;  %v1650_v22 = vld [vmem:[#allocation3 + $0xb0] sm:$0xff]  ;;  %v850_v50 = vmul.f32 %v3849_v59, %v4113_v58  ;;  %v1836_v15 = vmul.f32 %v3972_v31, %v3984_v14  ;;  %v554_v25 = vmul.f32 %v3758_v56, %v4125_v19 }
 0x10f   : > { %v1471_v1 = vld [vmem:[#allocation3 + $0x40] sm:$0xff]  ;;  %v650_v23 = vld [vmem:[#allocation3 + $0x68] sm:$0xff]  ;;  %1914 = vst.msk [vmem:[#allocation3 + $0xa8] sm:$0xff] %vm272_vm0, %v1882_v40  ;;  %v829_v63 = vld [vmem:[#allocation3 + $0xd8] sm:$0xff]  ;;  %v1718_v48 = vadd.f32 %v1686_v17, %v1650_v22  ;;  %v701_v55 = vmul.f32 %v3747_v32, %v4121_v26  ;;  %v1358_v6 = vmul.f32 %v3901_v16, %v4064_v33  ;;  %v1672_v3 = vmul.f32 %v3980_v0, %v4020_v35 }
 0x110   : > { %v1321_v52 = vld [vmem:[#allocation3 + $0xc0] sm:$0xff]  ;;  %v1930_v39 = vld [vmem:[#allocation3 + $0x28] sm:$0xff]  ;;  %v1539_v53 = vadd.f32 %v1507_v7, %v1471_v1  ;;  %v718_v60 = vadd.f32 %v686_v42, %v650_v23  ;;  %1078 = vst.msk [vmem:[#allocation3 + $0x58] sm:$0xff] %vm272_vm0, %v1046_v57  ;;  %v897_v30 = vadd.f32 %v865_v20, %v829_v63  ;;  %501 = vst.msk [vmem:[#allocation2 + $0x181] sm:$0xff] %vm272_vm0, %v468_v38 }
 0x111   : > { %v1389_v46 = vadd.f32 %v1357_v34, %v1321_v52  ;;  %2550 = vmatmul.mubr.msk.f32.gmra.mrb[4].mxu0 %vm272_vm0, %v1930_v39  ;;  %v1142_v11 = vld [vmem:[#allocation3 + $0x50] sm:$0xff]  ;;  %502 = vst.msk [vmem:[#allocation2 + $0x189] sm:$0xff] %vm272_vm0, %v469_v61  ;;  %601 = vst.msk [vmem:[#allocation3 + $0xe8] sm:$0xff] %vm272_vm0, %v569_v41  ;;  %v1687_v34 = vmul.f32 %v3980_v0, %v4001_v24  ;;  %v1472_v44 = vld [vmem:[#allocation3 + $0x48] sm:$0xff]  ;;  %v1523_v2 = vmul.f32 %v3960_v29, %v4082_v62 }
 0x112   : > { %v1799_v7 = vld [vmem:[#allocation3 + $0x30] sm:$0xff]  ;;  %1571 = vst.msk [vmem:[#allocation3 + $0x40] sm:$0xff] %vm272_vm0, %v1539_v53  ;;  %v1210_v14 = vadd.f32 %v1178_v47, %v1142_v11  ;;  %750 = vst.msk [vmem:[#allocation3 + $0x68] sm:$0xff] %vm272_vm0, %v718_v60  ;;  %v1540_v24 = vadd.f32 %v1508_v21, %v1472_v44  ;;  %v4159_v45 = vld [vmem:[#allocation2 + $0xb0] sm:$0xff]  ;;  %v1179_v12 = vmul.f32 %v3909_v36, %v4066_v27 }
 0x113   : > { %1421 = vst.msk [vmem:[#allocation3 + $0xc0] sm:$0xff] %vm272_vm0, %v1389_v46  ;;  %v993_v17 = vld [vmem:[#allocation3 + $0xd0] sm:$0xff]  ;;  %v1867_v49 = vadd.f32 %v4071_v18, %v1799_v7  ;;  %1750 = vst.msk [vmem:[#allocation3 + $0xb0] sm:$0xff] %vm272_vm0, %v1718_v48  ;;  %v814_v20 = vld [vmem:[#allocation3 + $0x60] sm:$0xff]  ;;  %v851_v35 = vmul.f32 %v3849_v59, %v4155_v9  ;;  %v555_v62 = vmul.f32 %v3758_v56, %v4159_v45 }
 0x114   : > { %v1061_v5 = vadd.f32 %v1029_v13, %v993_v17  ;;  %929 = vst.msk [vmem:[#allocation3 + $0xd8] sm:$0xff] %vm272_vm0, %v897_v30  ;;  %v1945_v42 = vld [vmem:[#allocation3 + $0xa0] sm:$0xff]  ;;  %1242 = vst.msk [vmem:[#allocation3 + $0x50] sm:$0xff] %vm272_vm0, %v1210_v14  ;;  %v882_v8 = vadd.f32 %v850_v50, %v814_v20  ;;  %v1651_v18 = vld [vmem:[#allocation3 + $0xb8] sm:$0xff]  ;;  %v1851_v1 = vmul.f32 %v3972_v31, %v4010_v51 }
 0x115   : > { %586 = vst.msk [vmem:[#allocation3 + $0x70] sm:$0xff] %vm272_vm0, %v554_v25  ;;  %2573 = vmatprep.mubr.msk.f32.mxu1 %vm272_vm0, %v1945_v42  ;;  %1899 = vst.msk [vmem:[#allocation3 + $0x30] sm:$0xff] %vm272_vm0, %v1867_v49  ;;  %v4171_v37 = vld [vmem:[#allocation2 + $0x159] sm:$0xff]  ;;  %v665_v28 = vld [vmem:[#allocation3 + $0xe0] sm:$0xff]  ;;  %v1719_v40 = vadd.f32 %v1687_v34, %v1651_v18  ;;  %v1030_v38 = vmul.f32 %v3884_v43, %v4103_v54  ;;  %v1343_v61 = vmul.f32 %v3901_v16, %v4113_v58 }
 0x116   : > { %1572 = vst.msk [vmem:[#allocation3 + $0x48] sm:$0xff] %vm272_vm0, %v1540_v24  ;;  %1093 = vst.msk [vmem:[#allocation3 + $0xd0] sm:$0xff] %vm272_vm0, %v1061_v5  ;;  %v1800_v10 = vld [vmem:[#allocation3 + $0x38] sm:$0xff]  ;;  %v1322_v21 = vld [vmem:[#allocation3 + $0xc8] sm:$0xff]  ;;  %v733_v47 = vadd.f32 %v701_v55, %v665_v28  ;;  %v702_v51 = vmul.f32 %v3747_v32, %v4171_v37  ;;  %v1673_v46 = vmul.f32 %v3980_v0, %v4066_v27 }
 0x117   : > { %914 = vst.msk [vmem:[#allocation3 + $0x60] sm:$0xff] %vm272_vm0, %v882_v8  ;;  %v1946_v4 = vld [vmem:[#allocation3 + $0xa8] sm:$0xff]  ;;  %v1868_v13 = vadd.f32 %v1836_v15, %v1800_v10  ;;  %v1390_v57 = vadd.f32 %v1358_v6, %v1322_v21  ;;  %v4185_v23 = vld [vmem:[#allocation2 + $0x168] sm:$0xff]  ;;  %1751 = vst.msk [vmem:[#allocation3 + $0xb8] sm:$0xff] %vm272_vm0, %v1719_v40  ;;  %v1194_v60 = vmul.f32 %v3909_v36, %v4121_v26 }
 0x118   : > { %v4183_v52 = vld [vmem:[#allocation2 + $0x152] sm:$0xff]  ;;  %2574 = vmatmul.mubr.msk.f32.gmra.mrb[4].mxu1 %vm272_vm0, %v1946_v4  ;;  %v4193_v41 = vld [vmem:[#allocation2 + $0xa9] sm:$0xff]  ;;  %765 = vst.msk [vmem:[#allocation3 + $0xe0] sm:$0xff] %vm272_vm0, %v733_v47  ;;  %587 = vst.msk [vmem:[#allocation3 + $0x78] sm:$0xff] %vm272_vm0, %v555_v62  ;;  %v1015_v15 = vmul.f32 %v3884_v43, %v4125_v19  ;;  %v570_v14 = vmul.f32 %v3758_v56, %v4185_v23  ;;  %v1852_v17 = vmul.f32 %v3972_v31, %v4064_v33 }
 0x119   : > { %v1143_v39 = vld [vmem:[#allocation3 + $0x58] sm:$0xff]  ;;  %v4195_v22 = vld [vmem:[#allocation2 + $0xb1] sm:$0xff]  ;;  %1900 = vst.msk [vmem:[#allocation3 + $0x38] sm:$0xff] %vm272_vm0, %v1868_v13  ;;  %1422 = vst.msk [vmem:[#allocation3 + $0xc8] sm:$0xff] %vm272_vm0, %v1390_v57  ;;  %v687_v24 = vmul.f32 %v3747_v32, %v4193_v41  ;;  %v866_v33 = vmul.f32 %v3849_v59, %v4183_v52  ;;  %v1837_v10 = vmul.f32 %v3972_v31, %v4113_v58 }
 0x11a   : > { %v1636_v53 = vld [vmem:[#allocation3 + $0x40] sm:$0xff]  ;;  %v1211_v50 = vadd.f32 %v1179_v12, %v1143_v39  ;;  %v815_v48 = vld [vmem:[#allocation3 + $0x68] sm:$0xff]  ;;  %v1815_v11 = vld [vmem:[#allocation3 + $0xb0] sm:$0xff]  ;;  %v688_v8 = vmul.f32 %v3747_v32, %v4195_v22  ;;  %602 = vst.msk [vmem:[#allocation3 + $0xf0] sm:$0xff] %vm272_vm0, %v570_v14  ;;  %v1688_v47 = vmul.f32 %v3980_v0, %v4121_v26  ;;  %v1344_v62 = vmul.f32 %v3901_v16, %v4155_v9 }
 0x11b   : > { %v1487_v63 = vld [vmem:[#allocation3 + $0xc0] sm:$0xff]  ;;  %v1704_v30 = vadd.f32 %v1672_v3, %v1636_v53  ;;  %v994_v34 = vld [vmem:[#allocation3 + $0xd8] sm:$0xff]  ;;  %v883_v44 = vadd.f32 %v851_v35, %v815_v48  ;;  %v1883_v27 = vadd.f32 %v1851_v1, %v1815_v11  ;;  %v1307_v55 = vld [vmem:[#allocation3 + $0x50] sm:$0xff]  ;;  %v1524_v3 = vmul.f32 %v3960_v29, %v4103_v54 }
 0x11c   : > { %v1555_v7 = vadd.f32 %v1523_v2, %v1487_v63  ;;  %1243 = vst.msk [vmem:[#allocation3 + $0x58] sm:$0xff] %vm272_vm0, %v1211_v50  ;;  %v1062_v25 = vadd.f32 %v1030_v38, %v994_v34  ;;  %v666_v49 = vld [vmem:[#allocation3 + $0xe8] sm:$0xff]  ;;  %v1931_v6 = vld [vmem:[#allocation3 + $0x30] sm:$0xff]  ;;  %v1375_v20 = vadd.f32 %v1343_v61, %v1307_v55  ;;  %v4229_v12 = vld [vmem:[#allocation2 + $0x170] sm:$0xff]  ;;  %v1016_v58 = vmul.f32 %v3884_v43, %v4159_v45 }
 0x11d   : > { %1736 = vst.msk [vmem:[#allocation3 + $0x40] sm:$0xff] %vm272_vm0, %v1704_v30  ;;  %v1637_v5 = vld [vmem:[#allocation3 + $0x48] sm:$0xff]  ;;  %v1158_v56 = vld [vmem:[#allocation3 + $0xd0] sm:$0xff]  ;;  %915 = vst.msk [vmem:[#allocation3 + $0x68] sm:$0xff] %vm272_vm0, %v883_v44  ;;  %v734_v42 = vadd.f32 %v702_v51, %v666_v49  ;;  %2552 = vmatprep.mubr.msk.f32.mxu0 %vm272_vm0, %v1931_v6  ;;  %v1195_v50 = vmul.f32 %v3909_v36, %v4171_v37  ;;  %v1509_v48 = vmul.f32 %v3960_v29, %v4125_v19 }
 0x11e   : > { %1587 = vst.msk [vmem:[#allocation3 + $0xc0] sm:$0xff] %vm272_vm0, %v1555_v7  ;;  %1915 = vst.msk [vmem:[#allocation3 + $0xb0] sm:$0xff] %vm272_vm0, %v1883_v27  ;;  %v1705_v18 = vadd.f32 %v1673_v46, %v1637_v5  ;;  %v1226_v2 = vadd.f32 %v1194_v60, %v1158_v56  ;;  %v979_v28 = vld [vmem:[#allocation3 + $0x60] sm:$0xff]  ;;  %v4233_v32 = vld [vmem:[#allocation2 + $0x15a] sm:$0xff]  ;;  %v1838_v14 = vmul.f32 %v3972_v31, %v4155_v9 }
 0x11f   : > { %1094 = vst.msk [vmem:[#allocation3 + $0xd8] sm:$0xff] %vm272_vm0, %v1062_v25  ;;  %1407 = vst.msk [vmem:[#allocation3 + $0x50] sm:$0xff] %vm272_vm0, %v1375_v20  ;;  %v4236_v40 = vld [vmem:[#allocation2 + $0x169] sm:$0xff]  ;;  %v1047_v21 = vadd.f32 %v1015_v15, %v979_v28  ;;  %v651_v35 = vld [vmem:[#allocation3 + $0x70] sm:$0xff]  ;;  %v867_v34 = vmul.f32 %v3849_v59, %v4233_v32  ;;  %v1180_v5 = vmul.f32 %v3909_v36, %v4193_v41 }
 0x120   : > { %766 = vst.msk [vmem:[#allocation3 + $0xe8] sm:$0xff] %vm272_vm0, %v734_v42  ;;  %v1816_v54 = vld [vmem:[#allocation3 + $0xb8] sm:$0xff]  ;;  %1737 = vst.msk [vmem:[#allocation3 + $0x48] sm:$0xff] %vm272_vm0, %v1705_v18  ;;  %v830_v4 = vld [vmem:[#allocation3 + $0xe0] sm:$0xff]  ;;  %v719_v13 = vadd.f32 %v687_v24, %v651_v35 }
 0x121   : > { %1258 = vst.msk [vmem:[#allocation3 + $0xd0] sm:$0xff] %vm272_vm0, %v1226_v2  ;;  %v652_v1 = vld [vmem:[#allocation3 + $0x78] sm:$0xff]  ;;  %v1884_v38 = vadd.f32 %v1852_v17, %v1816_v54  ;;  %v1488_v61 = vld [vmem:[#allocation3 + $0xc8] sm:$0xff]  ;;  %1079 = vst.msk [vmem:[#allocation3 + $0x60] sm:$0xff] %vm272_vm0, %v1047_v21  ;;  %v898_v39 = vadd.f32 %v866_v33, %v830_v4  ;;  %v1359_v17 = vmul.f32 %v3901_v16, %v4183_v52 }
 0x122   : > { %v1932_v57 = vld [vmem:[#allocation3 + $0x38] sm:$0xff]  ;;  %v720_v51 = vadd.f32 %v688_v8, %v652_v1  ;;  %v2698_v53 = vld [vmem:[#allocation7] ss:$0 sm:$0xff]  ;;  %v1556_v46 = vadd.f32 %v1524_v3, %v1488_v61  ;;  %751 = vst.msk [vmem:[#allocation3 + $0x70] sm:$0xff] %vm272_vm0, %v719_v13  ;;  %v2699_v60 = vld [vmem:[#allocation7 + $0x1] ss:$0 sm:$0xff] }
 0x123   : > { %v571_v26 = vmul.f32 %v2698_v53, %v4229_v12  ;;  %2553 = vmatmul.mubr.msk.f32.gmra.mrb[6].mxu0 %vm272_vm0, %v1932_v57  ;;  %v4250_v63 = vld [vmem:[#allocation2 + $0xaa] sm:$0xff]  ;;  %v703_v15 = vmul.f32 %v2699_v60, %v4236_v40  ;;  %1916 = vst.msk [vmem:[#allocation3 + $0xb8] sm:$0xff] %vm272_vm0, %v1884_v38  ;;  %v4259_v30 = vld [vmem:[#allocation2 + $0xb2] sm:$0xff]  ;;  %930 = vst.msk [vmem:[#allocation3 + $0xe0] sm:$0xff] %vm272_vm0, %v898_v39 }
 0x124   : > { %v1308_v11 = vld [vmem:[#allocation3 + $0x58] sm:$0xff]  ;;  %v4261_v7 = vld [vmem:[#allocation2 + $0x171] sm:$0xff]  ;;  %752 = vst.msk [vmem:[#allocation3 + $0x78] sm:$0xff] %vm272_vm0, %v720_v51  ;;  %1588 = vst.msk [vmem:[#allocation3 + $0xc8] sm:$0xff] %vm272_vm0, %v1556_v46  ;;  %v852_v8 = vmul.f32 %v3849_v59, %v4250_v63  ;;  %v853_v35 = vmul.f32 %v3849_v59, %v4259_v30  ;;  %v1853_v51 = vmul.f32 %v3972_v31, %v4183_v52 }
 0x125   : > { %603 = vst.msk [vmem:[#allocation3 + $0xf8] sm:$0xff] %vm272_vm0, %v571_v26  ;;  %v1801_v44 = vld [vmem:[#allocation3 + $0x40] sm:$0xff]  ;;  %v1376_v19 = vadd.f32 %v1344_v62, %v1308_v11  ;;  %v980_v55 = vld [vmem:[#allocation3 + $0x68] sm:$0xff]  ;;  %v1947_v25 = vld [vmem:[#allocation3 + $0xb0] sm:$0xff]  ;;  %v704_v4 = vmul.f32 %v2699_v60, %v4261_v7  ;;  %v1181_v26 = vmul.f32 %v3909_v36, %v4195_v22  ;;  %v1674_v52 = vmul.f32 %v3980_v0, %v4193_v41 }
 0x126   : > { %v1652_v27 = vld [vmem:[#allocation3 + $0xc0] sm:$0xff]  ;;  %v1869_v49 = vadd.f32 %v1837_v10, %v1801_v44  ;;  %v1159_v6 = vld [vmem:[#allocation3 + $0xd8] sm:$0xff]  ;;  %v1048_v20 = vadd.f32 %v1016_v58, %v980_v55  ;;  %v667_v56 = vld [vmem:[#allocation3 + $0xf0] sm:$0xff]  ;;  %2576 = vmatprep.mubr.msk.f32.mxu1 %vm272_vm0, %v1947_v25  ;;  %v1031_v10 = vmul.f32 %v3884_v43, %v4185_v23  ;;  %v1525_v41 = vmul.f32 %v3960_v29, %v4185_v23 }
 0x127   : > { %v1720_v24 = vadd.f32 %v1688_v47, %v1652_v27  ;;  %v1473_v9 = vld [vmem:[#allocation3 + $0x50] sm:$0xff]  ;;  %1408 = vst.msk [vmem:[#allocation3 + $0x58] sm:$0xff] %vm272_vm0, %v1376_v19  ;;  %v1227_v33 = vadd.f32 %v1195_v50, %v1159_v6  ;;  %v831_v42 = vld [vmem:[#allocation3 + $0xe8] sm:$0xff]  ;;  %v735_v18 = vadd.f32 %v703_v15, %v667_v56  ;;  %v1689_v47 = vmul.f32 %v3980_v0, %v4171_v37  ;;  %v4292_v13 = vld [vmem:[#allocation2 + $0x16a] sm:$0xff] }
 0x128   : > { %1901 = vst.msk [vmem:[#allocation3 + $0x40] sm:$0xff] %vm272_vm0, %v1869_v49  ;;  %v1802_v3 = vld [vmem:[#allocation3 + $0x48] sm:$0xff]  ;;  %v1541_v2 = vadd.f32 %v1509_v48, %v1473_v9  ;;  %v1323_v28 = vld [vmem:[#allocation3 + $0xd0] sm:$0xff]  ;;  %1080 = vst.msk [vmem:[#allocation3 + $0x68] sm:$0xff] %vm272_vm0, %v1048_v20  ;;  %v899_v21 = vadd.f32 %v867_v34, %v831_v42  ;;  %v1510_v37 = vmul.f32 %v3960_v29, %v4159_v45 }
 0x129   : > { %1752 = vst.msk [vmem:[#allocation3 + $0xc0] sm:$0xff] %vm272_vm0, %v1720_v24  ;;  %v1870_v54 = vadd.f32 %v1838_v14, %v1802_v3  ;;  %v1391_v62 = vadd.f32 %v1359_v17, %v1323_v28  ;;  %1259 = vst.msk [vmem:[#allocation3 + $0xd8] sm:$0xff] %vm272_vm0, %v1227_v33  ;;  %v1144_v58 = vld [vmem:[#allocation3 + $0x60] sm:$0xff]  ;;  %v816_v59 = vld [vmem:[#allocation3 + $0x70] sm:$0xff]  ;;  %v1360_v15 = vmul.f32 %v3901_v16, %v4233_v32 }
 0x12a   : > { %767 = vst.msk [vmem:[#allocation3 + $0xf0] sm:$0xff] %vm272_vm0, %v735_v18  ;;  %1573 = vst.msk [vmem:[#allocation3 + $0x50] sm:$0xff] %vm272_vm0, %v1541_v2  ;;  %v1212_v1 = vadd.f32 %v1180_v5, %v1144_v58  ;;  %v1948_v57 = vld [vmem:[#allocation3 + $0xb8] sm:$0xff]  ;;  %v995_v38 = vld [vmem:[#allocation3 + $0xe0] sm:$0xff]  ;;  %v884_v61 = vadd.f32 %v852_v8, %v816_v59  ;;  %v1032_v19 = vmul.f32 %v3884_v43, %v4229_v12 }
 0x12b   : > { %931 = vst.msk [vmem:[#allocation3 + $0xe8] sm:$0xff] %vm272_vm0, %v899_v21  ;;  %1902 = vst.msk [vmem:[#allocation3 + $0x48] sm:$0xff] %vm272_vm0, %v1870_v54  ;;  %v817_v39 = vld [vmem:[#allocation3 + $0x78] sm:$0xff]  ;;  %2577 = vmatmul.mubr.msk.f32.gmra.mrb[6].mxu1 %vm272_vm0, %v1948_v57  ;;  %v1653_v53 = vld [vmem:[#allocation3 + $0xc8] sm:$0xff]  ;;  %v1063_v46 = vadd.f32 %v1031_v10, %v995_v38  ;;  %v1345_v43 = vmul.f32 %v3901_v16, %v4250_v63  ;;  %v1196_v16 = vmul.f32 %v3909_v36, %v4236_v40 }
 0x12c   : > { %1423 = vst.msk [vmem:[#allocation3 + $0xd0] sm:$0xff] %vm272_vm0, %v1391_v62  ;;  %1244 = vst.msk [vmem:[#allocation3 + $0x60] sm:$0xff] %vm272_vm0, %v1212_v1  ;;  %v885_v50 = vadd.f32 %v853_v35, %v817_v39  ;;  %v668_v60 = vld [vmem:[#allocation3 + $0xf8] sm:$0xff]  ;;  %v1721_v45 = vadd.f32 %v1689_v47, %v1653_v53  ;;  %v2700_v48 = vld [vmem:[#allocation7 + $0x2] ss:$0 sm:$0xff]  ;;  %v1854_v35 = vmul.f32 %v3972_v31, %v4233_v32 }
 0x12d   : > { %916 = vst.msk [vmem:[#allocation3 + $0x70] sm:$0xff] %vm272_vm0, %v884_v61  ;;  %v868_v11 = vmul.f32 %v2700_v48, %v4292_v13  ;;  %v736_v34 = vadd.f32 %v704_v4, %v668_v60  ;;  %v4311_v14 = vld [vmem:[#allocation2 + $0xc0] sm:$0xff]  ;;  %v4313_v27 = vld [vmem:[#allocation2 + $0xc8] sm:$0xff]  ;;  %1095 = vst.msk [vmem:[#allocation3 + $0xe0] sm:$0xff] %vm272_vm0, %v1063_v46  ;;  %v1675_v1 = vmul.f32 %v3980_v0, %v4195_v22 }
 0x12e   : > { %v1474_v44 = vld [vmem:[#allocation3 + $0x58] sm:$0xff]  ;;  %917 = vst.msk [vmem:[#allocation3 + $0x78] sm:$0xff] %vm272_vm0, %v885_v50  ;;  %1753 = vst.msk [vmem:[#allocation3 + $0xc8] sm:$0xff] %vm272_vm0, %v1721_v45  ;;  %v4324_v5 = vld [vmem:[#allocation2 + $0x172] sm:$0xff]  ;;  %v1526_v22 = vmul.f32 %v3960_v29, %v4229_v12  ;;  %v1839_v60 = vmul.f32 %v3972_v31, %v4250_v63 }
 0x12f   : > { %v1933_v17 = vld [vmem:[#allocation3 + $0x40] sm:$0xff]  ;;  %v1542_v25 = vadd.f32 %v1510_v37, %v1474_v44  ;;  %v1145_v49 = vld [vmem:[#allocation3 + $0x68] sm:$0xff]  ;;  %768 = vst.msk [vmem:[#allocation3 + $0xf8] sm:$0xff] %vm272_vm0, %v736_v34  ;;  %v869_v62 = vmul.f32 %v2700_v48, %v4324_v5  ;;  %v4346_v58 = vld [vmem:[#allocation2 + $0x180] sm:$0xff] }
 0x130   : > { %v1817_v55 = vld [vmem:[#allocation3 + $0xc0] sm:$0xff]  ;;  %2555 = vmatprep.mubr.msk.f32.mxu0 %vm272_vm0, %v1933_v17  ;;  %v1324_v6 = vld [vmem:[#allocation3 + $0xd8] sm:$0xff]  ;;  %v1213_v20 = vadd.f32 %v1181_v26, %v1145_v49  ;;  %v1511_v17 = vmul.f32 %v3960_v29, %v4311_v14 }
 0x131   : > { %v1885_v24 = vadd.f32 %v1853_v51, %v1817_v55  ;;  %v832_v56 = vld [vmem:[#allocation3 + $0xf0] sm:$0xff]  ;;  %1574 = vst.msk [vmem:[#allocation3 + $0x58] sm:$0xff] %vm272_vm0, %v1542_v25  ;;  %v1392_v33 = vadd.f32 %v1360_v15, %v1324_v6  ;;  %v4329_v23 = vld [vmem:[#allocation7 + $0x3] ss:$0 sm:$0xff]  ;;  %v4353_v38 = vld [vmem:[#allocation7 + $0x5] ss:$0 sm:$0xff] }
 0x132   : > { %v1638_v9 = vld [vmem:[#allocation3 + $0x50] sm:$0xff]  ;;  %v996_v42 = vld [vmem:[#allocation3 + $0xe8] sm:$0xff]  ;;  %v1017_v8 = vmul.f32 %v4329_v23, %v4311_v14  ;;  %v900_v18 = vadd.f32 %v868_v11, %v832_v56  ;;  %1245 = vst.msk [vmem:[#allocation3 + $0x68] sm:$0xff] %vm272_vm0, %v1213_v20  ;;  %v1018_v21 = vmul.f32 %v4329_v23, %v4313_v27  ;;  %v1346_v61 = vmul.f32 %v4353_v38, %v4259_v30  ;;  %v4367_v48 = vld [vmem:[#allocation7 + $0x4] ss:$0 sm:$0xff] }
 0x133   : > { %v1934_v3 = vld [vmem:[#allocation3 + $0x48] sm:$0xff]  ;;  %1917 = vst.msk [vmem:[#allocation3 + $0xc0] sm:$0xff] %vm272_vm0, %v1885_v24  ;;  %v1706_v2 = vadd.f32 %v1674_v52, %v1638_v9  ;;  %v1489_v28 = vld [vmem:[#allocation3 + $0xd0] sm:$0xff]  ;;  %v1064_v10 = vadd.f32 %v1032_v19, %v996_v42  ;;  %1424 = vst.msk [vmem:[#allocation3 + $0xd8] sm:$0xff] %vm272_vm0, %v1392_v33  ;;  %v1033_v46 = vmul.f32 %v4329_v23, %v4346_v58 }
 0x134   : > { %2556 = vmatmul.mubr.msk.f32.gmra.mrb[8].mxu0 %vm272_vm0, %v1934_v3  ;;  %v1557_v54 = vadd.f32 %v1525_v41, %v1489_v28  ;;  %v1309_v47 = vld [vmem:[#allocation3 + $0x60] sm:$0xff]  ;;  %932 = vst.msk [vmem:[#allocation3 + $0xf0] sm:$0xff] %vm272_vm0, %v900_v18  ;;  %v981_v4 = vld [vmem:[#allocation3 + $0x70] sm:$0xff]  ;;  %v1197_v11 = vmul.f32 %v4367_v48, %v4261_v7  ;;  %v1690_v52 = vmul.f32 %v3980_v0, %v4236_v40  ;;  %v4381_v25 = vld [vmem:[#allocation2 + $0x188] sm:$0xff] }
 0x135   : > { %1738 = vst.msk [vmem:[#allocation3 + $0x50] sm:$0xff] %vm272_vm0, %v1706_v2  ;;  %v1377_v36 = vadd.f32 %v1345_v43, %v1309_v47  ;;  %1096 = vst.msk [vmem:[#allocation3 + $0xe8] sm:$0xff] %vm272_vm0, %v1064_v10  ;;  %v1160_v32 = vld [vmem:[#allocation3 + $0xe0] sm:$0xff]  ;;  %v1049_v59 = vadd.f32 %v1017_v8, %v981_v4  ;;  %v982_v57 = vld [vmem:[#allocation3 + $0x78] sm:$0xff]  ;;  %v1361_v29 = vmul.f32 %v4353_v38, %v4292_v13 }
 0x136   : > { %1589 = vst.msk [vmem:[#allocation3 + $0xd0] sm:$0xff] %vm272_vm0, %v1557_v54  ;;  %v1818_v37 = vld [vmem:[#allocation3 + $0xc8] sm:$0xff]  ;;  %v1228_v39 = vadd.f32 %v1196_v16, %v1160_v32  ;;  %v1050_v51 = vadd.f32 %v1018_v21, %v982_v57  ;;  %v833_v53 = vld [vmem:[#allocation3 + $0xf8] sm:$0xff]  ;;  %v1034_v8 = vmul.f32 %v4329_v23, %v4381_v25  ;;  %v1840_v28 = vmul.f32 %v3972_v31, %v4259_v30  ;;  %v4403_v23 = vld [vmem:[#allocation7 + $0x6] ss:$0 sm:$0xff] }
 0x137   : > { %1409 = vst.msk [vmem:[#allocation3 + $0x60] sm:$0xff] %vm272_vm0, %v1377_v36  ;;  %v1886_v26 = vadd.f32 %v1854_v35, %v1818_v37  ;;  %1081 = vst.msk [vmem:[#allocation3 + $0x70] sm:$0xff] %vm272_vm0, %v1049_v59  ;;  %v901_v50 = vadd.f32 %v869_v62, %v833_v53  ;;  %v4364_v15 = vld [vmem:[#allocation2 + $0xc1] sm:$0xff]  ;;  %v4375_v44 = vld [vmem:[#allocation2 + $0xc9] sm:$0xff]  ;;  %v1512_v54 = vmul.f32 %v4403_v23, %v4313_v27 }
 0x138   : > { %v1639_v45 = vld [vmem:[#allocation3 + $0x58] sm:$0xff]  ;;  %1260 = vst.msk [vmem:[#allocation3 + $0xe0] sm:$0xff] %vm272_vm0, %v1228_v39  ;;  %1082 = vst.msk [vmem:[#allocation3 + $0x78] sm:$0xff] %vm272_vm0, %v1050_v51  ;;  %v1182_v6 = vmul.f32 %v4367_v48, %v4364_v15  ;;  %v1183_v9 = vmul.f32 %v4367_v48, %v4375_v44  ;;  %v1691_v31 = vmul.f32 %v3980_v0, %v4261_v7  ;;  %v4417_v57 = vld [vmem:[#allocation7 + $0x8] ss:$0 sm:$0xff] }
 0x139   : > { %1918 = vst.msk [vmem:[#allocation3 + $0xc8] sm:$0xff] %vm272_vm0, %v1886_v26  ;;  %v1707_v34 = vadd.f32 %v1675_v1, %v1639_v45  ;;  %v1310_v63 = vld [vmem:[#allocation3 + $0x68] sm:$0xff]  ;;  %933 = vst.msk [vmem:[#allocation3 + $0xf8] sm:$0xff] %vm272_vm0, %v901_v50  ;;  %v4396_v3 = vld [vmem:[#allocation2 + $0x181] sm:$0xff]  ;;  %v1362_v27 = vmul.f32 %v4353_v38, %v4324_v5  ;;  %v1855_v0 = vmul.f32 %v4417_v57, %v4292_v13 }
 0x13a   : > { %v1949_v12 = vld [vmem:[#allocation3 + $0xc0] sm:$0xff]  ;;  %v1490_v19 = vld [vmem:[#allocation3 + $0xd8] sm:$0xff]  ;;  %v1378_v55 = vadd.f32 %v1346_v61, %v1310_v63  ;;  %v1198_v30 = vmul.f32 %v4367_v48, %v4396_v3 }
 0x13b   : > { %2579 = vmatprep.mubr.msk.f32.mxu1 %vm272_vm0, %v1949_v12  ;;  %v997_v41 = vld [vmem:[#allocation3 + $0xf0] sm:$0xff]  ;;  %1739 = vst.msk [vmem:[#allocation3 + $0x58] sm:$0xff] %vm272_vm0, %v1707_v34  ;;  %v1558_v24 = vadd.f32 %v1526_v22, %v1490_v19  ;;  %v4421_v37 = vld [vmem:[#allocation2 + $0xca] sm:$0xff]  ;;  %v4424_v39 = vld [vmem:[#allocation7 + $0x7] ss:$0 sm:$0xff] }
 0x13c   : > { %v1803_v49 = vld [vmem:[#allocation3 + $0x50] sm:$0xff]  ;;  %v1161_v40 = vld [vmem:[#allocation3 + $0xe8] sm:$0xff]  ;;  %v1065_v43 = vadd.f32 %v1033_v46, %v997_v41  ;;  %1410 = vst.msk [vmem:[#allocation3 + $0x68] sm:$0xff] %vm272_vm0, %v1378_v55  ;;  %v1676_v51 = vmul.f32 %v4424_v39, %v4364_v15  ;;  %v4428_v26 = vld [vmem:[#allocation2 + $0x189] sm:$0xff]  ;;  %v1527_v15 = vmul.f32 %v4403_v23, %v4346_v58  ;;  %v1348_v34 = vmul.f32 %v4353_v38, %v4421_v37 }
 0x13d   : > { %v1871_v20 = vadd.f32 %v1839_v60, %v1803_v49  ;;  %v1654_v56 = vld [vmem:[#allocation3 + $0xd0] sm:$0xff]  ;;  %v1229_v14 = vadd.f32 %v1197_v11, %v1161_v40  ;;  %1590 = vst.msk [vmem:[#allocation3 + $0xd8] sm:$0xff] %vm272_vm0, %v1558_v24  ;;  %v1199_v19 = vmul.f32 %v4367_v48, %v4428_v26  ;;  %v1677_v40 = vmul.f32 %v4424_v39, %v4375_v44 }
 0x13e   : > { %v1722_v33 = vadd.f32 %v1690_v52, %v1654_v56  ;;  %v1475_v42 = vld [vmem:[#allocation3 + $0x60] sm:$0xff]  ;;  %1097 = vst.msk [vmem:[#allocation3 + $0xf0] sm:$0xff] %vm272_vm0, %v1065_v43  ;;  %v1146_v2 = vld [vmem:[#allocation3 + $0x70] sm:$0xff]  ;;  %v1856_v48 = vmul.f32 %v4417_v57, %v4324_v5 }
 0x13f   : > { %1903 = vst.msk [vmem:[#allocation3 + $0x50] sm:$0xff] %vm272_vm0, %v1871_v20  ;;  %v1543_v18 = vadd.f32 %v1511_v17, %v1475_v42  ;;  %1261 = vst.msk [vmem:[#allocation3 + $0xe8] sm:$0xff] %vm272_vm0, %v1229_v14  ;;  %v1325_v16 = vld [vmem:[#allocation3 + $0xe0] sm:$0xff]  ;;  %v1214_v10 = vadd.f32 %v1182_v6, %v1146_v2  ;;  %v1147_v21 = vld [vmem:[#allocation3 + $0x78] sm:$0xff] }
 0x140   : > { %1754 = vst.msk [vmem:[#allocation3 + $0xd0] sm:$0xff] %vm272_vm0, %v1722_v33  ;;  %v1950_v35 = vld [vmem:[#allocation3 + $0xc8] sm:$0xff]  ;;  %v1393_v47 = vadd.f32 %v1361_v29, %v1325_v16  ;;  %v1215_v62 = vadd.f32 %v1183_v9, %v1147_v21  ;;  %v998_v36 = vld [vmem:[#allocation3 + $0xf8] sm:$0xff]  ;;  %v1528_v9 = vmul.f32 %v4403_v23, %v4381_v25  ;;  %v1445_v42 = vld [vmem:[#allocation2 + $0xe0] sm:$0xff] }
 0x141   : > { %1575 = vst.msk [vmem:[#allocation3 + $0x60] sm:$0xff] %vm272_vm0, %v1543_v18  ;;  %2580 = vmatmul.mubr.msk.f32.gmra.mrb[8].mxu1 %vm272_vm0, %v1950_v35  ;;  %1246 = vst.msk [vmem:[#allocation3 + $0x70] sm:$0xff] %vm272_vm0, %v1214_v10  ;;  %v1066_v4 = vadd.f32 %v1034_v8, %v998_v36  ;;  %v1772_v32 = vld [vmem:[#allocation2 + $0xc2] sm:$0xff]  ;;  %v1444_v33 = vld [vmem:[#allocation2 + $0xd8] sm:$0xff] }
 0x142   : > { %v1804_v1 = vld [vmem:[#allocation3 + $0x58] sm:$0xff]  ;;  %1425 = vst.msk [vmem:[#allocation3 + $0xe0] sm:$0xff] %vm272_vm0, %v1393_v47  ;;  %1247 = vst.msk [vmem:[#allocation3 + $0x78] sm:$0xff] %vm272_vm0, %v1215_v62  ;;  %v1347_v60 = vmul.f32 %v4353_v38, %v1772_v32  ;;  %v1841_v8 = vmul.f32 %v4417_v57, %v1772_v32  ;;  %v1513_v25 = vmul.f32 %v4403_v23, %v1444_v33 }
 0x143   : > { %v1872_v59 = vadd.f32 %v1840_v28, %v1804_v1  ;;  %v1476_v7 = vld [vmem:[#allocation3 + $0x68] sm:$0xff]  ;;  %1098 = vst.msk [vmem:[#allocation3 + $0xf8] sm:$0xff] %vm272_vm0, %v1066_v4  ;;  %v4442_v55 = vld [vmem:[#allocation2 + $0x182] sm:$0xff]  ;;  %v4461_v2 = vld [vmem:[#allocation2 + $0x18a] sm:$0xff]  ;;  %v1514_v62 = vmul.f32 %v4403_v23, %v1445_v42 }
 0x144   : > { %v1655_v61 = vld [vmem:[#allocation3 + $0xd8] sm:$0xff]  ;;  %v1544_v53 = vadd.f32 %v1512_v54, %v1476_v7  ;;  %v1363_v56 = vmul.f32 %v4353_v38, %v4442_v55  ;;  %v1692_v54 = vmul.f32 %v4424_v39, %v4396_v3  ;;  %v1460_v1 = vld [vmem:[#allocation2 + $0x198] sm:$0xff] }
 0x145   : > { %v1162_v22 = vld [vmem:[#allocation3 + $0xf0] sm:$0xff]  ;;  %1904 = vst.msk [vmem:[#allocation3 + $0x58] sm:$0xff] %vm272_vm0, %v1872_v59  ;;  %v1723_v50 = vadd.f32 %v1691_v31, %v1655_v61  ;;  %v1364_v31 = vmul.f32 %v4353_v38, %v4461_v2  ;;  %v1842_v59 = vmul.f32 %v4417_v57, %v4421_v37  ;;  %v1529_v38 = vmul.f32 %v4403_v23, %v1460_v1 }
 0x146   : > { %v1935_v46 = vld [vmem:[#allocation3 + $0x50] sm:$0xff]  ;;  %v1326_v13 = vld [vmem:[#allocation3 + $0xe8] sm:$0xff]  ;;  %v1230_v45 = vadd.f32 %v1198_v30, %v1162_v22  ;;  %1576 = vst.msk [vmem:[#allocation3 + $0x68] sm:$0xff] %vm272_vm0, %v1544_v53  ;;  %v1693_v53 = vmul.f32 %v4424_v39, %v4428_v26  ;;  %v1857_v26 = vmul.f32 %v4417_v57, %v4442_v55 }
 0x147   : > { %2558 = vmatprep.mubr.msk.f32.mxu0 %vm272_vm0, %v1935_v46  ;;  %v1819_v11 = vld [vmem:[#allocation3 + $0xd0] sm:$0xff]  ;;  %v1394_v12 = vadd.f32 %v1362_v27, %v1326_v13  ;;  %1755 = vst.msk [vmem:[#allocation3 + $0xd8] sm:$0xff] %vm272_vm0, %v1723_v50 }
 0x148   : > { %v1887_v52 = vadd.f32 %v1855_v0, %v1819_v11  ;;  %v1640_v63 = vld [vmem:[#allocation3 + $0x60] sm:$0xff]  ;;  %1262 = vst.msk [vmem:[#allocation3 + $0xf0] sm:$0xff] %vm272_vm0, %v1230_v45  ;;  %v1311_v41 = vld [vmem:[#allocation3 + $0x70] sm:$0xff] }
 0x149   : > { %v1708_v17 = vadd.f32 %v1676_v51, %v1640_v63  ;;  %1426 = vst.msk [vmem:[#allocation3 + $0xe8] sm:$0xff] %vm272_vm0, %v1394_v12  ;;  %v1491_v58 = vld [vmem:[#allocation3 + $0xe0] sm:$0xff]  ;;  %v1379_v49 = vadd.f32 %v1347_v60, %v1311_v41  ;;  %v1312_v24 = vld [vmem:[#allocation3 + $0x78] sm:$0xff]  ;;  %v1609_v22 = vld [vmem:[#allocation2 + $0xd9] sm:$0xff] }
 0x14a   : > { %1919 = vst.msk [vmem:[#allocation3 + $0xd0] sm:$0xff] %vm272_vm0, %v1887_v52  ;;  %v1559_v6 = vadd.f32 %v1527_v15, %v1491_v58  ;;  %v1380_v43 = vadd.f32 %v1348_v34, %v1312_v24  ;;  %v1163_v20 = vld [vmem:[#allocation3 + $0xf8] sm:$0xff]  ;;  %v1461_v45 = vld [vmem:[#allocation2 + $0x1a0] sm:$0xff]  ;;  %v1678_v15 = vmul.f32 %v4424_v39, %v1609_v22 }
 0x14b   : > { %1740 = vst.msk [vmem:[#allocation3 + $0x60] sm:$0xff] %vm272_vm0, %v1708_v17  ;;  %1411 = vst.msk [vmem:[#allocation3 + $0x70] sm:$0xff] %vm272_vm0, %v1379_v49  ;;  %v1231_v29 = vadd.f32 %v1199_v19, %v1163_v20  ;;  %v1610_v50 = vld [vmem:[#allocation2 + $0xe1] sm:$0xff]  ;;  %v1530_v19 = vmul.f32 %v4403_v23, %v1461_v45  ;;  %v1625_v41 = vld [vmem:[#allocation2 + $0x199] sm:$0xff]  ;;  %v1858_v23 = vmul.f32 %v4417_v57, %v4461_v2 }
 0x14c   : > { %v1936_v14 = vld [vmem:[#allocation3 + $0x58] sm:$0xff]  ;;  %1591 = vst.msk [vmem:[#allocation3 + $0xe0] sm:$0xff] %vm272_vm0, %v1559_v6  ;;  %1412 = vst.msk [vmem:[#allocation3 + $0x78] sm:$0xff] %vm272_vm0, %v1380_v43  ;;  %v1679_v52 = vmul.f32 %v4424_v39, %v1610_v50  ;;  %v1694_v43 = vmul.f32 %v4424_v39, %v1625_v41 }
 0x14d   : > { %2559 = vmatmul.mubr.msk.f32.gmra.mrb[10].mxu0 %vm272_vm0, %v1936_v14  ;;  %v1641_v44 = vld [vmem:[#allocation3 + $0x68] sm:$0xff]  ;;  %1263 = vst.msk [vmem:[#allocation3 + $0xf8] sm:$0xff] %vm272_vm0, %v1231_v29  ;;  %v1775_v29 = vld [vmem:[#allocation2 + $0xe2] sm:$0xff] }
 0x14e   : > { %v1820_v5 = vld [vmem:[#allocation3 + $0xd8] sm:$0xff]  ;;  %v1709_v18 = vadd.f32 %v1677_v40, %v1641_v44 }
 0x14f   : > { %v1327_v28 = vld [vmem:[#allocation3 + $0xf0] sm:$0xff]  ;;  %v1888_v16 = vadd.f32 %v1856_v48, %v1820_v5 }
 0x150   : > { %v1492_v10 = vld [vmem:[#allocation3 + $0xe8] sm:$0xff]  ;;  %v1395_v21 = vadd.f32 %v1363_v56, %v1327_v28  ;;  %1741 = vst.msk [vmem:[#allocation3 + $0x68] sm:$0xff] %vm272_vm0, %v1709_v18 }
 0x151   : > { %v1951_v35 = vld [vmem:[#allocation3 + $0xd0] sm:$0xff]  ;;  %v1560_v47 = vadd.f32 %v1528_v9, %v1492_v10  ;;  %1920 = vst.msk [vmem:[#allocation3 + $0xd8] sm:$0xff] %vm272_vm0, %v1888_v16 }
 0x152   : > { %2582 = vmatprep.mubr.msk.f32.mxu1 %vm272_vm0, %v1951_v35  ;;  %v1805_v36 = vld [vmem:[#allocation3 + $0x60] sm:$0xff]  ;;  %1427 = vst.msk [vmem:[#allocation3 + $0xf0] sm:$0xff] %vm272_vm0, %v1395_v21  ;;  %v1477_v4 = vld [vmem:[#allocation3 + $0x70] sm:$0xff] }
 0x153   : > { %v1873_v30 = vadd.f32 %v1841_v8, %v1805_v36  ;;  %1592 = vst.msk [vmem:[#allocation3 + $0xe8] sm:$0xff] %vm272_vm0, %v1560_v47  ;;  %v1656_v32 = vld [vmem:[#allocation3 + $0xe0] sm:$0xff]  ;;  %v1545_v3 = vadd.f32 %v1513_v25, %v1477_v4  ;;  %v1478_v27 = vld [vmem:[#allocation3 + $0x78] sm:$0xff]  ;;  %v1774_v48 = vld [vmem:[#allocation2 + $0xda] sm:$0xff]  ;;  %v1844_v8 = vmul.f32 %v4417_v57, %v1775_v29 }
 0x154   : > { %v1724_v0 = vadd.f32 %v1692_v54, %v1656_v32  ;;  %v1546_v7 = vadd.f32 %v1514_v62, %v1478_v27  ;;  %v1328_v61 = vld [vmem:[#allocation3 + $0xf8] sm:$0xff]  ;;  %v1843_v44 = vmul.f32 %v4417_v57, %v1774_v48  ;;  %v1790_v28 = vld [vmem:[#allocation2 + $0x19a] sm:$0xff] }
 0x155   : > { %1905 = vst.msk [vmem:[#allocation3 + $0x60] sm:$0xff] %vm272_vm0, %v1873_v30  ;;  %1577 = vst.msk [vmem:[#allocation3 + $0x70] sm:$0xff] %vm272_vm0, %v1545_v3  ;;  %v1396_v51 = vadd.f32 %v1364_v31, %v1328_v61  ;;  %v1626_v9 = vld [vmem:[#allocation2 + $0x1a1] sm:$0xff]  ;;  %v1859_v54 = vmul.f32 %v4417_v57, %v1790_v28 }
 0x156   : > { %1756 = vst.msk [vmem:[#allocation3 + $0xe0] sm:$0xff] %vm272_vm0, %v1724_v0  ;;  %1578 = vst.msk [vmem:[#allocation3 + $0x78] sm:$0xff] %vm272_vm0, %v1546_v7  ;;  %v1695_v18 = vmul.f32 %v4424_v39, %v1626_v9  ;;  %v1791_v62 = vld [vmem:[#allocation2 + $0x1a2] sm:$0xff] }
 0x157   : > { %v1806_v46 = vld [vmem:[#allocation3 + $0x68] sm:$0xff]  ;;  %1428 = vst.msk [vmem:[#allocation3 + $0xf8] sm:$0xff] %vm272_vm0, %v1396_v51  ;;  %v1860_v30 = vmul.f32 %v4417_v57, %v1791_v62 }
 0x158   : > { %v1952_v37 = vld [vmem:[#allocation3 + $0xd8] sm:$0xff]  ;;  %v1874_v13 = vadd.f32 %v1842_v59, %v1806_v46 }
 0x159   : > { %v1493_v60 = vld [vmem:[#allocation3 + $0xf0] sm:$0xff]  ;;  %2583 = vmatmul.mubr.msk.f32.gmra.mrb[10].mxu1 %vm272_vm0, %v1952_v37 }
 0x15a   : > { %v1657_v11 = vld [vmem:[#allocation3 + $0xe8] sm:$0xff]  ;;  %v1561_v12 = vadd.f32 %v1529_v38, %v1493_v60  ;;  %1906 = vst.msk [vmem:[#allocation3 + $0x68] sm:$0xff] %vm272_vm0, %v1874_v13 }
 0x15b   : > { %v1725_v34 = vadd.f32 %v1693_v53, %v1657_v11 }
 0x15c   : > { %v1937_v63 = vld [vmem:[#allocation3 + $0x60] sm:$0xff]  ;;  %1593 = vst.msk [vmem:[#allocation3 + $0xf0] sm:$0xff] %vm272_vm0, %v1561_v12  ;;  %v1642_v17 = vld [vmem:[#allocation3 + $0x70] sm:$0xff] }
 0x15d   : > { %2561 = vmatprep.mubr.msk.f32.mxu0 %vm272_vm0, %v1937_v63  ;;  %1757 = vst.msk [vmem:[#allocation3 + $0xe8] sm:$0xff] %vm272_vm0, %v1725_v34  ;;  %v1821_v58 = vld [vmem:[#allocation3 + $0xe0] sm:$0xff]  ;;  %v1710_v49 = vadd.f32 %v1678_v15, %v1642_v17  ;;  %v1643_v24 = vld [vmem:[#allocation3 + $0x78] sm:$0xff] }
 0x15e   : > { %v1889_v40 = vadd.f32 %v1857_v26, %v1821_v58  ;;  %v1711_v6 = vadd.f32 %v1679_v52, %v1643_v24  ;;  %v1494_v55 = vld [vmem:[#allocation3 + $0xf8] sm:$0xff] }
 0x15f   : > { %1742 = vst.msk [vmem:[#allocation3 + $0x70] sm:$0xff] %vm272_vm0, %v1710_v49  ;;  %v1562_v20 = vadd.f32 %v1530_v19, %v1494_v55 }
 0x160   : > { %1921 = vst.msk [vmem:[#allocation3 + $0xe0] sm:$0xff] %vm272_vm0, %v1889_v40  ;;  %1743 = vst.msk [vmem:[#allocation3 + $0x78] sm:$0xff] %vm272_vm0, %v1711_v6 }
 0x161   : > { %v1938_v56 = vld [vmem:[#allocation3 + $0x68] sm:$0xff]  ;;  %1594 = vst.msk [vmem:[#allocation3 + $0xf8] sm:$0xff] %vm272_vm0, %v1562_v20 }
 0x162   : > { %2562 = vmatmul.mubr.msk.f32.gmra.mrb[12].mxu0 %vm272_vm0, %v1938_v56 }
 0x163   : > { %v1658_v14 = vld [vmem:[#allocation3 + $0xf0] sm:$0xff] }
 0x164   : > { %v1822_v33 = vld [vmem:[#allocation3 + $0xe8] sm:$0xff]  ;;  %v1726_v42 = vadd.f32 %v1694_v43, %v1658_v14 }
 0x165   : > { %v1890_v5 = vadd.f32 %v1858_v23, %v1822_v33 }
 0x166   : > { %1758 = vst.msk [vmem:[#allocation3 + $0xf0] sm:$0xff] %vm272_vm0, %v1726_v42  ;;  %v1807_v2 = vld [vmem:[#allocation3 + $0x70] sm:$0xff] }
 0x167   : > { %1922 = vst.msk [vmem:[#allocation3 + $0xe8] sm:$0xff] %vm272_vm0, %v1890_v5  ;;  %v1953_v16 = vld [vmem:[#allocation3 + $0xe0] sm:$0xff]  ;;  %v1875_v10 = vadd.f32 %v1843_v44, %v1807_v2  ;;  %v1808_v25 = vld [vmem:[#allocation3 + $0x78] sm:$0xff] }
 0x168   : > { %2585 = vmatprep.mubr.msk.f32.mxu1 %vm272_vm0, %v1953_v16  ;;  %v1876_v21 = vadd.f32 %v1844_v8, %v1808_v25  ;;  %v1659_v35 = vld [vmem:[#allocation3 + $0xf8] sm:$0xff] }
 0x169   : > { %1907 = vst.msk [vmem:[#allocation3 + $0x70] sm:$0xff] %vm272_vm0, %v1875_v10  ;;  %v1727_v47 = vadd.f32 %v1695_v18, %v1659_v35 }
 0x16a   : > { %1908 = vst.msk [vmem:[#allocation3 + $0x78] sm:$0xff] %vm272_vm0, %v1876_v21 }
 0x16b   : > { %1759 = vst.msk [vmem:[#allocation3 + $0xf8] sm:$0xff] %vm272_vm0, %v1727_v47 }
 0x16d   : > { %v1823_v39 = vld [vmem:[#allocation3 + $0xf0] sm:$0xff] }
 0x16e   : > { %v1954_v36 = vld [vmem:[#allocation3 + $0xe8] sm:$0xff]  ;;  %v1891_v31 = vadd.f32 %v1859_v54, %v1823_v39 }
 0x16f   : > { %2586 = vmatmul.mubr.msk.f32.gmra.mrb[12].mxu1 %vm272_vm0, %v1954_v36 }
 0x170   : > { %1923 = vst.msk [vmem:[#allocation3 + $0xf0] sm:$0xff] %vm272_vm0, %v1891_v31  ;;  %v1939_v4 = vld [vmem:[#allocation3 + $0x70] sm:$0xff] }
 0x171   : > { %2564 = vmatprep.mubr.msk.f32.mxu0 %vm272_vm0, %v1939_v4  ;;  %v1940_v1 = vld [vmem:[#allocation3 + $0x78] sm:$0xff] }
 0x172   : > { %2565 = vmatmul.mubr.msk.f32.gmra.mrb[14].mxu0 %vm272_vm0, %v1940_v1  ;;  %v1824_v32 = vld [vmem:[#allocation3 + $0xf8] sm:$0xff] }
 0x173   : > { %v1892_v3 = vadd.f32 %v1860_v30, %v1824_v32 }
 0x175   : > { %1924 = vst.msk [vmem:[#allocation3 + $0xf8] sm:$0xff] %vm272_vm0, %v1892_v3 }
 0x177   : > { %v1955_v27 = vld [vmem:[#allocation3 + $0xf0] sm:$0xff] }
 0x178   : > { %2588 = vmatprep.mubr.msk.f32.mxu1 %vm272_vm0, %v1955_v27 }
 0x17c   : > { %v1956_v59 = vld [vmem:[#allocation3 + $0xf8] sm:$0xff] }
 0x17d   : > { %2589 = vmatmul.mubr.msk.f32.gmra.mrb[14].mxu1 %vm272_vm0, %v1956_v59 }
 0x1bf   : > { %v2545_v0 = vpop.f32.mrb[0].mxu0 }
 0x1c0   : > { %2287 = vst.msk [vmem:[%s4522_s30 + $0x8] sm:$0xff] %vm272_vm0, %v2545_v0  ;;  %v2127_v57 = vpop.f32.mrb[1].mxu0 }
 0x1c1   : > { %2286 = vst.msk [vmem:[%s4522_s30] sm:$0xff] %vm272_vm0, %v2127_v57 }
 0x1cf   : > { %v2548_v7 = vpop.f32.mrb[2].mxu0 }
 0x1d0   : > { %2289 = vst.msk [vmem:[%s4522_s30 + $0x18] sm:$0xff] %vm272_vm0, %v2548_v7  ;;  %v2137_v61 = vpop.f32.mrb[3].mxu0 }
 0x1d1   : > { %2288 = vst.msk [vmem:[%s4522_s30 + $0x10] sm:$0xff] %vm272_vm0, %v2137_v61 }
 0x1d5   : > { %v2569_v38 = vpop.f32.mrb[0].mxu1 }
 0x1d6   : > { %2303 = vst.msk [vmem:[%s4522_s30 + $0x88] sm:$0xff] %vm272_vm0, %v2569_v38  ;;  %v2207_v51 = vpop.f32.mrb[1].mxu1 }
 0x1d7   : > { %2302 = vst.msk [vmem:[%s4522_s30 + $0x80] sm:$0xff] %vm272_vm0, %v2207_v51 }
 0x1df   : > { %v2572_v53 = vpop.f32.mrb[2].mxu1 }
 0x1e0   : > { %2305 = vst.msk [vmem:[%s4522_s30 + $0x98] sm:$0xff] %vm272_vm0, %v2572_v53  ;;  %v2217_v22 = vpop.f32.mrb[3].mxu1 }
 0x1e1   : > { %2304 = vst.msk [vmem:[%s4522_s30 + $0x90] sm:$0xff] %vm272_vm0, %v2217_v22 }
 0x1e4   : > { %v2551_v46 = vpop.f32.mrb[4].mxu0 }
 0x1e5   : > { %2291 = vst.msk [vmem:[%s4522_s30 + $0x28] sm:$0xff] %vm272_vm0, %v2551_v46  ;;  %v2147_v50 = vpop.f32.mrb[5].mxu0 }
 0x1e6   : > { %2290 = vst.msk [vmem:[%s4522_s30 + $0x20] sm:$0xff] %vm272_vm0, %v2147_v50 }
 0x1eb   : > { %v2575_v37 = vpop.f32.mrb[4].mxu1 }
 0x1ec   : > { %2307 = vst.msk [vmem:[%s4522_s30 + $0xa8] sm:$0xff] %vm272_vm0, %v2575_v37  ;;  %v2227_v13 = vpop.f32.mrb[5].mxu1 }
 0x1ed   : > { %2306 = vst.msk [vmem:[%s4522_s30 + $0xa0] sm:$0xff] %vm272_vm0, %v2227_v13 }
 0x1f6   : > { %v2554_v60 = vpop.f32.mrb[6].mxu0 }
 0x1f7   : > { %2293 = vst.msk [vmem:[%s4522_s30 + $0x38] sm:$0xff] %vm272_vm0, %v2554_v60  ;;  %v2157_v45 = vpop.f32.mrb[7].mxu0 }
 0x1f8   : > { %2292 = vst.msk [vmem:[%s4522_s30 + $0x30] sm:$0xff] %vm272_vm0, %v2157_v45 }
 0x1fe   : > { %v2578_v11 = vpop.f32.mrb[6].mxu1 }
 0x1ff   : > { %2309 = vst.msk [vmem:[%s4522_s30 + $0xb8] sm:$0xff] %vm272_vm0, %v2578_v11  ;;  %v2237_v15 = vpop.f32.mrb[7].mxu1 }
 0x200   : > { %2308 = vst.msk [vmem:[%s4522_s30 + $0xb0] sm:$0xff] %vm272_vm0, %v2237_v15 }
 0x207   : > { %v2557_v12 = vpop.f32.mrb[8].mxu0 }
 0x208   : > { %2295 = vst.msk [vmem:[%s4522_s30 + $0x48] sm:$0xff] %vm272_vm0, %v2557_v12  ;;  %v2167_v26 = vpop.f32.mrb[9].mxu0 }
 0x209   : > { %2294 = vst.msk [vmem:[%s4522_s30 + $0x40] sm:$0xff] %vm272_vm0, %v2167_v26 }
 0x214   : > { %v2581_v34 = vpop.f32.mrb[8].mxu1 }
 0x215   : > { %2311 = vst.msk [vmem:[%s4522_s30 + $0xc8] sm:$0xff] %vm272_vm0, %v2581_v34  ;;  %v2247_v52 = vpop.f32.mrb[9].mxu1 }
 0x216   : > { %2310 = vst.msk [vmem:[%s4522_s30 + $0xc0] sm:$0xff] %vm272_vm0, %v2247_v52 }
 0x220   : > { %v2560_v63 = vpop.f32.mrb[10].mxu0 }
 0x221   : > { %2297 = vst.msk [vmem:[%s4522_s30 + $0x58] sm:$0xff] %vm272_vm0, %v2560_v63  ;;  %v2177_v19 = vpop.f32.mrb[11].mxu0 }
 0x222   : > { %2296 = vst.msk [vmem:[%s4522_s30 + $0x50] sm:$0xff] %vm272_vm0, %v2177_v19 }
 0x22c   : > { %v2584_v17 = vpop.f32.mrb[10].mxu1 }
 0x22d   : > { %2313 = vst.msk [vmem:[%s4522_s30 + $0xd8] sm:$0xff] %vm272_vm0, %v2584_v17  ;;  %v2257_v41 = vpop.f32.mrb[11].mxu1 }
 0x22e   : > { %2312 = vst.msk [vmem:[%s4522_s30 + $0xd0] sm:$0xff] %vm272_vm0, %v2257_v41 }
 0x235   : > { %v2563_v58 = vpop.f32.mrb[12].mxu0 }
 0x236   : > { %2299 = vst.msk [vmem:[%s4522_s30 + $0x68] sm:$0xff] %vm272_vm0, %v2563_v58  ;;  %v2187_v49 = vpop.f32.mrb[13].mxu0 }
 0x237   : > { %2298 = vst.msk [vmem:[%s4522_s30 + $0x60] sm:$0xff] %vm272_vm0, %v2187_v49 }
 0x242   : > { %v2587_v24 = vpop.f32.mrb[12].mxu1 }
 0x243   : > { %2315 = vst.msk [vmem:[%s4522_s30 + $0xe8] sm:$0xff] %vm272_vm0, %v2587_v24  ;;  %v2267_v40 = vpop.f32.mrb[13].mxu1 }
 0x244   : > { %2314 = vst.msk [vmem:[%s4522_s30 + $0xe0] sm:$0xff] %vm272_vm0, %v2267_v40 }
 0x245   : > { %v2566_v6 = vpop.f32.mrb[14].mxu0 }
 0x246   : > { %2301 = vst.msk [vmem:[%s4522_s30 + $0x78] sm:$0xff] %vm272_vm0, %v2566_v6  ;;  %v2197_v55 = vpop.f32.mrb[15].mxu0 }
 0x247   : > { %2300 = vst.msk [vmem:[%s4522_s30 + $0x70] sm:$0xff] %vm272_vm0, %v2197_v55 }
 0x250   : > { %v2590_v43 = vpop.f32.mrb[14].mxu1 }
 0x251   : > { %2317 = vst.msk [vmem:[%s4522_s30 + $0xf8] sm:$0xff] %vm272_vm0, %v2590_v43  ;;  %v2277_v20 = vpop.f32.mrb[15].mxu1 }
 0x252   : > { %2316 = vst.msk [vmem:[%s4522_s30 + $0xf0] sm:$0xff] %vm272_vm0, %v2277_v20 }
 0x253   : > { %2806 = shalt.err (!%p2803_p1)
}
 0x254   : > { %s2807_s16 = scalar_lea.hbm %s4589_s8, 4096  ;;  %s2811_s13 = scalar_lea.hbm %s4644_s5, 8192 }
 0x255   : > { %p2808_p13 = scmp.ne.s32.totalorder %s4589_s8, %s2807_s16  ;;  %p2812_p4 = scmp.lt.u32.totalorder %s4589_s8, %s4644_s5 }
 0x256   : > { %p2813_p5 = scmp.lt.u32.totalorder %s2811_s13, %s2807_s16  ;;  %p2815_p11 = scmp.lt.u32.totalorder %s2807_s16, %s4589_s8 }
 0x257   : > { %p2809_p6 = pnand %p2808_p13, %p4664_p0 }
 0x258   : > { %p2814_p8 = por %p2813_p5, %p2812_p4 }
 0x259   : > { %p2810_p10 = pneg %p2809_p6 }
 0x25a   : > { %p2816_p2 = por %p2815_p11, %p2814_p8 }
 0x25c   : > { %p2817_p3 = pnand %p2816_p2, %p2810_p10 }
 0x25e   : > { %2820 = shalt.err (!%p2817_p3)
}
 0x25f   : > { %s2872_s11 = smov 128   ;;  %s2873_s7 = smov 8  }
 0x260   : > { %2625 = dma.vmem_to_hbm [thread:$0]  (%p4664_p0), %s4591_s17, 4096, %s4589_s8, %s2319_s12, %s2872_s11, %s2872_s11, %s2873_s7  }
 0x261 PF: > { %s2347_s6 = sand.u32 1, %s2851_s18   ;;  %p4665_p7 = scmp.ne.s32.totalorder %s4649_s25, 0 }
 0x262   : > { %p4666_p9 = scmp.ge.s32.totalorder %s2863_s21, 2  ;;  %s2348_s24 = scalar_lea.sflag [#allocation6], %s2347_s6 }
 0x264   : > { %p2639_p12 = pnand %p4666_p9, %p4665_p7 }
 0x266   : > { %2846 = dma.done.wait (!%p2639_p12), %s2348_s24, 4096  }
 0x267   : > { %2848 = vsyncadd (!%p2639_p12), %s2348_s24, 4294963200  ;;  %p19_p1 = scmp.ge.s32.totalorder %s3020_s29, 4   ;;  %s4667_s18 = smov %s2855_s19 }
 0x268   : > { %s4668_s19 = smov %s2859_s20  ;;  %s4669_s20 = smov %s3036_s27 }
 0x269   : > { %s4670_s21 = smov %s3020_s29  ;;  %21 = sbr.rel (!%p19_p1) target bundleno = 6 (0x6), region = 95 }
 0x270   :  { %2353 = vsyncpa [#allocation5], 1 }
 0x271   :  { %2355 = vsyncpa [#allocation5 + $0x1], 1 }
 0x272   :  { %2356 = vsyncpa [#allocation8], 1 }
 0x273   :  { %2357 = vsyncpa [#allocation6], 1 }
 0x274   :  { %2359 = vsyncpa [#allocation6 + $0x1], 1 }

</bundles_post_ra>
